<compile_context>
chip_gen: v7x
topology: tpu7x:2x2x1
jax: 0.10.0
libtpu: 0.0.40
codegen_flags: <defaults>
</compile_context>

<pallas_src>
import math

import jax
import jax.numpy as jnp
from jax.experimental import pallas as pl
from jax.experimental.pallas import tpu as pltpu

# ----------------------------------------------------------------------------
# Config (the `args` namespace of GVPEncoder) - small demo sizes.
# ----------------------------------------------------------------------------
ARGS = dict(
    node_hidden_dim_scalar=32,
    node_hidden_dim_vector=8,
    edge_hidden_dim_scalar=16,
    edge_hidden_dim_vector=4,
    num_encoder_layers=2,
    dropout=0.1,          # unused at inference
    top_k_neighbors=4,
)

ACT_DTYPE = jnp.bfloat16   # HBM storage for activations; all kernel math is f32
MAX_ROW_TILE = 2048        # graph rows per grid step (rows live on the lane axis)
_EPS_NORM = 1e-8           # _norm_no_nan: sqrt(clamp(sum_sq, min=eps)) (matches ESM)
_EPS_LN = 1e-4             # tuple LayerNorm eps (ESM passes eps=1e-4)
_EPS_SCALAR_LN = 1e-5      # torch nn.LayerNorm default

_CPARAMS = pltpu.CompilerParams(
    dimension_semantics=("parallel",),
    vmem_limit_bytes=32 * 1024 * 1024,   # explicit: v5e default scoped VMEM is 16 MiB
)


# ----------------------------------------------------------------------------
# Tiling helpers
# ----------------------------------------------------------------------------
def _round_up(n, m):
    return ((n + m - 1) // m) * m


def _cdiv(a, b):
    return -(-a // b)


def _tile_and_pad(n):
    """Lane tile (multiple of 128) + padded row count.

    Keeps padding to at most one 128-lane group per tile and, when there are
    enough rows, keeps >= 2 grid steps so both v7x TensorCores get work."""
    n128 = _round_up(max(n, 1), 128)
    num_tiles = max(1, _cdiv(n128, MAX_ROW_TILE))
    if num_tiles == 1 and n128 >= 256:
        num_tiles = 2
    t = _round_up(_cdiv(n128, num_tiles), 128)
    return t, t * num_tiles


def _pad_axis(x, n, axis):
    if x.shape[axis] == n:
        return x
    pad = [(0, 0)] * x.ndim
    pad[axis] = (0, n - x.shape[axis])
    return jnp.pad(x, pad)


def _s_spec(c, t):
    return pl.BlockSpec((c, t), lambda i: (0, i))


def _v_spec(c, t):
    return pl.BlockSpec((3, c, t), lambda i: (0, 0, i))


def _w_spec(shape):
    return pl.BlockSpec(shape, lambda i: (0,) * len(shape))


# ----------------------------------------------------------------------------
# In-kernel math helpers (channels-on-sublanes / rows-on-lanes layout)
# ----------------------------------------------------------------------------
def _f32(x):
    return x.astype(jnp.float32)


def _gvp_t(s, vp, w, *, gated, scalar_act, vector_act):
    """Geometric Vector Perceptron on a row tile.

    s  : (si8, t) f32                 scalar channels x rows
    vp : [3 x (vi, t)] f32            one matrix per xyz coordinate plane
    w  : (whT, wsT, bs, wvT[, wgT, bg]) pre-transposed, sublane-padded weights
    """
    whT, wsT, bs, wvT = w[0], w[1], w[2], w[3]
    h = [jnp.dot(whT, p, preferred_element_type=jnp.float32) for p in vp]   # 3 x (h8, t)
    vn = jnp.sqrt(jnp.maximum(h[0] * h[0] + h[1] * h[1] + h[2] * h[2], _EPS_NORM))
    # single scalar-path matmul on concat([s, ||Wh v||]); boundary is 8-aligned
    s_cat = jnp.concatenate([s, vn], axis=0)
    s_out = jnp.dot(wsT, s_cat, preferred_element_type=jnp.float32) + bs    # (so, t)
    v_out = [jnp.dot(wvT, p, preferred_element_type=jnp.float32) for p in h]  # 3 x (vo, t)
    if gated:
        wgT, bg = w[4], w[5]
        g_in = jax.nn.sigmoid(s_out) if vector_act == "sigmoid" else s_out
        gate = jax.nn.sigmoid(
            jnp.dot(wgT, g_in, preferred_element_type=jnp.float32) + bg)    # (vo, t)
        v_out = [p * gate for p in v_out]          # broadcast over planes (no tile3)
    elif vector_act == "sigmoid":
        vno = jnp.sqrt(jnp.maximum(
            v_out[0] * v_out[0] + v_out[1] * v_out[1] + v_out[2] * v_out[2], _EPS_NORM))
        g = jax.nn.sigmoid(vno)
        v_out = [p * g for p in v_out]
    if scalar_act == "relu":
        s_out = jnp.maximum(s_out, 0.0)
    return s_out, v_out


def _ln_t(s, vp, gamma, beta):
    """Tuple LayerNorm (matches esm gvp_modules.LayerNorm: masked mean, eps=1e-4)."""
    mu = jnp.mean(s, axis=0, keepdims=True)
    var = jnp.mean((s - mu) ** 2, axis=0, keepdims=True)
    s_out = (s - mu) * jax.lax.rsqrt(var + _EPS_SCALAR_LN) * gamma + beta
    vn = vp[0] * vp[0] + vp[1] * vp[1] + vp[2] * vp[2]        # (Cv, t) squared norms
    mask = (vn > 2.0 * _EPS_LN).astype(jnp.float32)
    denom = _EPS_LN + jnp.sum(mask, axis=0, keepdims=True)
    mean_vn = jnp.sum(vn * mask, axis=0, keepdims=True) / denom
    inv = jax.lax.rsqrt(mean_vn + _EPS_LN)                    # (1, t)
    scale = mask * inv
    return s_out, [p * scale for p in vp]


# Weight ordering for flattening GVP param dicts into kernel operands
GVP_KEYS = ("whT", "wsT", "bs", "wvT")
GVP_KEYS_GATED = GVP_KEYS + ("wgT", "bg")


def _gvp_weights(p, gated):
    return [p[k] for k in (GVP_KEYS_GATED if gated else GVP_KEYS)]


# ----------------------------------------------------------------------------
# Fused Pallas kernels
# ----------------------------------------------------------------------------
def gvp_ln_fused(p_gvp, p_ln, s, v, conf=None):
    """GVP(no act, no gate) -> tuple LayerNorm [-> + Linear(rbf(confidence))]."""
    h8 = p_gvp["whT"].shape[0]
    si8 = p_gvp["wsT"].shape[1] - h8
    so = p_gvp["wsT"].shape[0]
    vo = p_gvp["wvT"].shape[0]
    vi = v.shape[1]
    N = s.shape[-1]
    t, n_pad = _tile_and_pad(N)
    has_conf = conf is not None

    data = [_pad_axis(_pad_axis(s, si8, 0), n_pad, 1), _pad_axis(v, n_pad, 2)]
    weights = _gvp_weights(p_gvp, gated=False) + [p_ln["gamma"], p_ln["beta"]]
    if has_conf:
        p_conf, rbf_rep = conf
        data.append(_pad_axis(rbf_rep, n_pad, 1))
        weights += [p_conf["wT"], p_conf["b"]]
    n_data, n_w = len(data), len(weights)

    def kernel(*refs):
        s_ref, v_ref = refs[0], refs[1]
        w = [r[...] for r in refs[n_data:n_data + n_w]]
        os_ref, ov_ref = refs[n_data + n_w], refs[n_data + n_w + 1]
        hs, hv = _gvp_t(_f32(s_ref[...]), [_f32(v_ref[p]) for p in range(3)],
                        w[:4], gated=False, scalar_act=None, vector_act=None)
        hs, hv = _ln_t(hs, hv, w[4], w[5])
        if has_conf:
            hs = hs + jnp.dot(w[6], _f32(refs[2][...]),
                              preferred_element_type=jnp.float32) + w[7]
        os_ref[...] = hs.astype(os_ref.dtype)
        for p in range(3):
            ov_ref[p] = hv[p].astype(ov_ref.dtype)

    in_specs = [_s_spec(si8, t), _v_spec(vi, t)]
    if has_conf:
        in_specs.append(_s_spec(data[2].shape[0], t))
    in_specs += [_w_spec(w.shape) for w in weights]

    s_out, v_out = pl.pallas_call(
        kernel,
        grid=(n_pad // t,),
        in_specs=in_specs,
        out_specs=(_s_spec(so, t), _v_spec(vo, t)),
        out_shape=(jax.ShapeDtypeStruct((so, n_pad), ACT_DTYPE),
                   jax.ShapeDtypeStruct((3, vo, n_pad), ACT_DTYPE)),
        compiler_params=_CPARAMS,
    )(*data, *weights)
    return s_out[:, :N], v_out[:, :, :N]


def message_fused(p0, p1, p2, s, v):
    """GVPConv message chain: GVP(act) -> GVP(act) -> GVP(None,None), all gated."""
    E = s.shape[-1]
    si, vi = s.shape[0], v.shape[1]           # si is a multiple of 8 by construction
    so = p2["wsT"].shape[0]
    vo = p2["wvT"].shape[0]
    t, n_pad = _tile_and_pad(E)

    data = [_pad_axis(s, n_pad, 1), _pad_axis(v, n_pad, 2)]
    weights = (_gvp_weights(p0, True) + _gvp_weights(p1, True)
               + _gvp_weights(p2, True))
    n_w = len(weights)  # 18

    def kernel(*refs):
        s_ref, v_ref = refs[0], refs[1]
        w = [r[...] for r in refs[2:2 + n_w]]
        os_ref, ov_ref = refs[2 + n_w], refs[2 + n_w + 1]
        hs = _f32(s_ref[...])
        hv = [_f32(v_ref[p]) for p in range(3)]
        hs, hv = _gvp_t(hs, hv, w[0:6], gated=True,
                        scalar_act="relu", vector_act="sigmoid")
        hs, hv = _gvp_t(hs, hv, w[6:12], gated=True,
                        scalar_act="relu", vector_act="sigmoid")
        hs, hv = _gvp_t(hs, hv, w[12:18], gated=True,
                        scalar_act=None, vector_act=None)
        os_ref[...] = hs.astype(os_ref.dtype)
        for p in range(3):
            ov_ref[p] = hv[p].astype(ov_ref.dtype)

    in_specs = ([_s_spec(si, t), _v_spec(vi, t)]
                + [_w_spec(w.shape) for w in weights])
    s_out, v_out = pl.pallas_call(
        kernel,
        grid=(n_pad // t,),
        in_specs=in_specs,
        out_specs=(_s_spec(so, t), _v_spec(vo, t)),
        out_shape=(jax.ShapeDtypeStruct((so, n_pad), ACT_DTYPE),
                   jax.ShapeDtypeStruct((3, vo, n_pad), ACT_DTYPE)),
        compiler_params=_CPARAMS,
    )(*data, *weights)
    return s_out[:, :E], v_out[:, :, :E]


def node_update_fused(lp, s, agg_s, v, agg_v):
    """residual + norm0 -> ff0 -> ff1 -> residual + norm1 (dropout = identity)."""
    N = s.shape[-1]
    ns, nv = s.shape[0], v.shape[1]
    t, n_pad = _tile_and_pad(N)

    data = [_pad_axis(s, n_pad, 1), _pad_axis(agg_s, n_pad, 1),
            _pad_axis(v, n_pad, 2), _pad_axis(agg_v, n_pad, 2)]
    weights = ([lp["norm0"]["gamma"], lp["norm0"]["beta"]]
               + _gvp_weights(lp["ff0"], True)
               + _gvp_weights(lp["ff1"], True)
               + [lp["norm1"]["gamma"], lp["norm1"]["beta"]])
    n_w = len(weights)  # 16

    def kernel(*refs):
        s_ref, as_ref, v_ref, av_ref = refs[0], refs[1], refs[2], refs[3]
        w = [r[...] for r in refs[4:4 + n_w]]
        os_ref, ov_ref = refs[4 + n_w], refs[4 + n_w + 1]
        s1 = _f32(s_ref[...]) + _f32(as_ref[...])
        v1 = [_f32(v_ref[p]) + _f32(av_ref[p]) for p in range(3)]
        s1, v1 = _ln_t(s1, v1, w[0], w[1])
        fs, fv = _gvp_t(s1, v1, w[2:8], gated=True,
                        scalar_act="relu", vector_act="sigmoid")
        fs, fv = _gvp_t(fs, fv, w[8:14], gated=True,
                        scalar_act=None, vector_act=None)
        s2, v2 = _ln_t(s1 + fs, [v1[p] + fv[p] for p in range(3)], w[14], w[15])
        os_ref[...] = s2.astype(os_ref.dtype)
        for p in range(3):
            ov_ref[p] = v2[p].astype(ov_ref.dtype)

    in_specs = ([_s_spec(ns, t), _s_spec(ns, t), _v_spec(nv, t), _v_spec(nv, t)]
                + [_w_spec(w.shape) for w in weights])
    s_out, v_out = pl.pallas_call(
        kernel,
        grid=(n_pad // t,),
        in_specs=in_specs,
        out_specs=(_s_spec(ns, t), _v_spec(nv, t)),
        out_shape=(jax.ShapeDtypeStruct((ns, n_pad), ACT_DTYPE),
                   jax.ShapeDtypeStruct((3, nv, n_pad), ACT_DTYPE)),
        compiler_params=_CPARAMS,
    )(*data, *weights)
    return s_out[:, :N], v_out[:, :, :N]


# ----------------------------------------------------------------------------
# Feature construction (JAX glue) - GVPInputFeaturizer / GVPGraphEmbedding
# ----------------------------------------------------------------------------
def _normalize(x, axis=-1, eps=1e-12):
    n2 = jnp.sum(x * x, axis=axis, keepdims=True)
    return x * jax.lax.rsqrt(jnp.maximum(n2, eps))


def _rbf(values, v_min, v_max, n_bins=16):
    centers = jnp.linspace(v_min, v_max, n_bins)
    std = (v_max - v_min) / n_bins
    z = (values[..., None] - centers) / std
    return jnp.exp(-z * z)


def _dihedrals(X, eps=1e-7):
    # X: (B, L, 3atoms, 3xyz) -> (B, L, 6)
    B, L = X.shape[:2]
    Xf = X[:, :, :3].reshape(B, 3 * L, 3)
    dX = Xf[:, 1:] - Xf[:, :-1]
    U = _normalize(dX)
    u2, u1, u0 = U[:, :-2], U[:, 1:-1], U[:, 2:]
    n2 = _normalize(jnp.cross(u2, u1))
    n1 = _normalize(jnp.cross(u1, u0))
    cosD = jnp.clip(jnp.sum(n2 * n1, -1), -1 + eps, 1 - eps)
    D = jnp.sign(jnp.sum(u2 * n1, -1)) * jnp.arccos(cosD)
    D = jnp.pad(D, ((0, 0), (1, 2)))
    D = D.reshape(B, L, 3)
    return jnp.concatenate([jnp.cos(D), jnp.sin(D)], -1)


def _orientations(X_ca):
    fwd = _normalize(X_ca[:, 1:] - X_ca[:, :-1])
    bwd = _normalize(X_ca[:, :-1] - X_ca[:, 1:])
    fwd = jnp.pad(fwd, ((0, 0), (0, 1), (0, 0)))
    bwd = jnp.pad(bwd, ((0, 0), (1, 0), (0, 0)))
    return jnp.stack([fwd, bwd], axis=-2)                    # (B, L, 2, 3)


def _sidechains(X):
    n, origin, c = X[:, :, 0], X[:, :, 1], X[:, :, 2]
    c, n = _normalize(c - origin), _normalize(n - origin)
    bisector = _normalize(c + n)
    perp = _normalize(jnp.cross(c, n))
    return -bisector * math.sqrt(1.0 / 3.0) - perp * math.sqrt(2.0 / 3.0)


def _positional_embeddings(offset, num_embeddings=16):
    freq = jnp.exp(jnp.arange(0, num_embeddings, 2, dtype=jnp.float32)
                   * -(math.log(10000.0) / num_embeddings))
    angles = offset[:, None] * freq[None, :]
    return jnp.concatenate([jnp.cos(angles), jnp.sin(angles)], -1)


def get_node_features(coords, coord_mask):
    dih = _dihedrals(coords)                                 # (B, L, 6)
    node_s = jnp.concatenate([dih, coord_mask[..., None].astype(jnp.float32)], -1)
    X_ca = coords[:, :, 1]
    ori = _orientations(X_ca)                                # (B, L, 2, 3)
    sc = _sidechains(coords)[:, :, None, :]                  # (B, L, 1, 3)
    node_v = jnp.concatenate([ori, sc], axis=-2)             # (B, L, 3, 3)
    return node_s, node_v


def get_edge_features(coords, coord_mask, padding_mask, top_k):
    # kNN graph on CA coords.  Convention: edge_index[0] = source j (neighbor),
    # edge_index[1] = destination i (center node); self-edge included.
    B, L = coords.shape[:2]
    X_ca = coords[:, :, 1]
    valid = coord_mask & (~padding_mask)
    mask2d = valid[:, :, None] & valid[:, None, :]
    dX = X_ca[:, :, None, :] - X_ca[:, None, :, :]
    D = jnp.sqrt(jnp.sum(dX * dX, -1) + 1e-8)
    D_adj = jnp.where(mask2d, D, D + 1e6)
    _, E_idx = jax.lax.top_k(-D_adj, top_k)                  # (B, L, K)

    dst_local = jnp.broadcast_to(jnp.arange(L)[None, :, None], (B, L, top_k))
    offs = (jnp.arange(B) * L)[:, None, None]
    src = (E_idx + offs).reshape(-1).astype(jnp.int32)
    dst = (dst_local + offs).reshape(-1).astype(jnp.int32)
    edge_index = jnp.stack([src, dst])                       # (2, E)

    Xf = X_ca.reshape(B * L, 3)
    E_vec = Xf[src] - Xf[dst]
    d = jnp.sqrt(jnp.sum(E_vec * E_vec, -1) + 1e-8)
    rbf_d = _rbf(d, 0.0, 20.0, 16)
    pos = _positional_embeddings((src - dst).astype(jnp.float32), 16)
    cm = coord_mask.reshape(-1).astype(jnp.float32)
    edge_s = jnp.concatenate(
        [rbf_d, pos, cm[src][:, None], cm[dst][:, None]], axis=-1)   # (E, 34)
    edge_v = _normalize(E_vec)[:, None, :]                           # (E, 1, 3)
    return edge_s, edge_v, edge_index


# ----------------------------------------------------------------------------
# Model: GVPGraphEmbedding + GVPConvLayer stack
# ----------------------------------------------------------------------------
def embed_graph(params, coords, coord_mask, padding_mask, confidence):
    B, L = coords.shape[:2]
    node_s, node_v = get_node_features(coords, coord_mask)
    edge_s, edge_v, edge_index = get_edge_features(
        coords, coord_mask, padding_mask, ARGS["top_k_neighbors"])

    # channels-major / rows-on-lanes layout, bf16 HBM storage
    ns_t = node_s.reshape(B * L, -1).T.astype(ACT_DTYPE)                          # (7, N)
    nv_t = jnp.transpose(node_v.reshape(B * L, 3, 3), (2, 1, 0)).astype(ACT_DTYPE)  # (3,3,N)
    es_t = edge_s.T.astype(ACT_DTYPE)                                             # (34, E)
    ev_t = jnp.transpose(edge_v, (2, 1, 0)).astype(ACT_DTYPE)                     # (3, 1, E)
    rbf_rep = _rbf(confidence.reshape(-1), 0.0, 1.0, 16).T.astype(ACT_DTYPE)      # (16, N)

    # embed_node: GVP -> LayerNorm -> + confidence Linear (one fused kernel)
    hs, hv = gvp_ln_fused(params["embed_node_gvp"], params["embed_node_ln"],
                          ns_t, nv_t, conf=(params["embed_conf"], rbf_rep))
    # embed_edge: GVP -> LayerNorm (one fused kernel)
    es2, ev2 = gvp_ln_fused(params["embed_edge_gvp"], params["embed_edge_ln"],
                            es_t, ev_t)
    return (hs, hv), (es2, ev2), edge_index


def conv_layer_apply(lp, s, v, edge_index, es, ev):
    """One GVPConvLayer (attention_heads=0, n_message=3, n_edge_gvps=0, residual)."""
    src, dst = edge_index[0], edge_index[1]
    N = s.shape[-1]
    E = dst.shape[0]
    # TODO(synk): per-edge gather/concat + scatter-mean left in XLA (lane-axis gather
    #             is not expressible with BlockSpec index maps).
    m_s = jnp.concatenate([s[:, src], es, s[:, dst]], axis=0)          # (2ns+es, E)
    m_v = jnp.concatenate([v[:, :, src], ev, v[:, :, dst]], axis=1)    # (3, 2nv+ev, E)
    # 3 message GVPs fused into one kernel
    m_s, m_v = message_fused(lp["msg0"], lp["msg1"], lp["msg2"], m_s, m_v)

    # scatter-mean aggregation at destination nodes (f32 accumulation)
    cnt = jnp.maximum(jax.ops.segment_sum(jnp.ones((E,), jnp.float32), dst,
                                          num_segments=N), 1.0)
    agg_s = jax.ops.segment_sum(m_s.astype(jnp.float32).T, dst,
                                num_segments=N).T / cnt[None, :]
    C = m_v.shape[1]
    mvf = m_v.astype(jnp.float32).reshape(3 * C, E).T
    agg_v = (jax.ops.segment_sum(mvf, dst, num_segments=N).T.reshape(3, C, N)
             / cnt[None, None, :])

    # residual + norm0 + feed-forward GVPs + residual + norm1 in one fused kernel
    s2, v2 = node_update_fused(lp, s, agg_s, v, agg_v)
    return (s2, v2), (es, ev)                                # edges unchanged (n_edge_gvps=0)


def gvp_encoder_forward(params, coords, coord_mask, padding_mask, confidence):
    B, L = coords.shape[:2]
    (hs, hv), (es, ev), edge_index = embed_graph(
        params, coords, coord_mask, padding_mask, confidence)
    for lp in params["layers"]:
        (hs, hv), (es, ev) = conv_layer_apply(lp, hs, hv, edge_index, es, ev)
    # unflatten_graph (back to rows-major f32)
    s_out = hs.astype(jnp.float32).T.reshape(B, L, -1)
    v_out = jnp.transpose(hv.astype(jnp.float32), (2, 1, 0)).reshape(B, L, -1, 3)
    return s_out, v_out


# ----------------------------------------------------------------------------
# Deterministic parameter init (synthetic weights).  Weights are pre-transposed
# for left-multiply (out, in) and sublane-padded (si -> si8, h -> h8) so the
# in-kernel concat([s, ||Wh v||]) stays 8-aligned; ws is the single torch
# Linear(si + h, so) folded into one matrix.
# ----------------------------------------------------------------------------
def _dense(key, shape):
    return jax.random.normal(key, shape, jnp.float32) / math.sqrt(shape[0])


def init_gvp(key, si, vi, so, vo, gate):
    h = max(vi, vo)
    si8, h8 = _round_up(si, 8), _round_up(h, 8)
    k = jax.random.split(key, 6)
    whT = jnp.zeros((h8, vi), jnp.float32).at[:h, :].set(_dense(k[0], (vi, h)).T)
    ws = _dense(k[1], (si + h, so))
    wsT = jnp.zeros((so, si8 + h8), jnp.float32)
    wsT = wsT.at[:, :si].set(ws[:si].T)
    wsT = wsT.at[:, si8:si8 + h].set(ws[si:].T)
    bs = 0.02 * jax.random.normal(k[2], (so, 1), jnp.float32)
    wvT = jnp.zeros((vo, h8), jnp.float32).at[:, :h].set(_dense(k[3], (h, vo)).T)
    p = dict(whT=whT, wsT=wsT, bs=bs, wvT=wvT)
    if gate:
        p["wgT"] = _dense(k[4], (so, vo)).T
        p["bg"] = 0.02 * jax.random.normal(k[5], (vo, 1), jnp.float32)
    return p


def init_ln(sd):
    return dict(gamma=jnp.ones((sd, 1), jnp.float32),
                beta=jnp.zeros((sd, 1), jnp.float32))


def init_params(key):
    ns, nv = ARGS["node_hidden_dim_scalar"], ARGS["node_hidden_dim_vector"]
    es, ev = ARGS["edge_hidden_dim_scalar"], ARGS["edge_hidden_dim_vector"]
    keys = jax.random.split(key, 4 + ARGS["num_encoder_layers"])
    params = dict(
        embed_node_gvp=init_gvp(keys[0], 7, 3, ns, nv, gate=False),
        embed_node_ln=init_ln(ns),
        embed_edge_gvp=init_gvp(keys[1], 34, 1, es, ev, gate=False),
        embed_edge_ln=init_ln(es),
        embed_conf=dict(wT=_dense(keys[2], (16, ns)).T,
                        b=jnp.zeros((ns, 1), jnp.float32)),
    )
    layers = []
    for li in range(ARGS["num_encoder_layers"]):
        k = jax.random.split(keys[3 + li], 5)
        layers.append(dict(
            # All message / FF GVPs carry the vector gate (ESM partial(GVP, vector_gate=True));
            # the last of each chain just has activations=(None, None).
            msg0=init_gvp(k[0], 2 * ns + es, 2 * nv + ev, ns, nv, gate=True),
            msg1=init_gvp(k[1], ns, nv, ns, nv, gate=True),
            msg2=init_gvp(k[2], ns, nv, ns, nv, gate=True),
            norm0=init_ln(ns),
            ff0=init_gvp(k[3], ns, nv, 4 * ns, 2 * nv, gate=True),
            ff1=init_gvp(k[4], 4 * ns, 2 * nv, ns, nv, gate=True),
            norm1=init_ln(ns),
        ))
    params["layers"] = layers
    return params


# ----------------------------------------------------------------------------
if __name__ == "__main__":
    B, L = 2, 8   # N_nodes = 16, N_edges = B*L*top_k = 64
    key = jax.random.PRNGKey(0)
    k_coords, k_conf, k_params = jax.random.split(key, 3)

    coords = 3.0 * jax.random.normal(k_coords, (B, L, 3, 3), jnp.float32)
    coord_mask = jnp.ones((B, L), dtype=bool)
    padding_mask = jnp.zeros((B, L), dtype=bool)
    confidence = jax.random.uniform(k_conf, (B, L), jnp.float32)

    params = init_params(k_params)

    fwd = jax.jit(gvp_encoder_forward)
    node_s, node_v = fwd(params, coords, coord_mask, padding_mask, confidence)
    jax.block_until_ready((node_s, node_v))

    assert node_s.shape == (B, L, ARGS["node_hidden_dim_scalar"])
    assert node_v.shape == (B, L, ARGS["node_hidden_dim_vector"], 3)
    assert bool(jnp.all(jnp.isfinite(node_s))) and bool(jnp.all(jnp.isfinite(node_v)))
    print("KERNEL_OK")
</pallas_src>

<mosaic_0001>
module attributes {stable_mosaic.version = 11 : i64} {
  func.func private @main(%arg0: i32) attributes {dimension_semantics = [#tpu.dimension_semantics<core_parallel>], iteration_bounds = array<i64: 2>, tpu.core_type = #tpu.core_type<sc_scalar_subcore>, window_params = []} {
    return
  }
}

module attributes {stable_mosaic.version = 11 : i64} {
  func.func private @main(%arg0: i32) attributes {dimension_semantics = [#tpu.dimension_semantics<core_parallel>], iteration_bounds = array<i64: 2>, tpu.core_type = #tpu.core_type<sc_scalar_subcore>, window_params = []} {
    return
  }
}

module attributes {stable_mosaic.version = 11 : i64} {
  func.func @kernel(%arg0: i32, %arg1: memref<8x128xbf16, #tpu.memory_space<vmem>>, %arg2: memref<3x3x128xbf16, #tpu.memory_space<vmem>>, %arg3: memref<16x128xbf16, #tpu.memory_space<vmem>>, %arg4: memref<8x3xf32, #tpu.memory_space<vmem>>, %arg5: memref<32x16xf32, #tpu.memory_space<vmem>>, %arg6: memref<32x1xf32, #tpu.memory_space<vmem>>, %arg7: memref<8x8xf32, #tpu.memory_space<vmem>>, %arg8: memref<32x1xf32, #tpu.memory_space<vmem>>, %arg9: memref<32x1xf32, #tpu.memory_space<vmem>>, %arg10: memref<32x16xf32, #tpu.memory_space<vmem>>, %arg11: memref<32x1xf32, #tpu.memory_space<vmem>>, %arg12: memref<32x128xbf16, #tpu.memory_space<vmem>>, %arg13: memref<3x8x128xbf16, #tpu.memory_space<vmem>>) attributes {dimension_semantics = [#tpu.dimension_semantics<parallel>], iteration_bounds = array<i64: 1>, scalar_prefetch = 0 : i64, scratch_operands = 0 : i64, tpu.core_type = #tpu.core_type<tc>, window_params = [{transform_indices = @transform_0, window_bounds = array<i64: 8, 128>}, {transform_indices = @transform_1, window_bounds = array<i64: 3, 3, 128>}, {transform_indices = @transform_2, window_bounds = array<i64: 16, 128>}, {pipeline_mode = #tpu.pipeline_mode<synchronous>, transform_indices = @transform_3, window_bounds = array<i64: 8, 3>}, {pipeline_mode = #tpu.pipeline_mode<synchronous>, transform_indices = @transform_4, window_bounds = array<i64: 32, 16>}, {pipeline_mode = #tpu.pipeline_mode<synchronous>, transform_indices = @transform_5, window_bounds = array<i64: 32, 1>}, {pipeline_mode = #tpu.pipeline_mode<synchronous>, transform_indices = @transform_6, window_bounds = array<i64: 8, 8>}, {pipeline_mode = #tpu.pipeline_mode<synchronous>, transform_indices = @transform_7, window_bounds = array<i64: 32, 1>}, {pipeline_mode = #tpu.pipeline_mode<synchronous>, transform_indices = @transform_8, window_bounds = array<i64: 32, 1>}, {pipeline_mode = #tpu.pipeline_mode<synchronous>, transform_indices = @transform_9, window_bounds = array<i64: 32, 16>}, {pipeline_mode = #tpu.pipeline_mode<synchronous>, transform_indices = @transform_10, window_bounds = array<i64: 32, 1>}, {transform_indices = @transform_11, window_bounds = array<i64: 32, 128>}, {transform_indices = @transform_12, window_bounds = array<i64: 3, 8, 128>}]} {
    %c0 = arith.constant 0 : index
    %c0_0 = arith.constant 0 : index
    %0 = vector.load %arg4[%c0, %c0_0] : memref<8x3xf32, #tpu.memory_space<vmem>>, vector<8x3xf32>
    %c0_1 = arith.constant 0 : index
    %c0_2 = arith.constant 0 : index
    %1 = vector.load %arg5[%c0_1, %c0_2] : memref<32x16xf32, #tpu.memory_space<vmem>>, vector<32x16xf32>
    %c0_3 = arith.constant 0 : index
    %c0_4 = arith.constant 0 : index
    %2 = vector.load %arg6[%c0_3, %c0_4] : memref<32x1xf32, #tpu.memory_space<vmem>>, vector<32x1xf32>
    %c0_5 = arith.constant 0 : index
    %c0_6 = arith.constant 0 : index
    %3 = vector.load %arg7[%c0_5, %c0_6] : memref<8x8xf32, #tpu.memory_space<vmem>>, vector<8x8xf32>
    %c0_7 = arith.constant 0 : index
    %c0_8 = arith.constant 0 : index
    %4 = vector.load %arg8[%c0_7, %c0_8] : memref<32x1xf32, #tpu.memory_space<vmem>>, vector<32x1xf32>
    %c0_9 = arith.constant 0 : index
    %c0_10 = arith.constant 0 : index
    %5 = vector.load %arg9[%c0_9, %c0_10] : memref<32x1xf32, #tpu.memory_space<vmem>>, vector<32x1xf32>
    %c0_11 = arith.constant 0 : index
    %c0_12 = arith.constant 0 : index
    %6 = vector.load %arg10[%c0_11, %c0_12] : memref<32x16xf32, #tpu.memory_space<vmem>>, vector<32x16xf32>
    %c0_13 = arith.constant 0 : index
    %c0_14 = arith.constant 0 : index
    %7 = vector.load %arg11[%c0_13, %c0_14] : memref<32x1xf32, #tpu.memory_space<vmem>>, vector<32x1xf32>
    %c0_15 = arith.constant 0 : index
    %c0_16 = arith.constant 0 : index
    %8 = vector.load %arg1[%c0_15, %c0_16] : memref<8x128xbf16, #tpu.memory_space<vmem>>, vector<8x128xbf16>
    %9 = arith.extf %8 : vector<8x128xbf16> to vector<8x128xf32>
    %c0_17 = arith.constant 0 : index
    %c0_18 = arith.constant 0 : index
    %c0_19 = arith.constant 0 : index
    %10 = vector.load %arg2[%c0_17, %c0_18, %c0_19] : memref<3x3x128xbf16, #tpu.memory_space<vmem>>, vector<1x3x128xbf16>
    %11 = vector.shape_cast %10 : vector<1x3x128xbf16> to vector<3x128xbf16>
    %12 = arith.extf %11 : vector<3x128xbf16> to vector<3x128xf32>
    %c1 = arith.constant 1 : index
    %c0_20 = arith.constant 0 : index
    %c0_21 = arith.constant 0 : index
    %13 = vector.load %arg2[%c1, %c0_20, %c0_21] : memref<3x3x128xbf16, #tpu.memory_space<vmem>>, vector<1x3x128xbf16>
    %14 = vector.shape_cast %13 : vector<1x3x128xbf16> to vector<3x128xbf16>
    %15 = arith.extf %14 : vector<3x128xbf16> to vector<3x128xf32>
    %c2 = arith.constant 2 : index
    %c0_22 = arith.constant 0 : index
    %c0_23 = arith.constant 0 : index
    %16 = vector.load %arg2[%c2, %c0_22, %c0_23] : memref<3x3x128xbf16, #tpu.memory_space<vmem>>, vector<1x3x128xbf16>
    %17 = vector.shape_cast %16 : vector<1x3x128xbf16> to vector<3x128xbf16>
    %18 = arith.extf %17 : vector<3x128xbf16> to vector<3x128xf32>
    %cst = arith.constant dense<0.000000e+00> : vector<8x128xf32>
    %19 = tpu.matmul %0, %12, %cst {dimension_numbers = #tpu.dot_dimension_numbers<[1], [0], [0], [1], [0, 0, 1, 1], [], []>} : vector<8x3xf32>, vector<3x128xf32>, vector<8x128xf32> -> vector<8x128xf32>
    %cst_24 = arith.constant dense<0.000000e+00> : vector<8x128xf32>
    %20 = tpu.matmul %0, %15, %cst_24 {dimension_numbers = #tpu.dot_dimension_numbers<[1], [0], [0], [1], [0, 0, 1, 1], [], []>} : vector<8x3xf32>, vector<3x128xf32>, vector<8x128xf32> -> vector<8x128xf32>
    %cst_25 = arith.constant dense<0.000000e+00> : vector<8x128xf32>
    %21 = tpu.matmul %0, %18, %cst_25 {dimension_numbers = #tpu.dot_dimension_numbers<[1], [0], [0], [1], [0, 0, 1, 1], [], []>} : vector<8x3xf32>, vector<3x128xf32>, vector<8x128xf32> -> vector<8x128xf32>
    %22 = arith.mulf %19, %19 : vector<8x128xf32>
    %23 = arith.mulf %20, %20 : vector<8x128xf32>
    %24 = arith.addf %22, %23 : vector<8x128xf32>
    %25 = arith.mulf %21, %21 : vector<8x128xf32>
    %26 = arith.addf %24, %25 : vector<8x128xf32>
    %cst_26 = arith.constant 9.99999993E-9 : f32
    %27 = vector.broadcast %cst_26 : f32 to vector<8x128xf32>
    %28 = arith.maximumf %26, %27 : vector<8x128xf32>
    %29 = math.sqrt %28 : vector<8x128xf32>
    %30 = tpu.concatenate %9, %29 in 0 : vector<8x128xf32>, vector<8x128xf32> -> vector<16x128xf32>
    %cst_27 = arith.constant dense<0.000000e+00> : vector<32x128xf32>
    %31 = tpu.matmul %1, %30, %cst_27 {dimension_numbers = #tpu.dot_dimension_numbers<[1], [0], [0], [1], [0, 0, 1, 1], [], []>} : vector<32x16xf32>, vector<16x128xf32>, vector<32x128xf32> -> vector<32x128xf32>
    %32 = vector.broadcast %2 : vector<32x1xf32> to vector<32x128xf32>
    %33 = arith.addf %31, %32 : vector<32x128xf32>
    %cst_28 = arith.constant dense<0.000000e+00> : vector<8x128xf32>
    %34 = tpu.matmul %3, %19, %cst_28 {dimension_numbers = #tpu.dot_dimension_numbers<[1], [0], [0], [1], [0, 0, 1, 1], [], []>} : vector<8x8xf32>, vector<8x128xf32>, vector<8x128xf32> -> vector<8x128xf32>
    %cst_29 = arith.constant dense<0.000000e+00> : vector<8x128xf32>
    %35 = tpu.matmul %3, %20, %cst_29 {dimension_numbers = #tpu.dot_dimension_numbers<[1], [0], [0], [1], [0, 0, 1, 1], [], []>} : vector<8x8xf32>, vector<8x128xf32>, vector<8x128xf32> -> vector<8x128xf32>
    %cst_30 = arith.constant dense<0.000000e+00> : vector<8x128xf32>
    %36 = tpu.matmul %3, %21, %cst_30 {dimension_numbers = #tpu.dot_dimension_numbers<[1], [0], [0], [1], [0, 0, 1, 1], [], []>} : vector<8x8xf32>, vector<8x128xf32>, vector<8x128xf32> -> vector<8x128xf32>
    %cst_31 = arith.constant dense<0.000000e+00> : vector<128xf32>
    %37 = vector.multi_reduction <add>, %33, %cst_31 [0] : vector<32x128xf32> to vector<128xf32>
    %38 = vector.shape_cast %37 : vector<128xf32> to vector<1x128xf32>
    %cst_32 = arith.constant 3.200000e+01 : f32
    %39 = vector.broadcast %cst_32 : f32 to vector<1x128xf32>
    %40 = arith.divf %38, %39 : vector<1x128xf32>
    %41 = vector.broadcast %40 : vector<1x128xf32> to vector<32x128xf32>
    %42 = arith.subf %33, %41 : vector<32x128xf32>
    %43 = arith.mulf %42, %42 : vector<32x128xf32>
    %cst_33 = arith.constant dense<0.000000e+00> : vector<128xf32>
    %44 = vector.multi_reduction <add>, %43, %cst_33 [0] : vector<32x128xf32> to vector<128xf32>
    %45 = vector.shape_cast %44 : vector<128xf32> to vector<1x128xf32>
    %cst_34 = arith.constant 3.200000e+01 : f32
    %46 = vector.broadcast %cst_34 : f32 to vector<1x128xf32>
    %47 = arith.divf %45, %46 : vector<1x128xf32>
    %48 = vector.broadcast %40 : vector<1x128xf32> to vector<32x128xf32>
    %49 = arith.subf %33, %48 : vector<32x128xf32>
    %cst_35 = arith.constant 9.99999974E-6 : f32
    %50 = vector.broadcast %cst_35 : f32 to vector<1x128xf32>
    %51 = arith.addf %47, %50 : vector<1x128xf32>
    %52 = math.rsqrt %51 : vector<1x128xf32>
    %53 = vector.broadcast %52 : vector<1x128xf32> to vector<32x128xf32>
    %54 = arith.mulf %49, %53 : vector<32x128xf32>
    %55 = vector.broadcast %4 : vector<32x1xf32> to vector<32x128xf32>
    %56 = arith.mulf %54, %55 : vector<32x128xf32>
    %57 = vector.broadcast %5 : vector<32x1xf32> to vector<32x128xf32>
    %58 = arith.addf %56, %57 : vector<32x128xf32>
    %59 = arith.mulf %34, %34 : vector<8x128xf32>
    %60 = arith.mulf %35, %35 : vector<8x128xf32>
    %61 = arith.addf %59, %60 : vector<8x128xf32>
    %62 = arith.mulf %36, %36 : vector<8x128xf32>
    %63 = arith.addf %61, %62 : vector<8x128xf32>
    %cst_36 = arith.constant 2.000000e-04 : f32
    %64 = vector.broadcast %cst_36 : f32 to vector<8x128xf32>
    %65 = arith.cmpf ogt, %63, %64 : vector<8x128xf32>
    %66 = arith.extui %65 : vector<8x128xi1> to vector<8x128xi32>
    %67 = arith.sitofp %66 : vector<8x128xi32> to vector<8x128xf32>
    %cst_37 = arith.constant dense<0.000000e+00> : vector<128xf32>
    %68 = vector.multi_reduction <add>, %67, %cst_37 [0] : vector<8x128xf32> to vector<128xf32>
    %69 = vector.shape_cast %68 : vector<128xf32> to vector<1x128xf32>
    %cst_38 = arith.constant 9.99999974E-5 : f32
    %70 = vector.broadcast %cst_38 : f32 to vector<1x128xf32>
    %71 = arith.addf %70, %69 : vector<1x128xf32>
    %72 = arith.mulf %63, %67 : vector<8x128xf32>
    %cst_39 = arith.constant dense<0.000000e+00> : vector<128xf32>
    %73 = vector.multi_reduction <add>, %72, %cst_39 [0] : vector<8x128xf32> to vector<128xf32>
    %74 = vector.shape_cast %73 : vector<128xf32> to vector<1x128xf32>
    %75 = arith.divf %74, %71 : vector<1x128xf32>
    %cst_40 = arith.constant 9.99999974E-5 : f32
    %76 = vector.broadcast %cst_40 : f32 to vector<1x128xf32>
    %77 = arith.addf %75, %76 : vector<1x128xf32>
    %78 = math.rsqrt %77 : vector<1x128xf32>
    %79 = vector.broadcast %78 : vector<1x128xf32> to vector<8x128xf32>
    %80 = arith.mulf %67, %79 : vector<8x128xf32>
    %81 = arith.mulf %34, %80 : vector<8x128xf32>
    %82 = arith.mulf %35, %80 : vector<8x128xf32>
    %83 = arith.mulf %36, %80 : vector<8x128xf32>
    %c0_41 = arith.constant 0 : index
    %c0_42 = arith.constant 0 : index
    %84 = vector.load %arg3[%c0_41, %c0_42] : memref<16x128xbf16, #tpu.memory_space<vmem>>, vector<16x128xbf16>
    %85 = arith.extf %84 : vector<16x128xbf16> to vector<16x128xf32>
    %cst_43 = arith.constant dense<0.000000e+00> : vector<32x128xf32>
    %86 = tpu.matmul %6, %85, %cst_43 {dimension_numbers = #tpu.dot_dimension_numbers<[1], [0], [0], [1], [0, 0, 1, 1], [], []>} : vector<32x16xf32>, vector<16x128xf32>, vector<32x128xf32> -> vector<32x128xf32>
    %87 = arith.addf %58, %86 : vector<32x128xf32>
    %88 = vector.broadcast %7 : vector<32x1xf32> to vector<32x128xf32>
    %89 = arith.addf %87, %88 : vector<32x128xf32>
    %90 = arith.truncf %89 : vector<32x128xf32> to vector<32x128xbf16>
    %c0_44 = arith.constant 0 : index
    %c0_45 = arith.constant 0 : index
    %91 = vector.load %arg12[%c0_44, %c0_45] : memref<32x128xbf16, #tpu.memory_space<vmem>>, vector<32x128xbf16>
    tpu.vector_store %arg12[%c0_44, %c0_45], %90 {strides = array<i32>} : memref<32x128xbf16, #tpu.memory_space<vmem>>, vector<32x128xbf16>,
    %92 = arith.truncf %81 : vector<8x128xf32> to vector<8x128xbf16>
    %c0_46 = arith.constant 0 : index
    %c0_47 = arith.constant 0 : index
    %c0_48 = arith.constant 0 : index
    %93 = vector.load %arg13[%c0_46, %c0_47, %c0_48] : memref<3x8x128xbf16, #tpu.memory_space<vmem>>, vector<1x8x128xbf16>
    %94 = vector.shape_cast %93 : vector<1x8x128xbf16> to vector<8x128xbf16>
    %95 = vector.shape_cast %92 : vector<8x128xbf16> to vector<1x8x128xbf16>
    tpu.vector_store %arg13[%c0_46, %c0_47, %c0_48], %95 {strides = array<i32>} : memref<3x8x128xbf16, #tpu.memory_space<vmem>>, vector<1x8x128xbf16>,
    %96 = arith.truncf %82 : vector<8x128xf32> to vector<8x128xbf16>
    %c1_49 = arith.constant 1 : index
    %c0_50 = arith.constant 0 : index
    %c0_51 = arith.constant 0 : index
    %97 = vector.load %arg13[%c1_49, %c0_50, %c0_51] : memref<3x8x128xbf16, #tpu.memory_space<vmem>>, vector<1x8x128xbf16>
    %98 = vector.shape_cast %97 : vector<1x8x128xbf16> to vector<8x128xbf16>
    %99 = vector.shape_cast %96 : vector<8x128xbf16> to vector<1x8x128xbf16>
    tpu.vector_store %arg13[%c1_49, %c0_50, %c0_51], %99 {strides = array<i32>} : memref<3x8x128xbf16, #tpu.memory_space<vmem>>, vector<1x8x128xbf16>,
    %100 = arith.truncf %83 : vector<8x128xf32> to vector<8x128xbf16>
    %c2_52 = arith.constant 2 : index
    %c0_53 = arith.constant 0 : index
    %c0_54 = arith.constant 0 : index
    %101 = vector.load %arg13[%c2_52, %c0_53, %c0_54] : memref<3x8x128xbf16, #tpu.memory_space<vmem>>, vector<1x8x128xbf16>
    %102 = vector.shape_cast %101 : vector<1x8x128xbf16> to vector<8x128xbf16>
    %103 = vector.shape_cast %100 : vector<8x128xbf16> to vector<1x8x128xbf16>
    tpu.vector_store %arg13[%c2_52, %c0_53, %c0_54], %103 {strides = array<i32>} : memref<3x8x128xbf16, #tpu.memory_space<vmem>>, vector<1x8x128xbf16>,
    return
  }
  func.func @transform_0(%arg0: i32) -> (i32, i32) {
    %c0_i32 = arith.constant 0 : i32
    %c0_i32_0 = arith.constant 0 : i32
    return %c0_i32, %arg0 : i32, i32
  }
  func.func @transform_1(%arg0: i32) -> (i32, i32, i32) {
    %c0_i32 = arith.constant 0 : i32
    %c0_i32_0 = arith.constant 0 : i32
    %c0_i32_1 = arith.constant 0 : i32
    return %c0_i32, %c0_i32_0, %arg0 : i32, i32, i32
  }
  func.func @transform_2(%arg0: i32) -> (i32, i32) {
    %c0_i32 = arith.constant 0 : i32
    %c0_i32_0 = arith.constant 0 : i32
    return %c0_i32, %arg0 : i32, i32
  }
  func.func @transform_3(%arg0: i32) -> (i32, i32) {
    %c0_i32 = arith.constant 0 : i32
    %c0_i32_0 = arith.constant 0 : i32
    %c0_i32_1 = arith.constant 0 : i32
    return %c0_i32, %c0_i32_0 : i32, i32
  }
  func.func @transform_4(%arg0: i32) -> (i32, i32) {
    %c0_i32 = arith.constant 0 : i32
    %c0_i32_0 = arith.constant 0 : i32
    %c0_i32_1 = arith.constant 0 : i32
    return %c0_i32, %c0_i32_0 : i32, i32
  }
  func.func @transform_5(%arg0: i32) -> (i32, i32) {
    %c0_i32 = arith.constant 0 : i32
    %c0_i32_0 = arith.constant 0 : i32
    %c0_i32_1 = arith.constant 0 : i32
    return %c0_i32, %c0_i32_0 : i32, i32
  }
  func.func @transform_6(%arg0: i32) -> (i32, i32) {
    %c0_i32 = arith.constant 0 : i32
    %c0_i32_0 = arith.constant 0 : i32
    %c0_i32_1 = arith.constant 0 : i32
    return %c0_i32, %c0_i32_0 : i32, i32
  }
  func.func @transform_7(%arg0: i32) -> (i32, i32) {
    %c0_i32 = arith.constant 0 : i32
    %c0_i32_0 = arith.constant 0 : i32
    %c0_i32_1 = arith.constant 0 : i32
    return %c0_i32, %c0_i32_0 : i32, i32
  }
  func.func @transform_8(%arg0: i32) -> (i32, i32) {
    %c0_i32 = arith.constant 0 : i32
    %c0_i32_0 = arith.constant 0 : i32
    %c0_i32_1 = arith.constant 0 : i32
    return %c0_i32, %c0_i32_0 : i32, i32
  }
  func.func @transform_9(%arg0: i32) -> (i32, i32) {
    %c0_i32 = arith.constant 0 : i32
    %c0_i32_0 = arith.constant 0 : i32
    %c0_i32_1 = arith.constant 0 : i32
    return %c0_i32, %c0_i32_0 : i32, i32
  }
  func.func @transform_10(%arg0: i32) -> (i32, i32) {
    %c0_i32 = arith.constant 0 : i32
    %c0_i32_0 = arith.constant 0 : i32
    %c0_i32_1 = arith.constant 0 : i32
    return %c0_i32, %c0_i32_0 : i32, i32
  }
  func.func @transform_11(%arg0: i32) -> (i32, i32) {
    %c0_i32 = arith.constant 0 : i32
    %c0_i32_0 = arith.constant 0 : i32
    return %c0_i32, %arg0 : i32, i32
  }
  func.func @transform_12(%arg0: i32) -> (i32, i32, i32) {
    %c0_i32 = arith.constant 0 : i32
    %c0_i32_0 = arith.constant 0 : i32
    %c0_i32_1 = arith.constant 0 : i32
    return %c0_i32, %c0_i32_0, %arg0 : i32, i32, i32
  }
}

module attributes {stable_mosaic.version = 11 : i64} {
  func.func @kernel(%arg0: i32, %arg1: memref<80x128xbf16, #tpu.memory_space<vmem>>, %arg2: memref<3x20x128xbf16, #tpu.memory_space<vmem>>, %arg3: memref<24x20xf32, #tpu.memory_space<vmem>>, %arg4: memref<32x104xf32, #tpu.memory_space<vmem>>, %arg5: memref<32x1xf32, #tpu.memory_space<vmem>>, %arg6: memref<8x24xf32, #tpu.memory_space<vmem>>, %arg7: memref<8x32xf32, #tpu.memory_space<vmem>>, %arg8: memref<8x1xf32, #tpu.memory_space<vmem>>, %arg9: memref<8x8xf32, #tpu.memory_space<vmem>>, %arg10: memref<32x40xf32, #tpu.memory_space<vmem>>, %arg11: memref<32x1xf32, #tpu.memory_space<vmem>>, %arg12: memref<8x8xf32, #tpu.memory_space<vmem>>, %arg13: memref<8x32xf32, #tpu.memory_space<vmem>>, %arg14: memref<8x1xf32, #tpu.memory_space<vmem>>, %arg15: memref<8x8xf32, #tpu.memory_space<vmem>>, %arg16: memref<32x40xf32, #tpu.memory_space<vmem>>, %arg17: memref<32x1xf32, #tpu.memory_space<vmem>>, %arg18: memref<8x8xf32, #tpu.memory_space<vmem>>, %arg19: memref<8x32xf32, #tpu.memory_space<vmem>>, %arg20: memref<8x1xf32, #tpu.memory_space<vmem>>, %arg21: memref<32x128xbf16, #tpu.memory_space<vmem>>, %arg22: memref<3x8x128xbf16, #tpu.memory_space<vmem>>) attributes {dimension_semantics = [#tpu.dimension_semantics<parallel>], iteration_bounds = array<i64: 1>, scalar_prefetch = 0 : i64, scratch_operands = 0 : i64, tpu.core_type = #tpu.core_type<tc>, window_params = [{transform_indices = @transform_0, window_bounds = array<i64: 80, 128>}, {transform_indices = @transform_1, window_bounds = array<i64: 3, 20, 128>}, {pipeline_mode = #tpu.pipeline_mode<synchronous>, transform_indices = @transform_2, window_bounds = array<i64: 24, 20>}, {pipeline_mode = #tpu.pipeline_mode<synchronous>, transform_indices = @transform_3, window_bounds = array<i64: 32, 104>}, {pipeline_mode = #tpu.pipeline_mode<synchronous>, transform_indices = @transform_4, window_bounds = array<i64: 32, 1>}, {pipeline_mode = #tpu.pipeline_mode<synchronous>, transform_indices = @transform_5, window_bounds = array<i64: 8, 24>}, {pipeline_mode = #tpu.pipeline_mode<synchronous>, transform_indices = @transform_6, window_bounds = array<i64: 8, 32>}, {pipeline_mode = #tpu.pipeline_mode<synchronous>, transform_indices = @transform_7, window_bounds = array<i64: 8, 1>}, {pipeline_mode = #tpu.pipeline_mode<synchronous>, transform_indices = @transform_8, window_bounds = array<i64: 8, 8>}, {pipeline_mode = #tpu.pipeline_mode<synchronous>, transform_indices = @transform_9, window_bounds = array<i64: 32, 40>}, {pipeline_mode = #tpu.pipeline_mode<synchronous>, transform_indices = @transform_10, window_bounds = array<i64: 32, 1>}, {pipeline_mode = #tpu.pipeline_mode<synchronous>, transform_indices = @transform_11, window_bounds = array<i64: 8, 8>}, {pipeline_mode = #tpu.pipeline_mode<synchronous>, transform_indices = @transform_12, window_bounds = array<i64: 8, 32>}, {pipeline_mode = #tpu.pipeline_mode<synchronous>, transform_indices = @transform_13, window_bounds = array<i64: 8, 1>}, {pipeline_mode = #tpu.pipeline_mode<synchronous>, transform_indices = @transform_14, window_bounds = array<i64: 8, 8>}, {pipeline_mode = #tpu.pipeline_mode<synchronous>, transform_indices = @transform_15, window_bounds = array<i64: 32, 40>}, {pipeline_mode = #tpu.pipeline_mode<synchronous>, transform_indices = @transform_16, window_bounds = array<i64: 32, 1>}, {pipeline_mode = #tpu.pipeline_mode<synchronous>, transform_indices = @transform_17, window_bounds = array<i64: 8, 8>}, {pipeline_mode = #tpu.pipeline_mode<synchronous>, transform_indices = @transform_18, window_bounds = array<i64: 8, 32>}, {pipeline_mode = #tpu.pipeline_mode<synchronous>, transform_indices = @transform_19, window_bounds = array<i64: 8, 1>}, {transform_indices = @transform_20, window_bounds = array<i64: 32, 128>}, {transform_indices = @transform_21, window_bounds = array<i64: 3, 8, 128>}]} {
    %c0 = arith.constant 0 : index
    %c0_0 = arith.constant 0 : index
    %0 = vector.load %arg3[%c0, %c0_0] : memref<24x20xf32, #tpu.memory_space<vmem>>, vector<24x20xf32>
    %c0_1 = arith.constant 0 : index
    %c0_2 = arith.constant 0 : index
    %1 = vector.load %arg4[%c0_1, %c0_2] : memref<32x104xf32, #tpu.memory_space<vmem>>, vector<32x104xf32>
    %c0_3 = arith.constant 0 : index
    %c0_4 = arith.constant 0 : index
    %2 = vector.load %arg5[%c0_3, %c0_4] : memref<32x1xf32, #tpu.memory_space<vmem>>, vector<32x1xf32>
    %c0_5 = arith.constant 0 : index
    %c0_6 = arith.constant 0 : index
    %3 = vector.load %arg6[%c0_5, %c0_6] : memref<8x24xf32, #tpu.memory_space<vmem>>, vector<8x24xf32>
    %c0_7 = arith.constant 0 : index
    %c0_8 = arith.constant 0 : index
    %4 = vector.load %arg7[%c0_7, %c0_8] : memref<8x32xf32, #tpu.memory_space<vmem>>, vector<8x32xf32>
    %c0_9 = arith.constant 0 : index
    %c0_10 = arith.constant 0 : index
    %5 = vector.load %arg8[%c0_9, %c0_10] : memref<8x1xf32, #tpu.memory_space<vmem>>, vector<8x1xf32>
    %c0_11 = arith.constant 0 : index
    %c0_12 = arith.constant 0 : index
    %6 = vector.load %arg9[%c0_11, %c0_12] : memref<8x8xf32, #tpu.memory_space<vmem>>, vector<8x8xf32>
    %c0_13 = arith.constant 0 : index
    %c0_14 = arith.constant 0 : index
    %7 = vector.load %arg10[%c0_13, %c0_14] : memref<32x40xf32, #tpu.memory_space<vmem>>, vector<32x40xf32>
    %c0_15 = arith.constant 0 : index
    %c0_16 = arith.constant 0 : index
    %8 = vector.load %arg11[%c0_15, %c0_16] : memref<32x1xf32, #tpu.memory_space<vmem>>, vector<32x1xf32>
    %c0_17 = arith.constant 0 : index
    %c0_18 = arith.constant 0 : index
    %9 = vector.load %arg12[%c0_17, %c0_18] : memref<8x8xf32, #tpu.memory_space<vmem>>, vector<8x8xf32>
    %c0_19 = arith.constant 0 : index
    %c0_20 = arith.constant 0 : index
    %10 = vector.load %arg13[%c0_19, %c0_20] : memref<8x32xf32, #tpu.memory_space<vmem>>, vector<8x32xf32>
    %c0_21 = arith.constant 0 : index
    %c0_22 = arith.constant 0 : index
    %11 = vector.load %arg14[%c0_21, %c0_22] : memref<8x1xf32, #tpu.memory_space<vmem>>, vector<8x1xf32>
    %c0_23 = arith.constant 0 : index
    %c0_24 = arith.constant 0 : index
    %12 = vector.load %arg15[%c0_23, %c0_24] : memref<8x8xf32, #tpu.memory_space<vmem>>, vector<8x8xf32>
    %c0_25 = arith.constant 0 : index
    %c0_26 = arith.constant 0 : index
    %13 = vector.load %arg16[%c0_25, %c0_26] : memref<32x40xf32, #tpu.memory_space<vmem>>, vector<32x40xf32>
    %c0_27 = arith.constant 0 : index
    %c0_28 = arith.constant 0 : index
    %14 = vector.load %arg17[%c0_27, %c0_28] : memref<32x1xf32, #tpu.memory_space<vmem>>, vector<32x1xf32>
    %c0_29 = arith.constant 0 : index
    %c0_30 = arith.constant 0 : index
    %15 = vector.load %arg18[%c0_29, %c0_30] : memref<8x8xf32, #tpu.memory_space<vmem>>, vector<8x8xf32>
    %c0_31 = arith.constant 0 : index
    %c0_32 = arith.constant 0 : index
    %16 = vector.load %arg19[%c0_31, %c0_32] : memref<8x32xf32, #tpu.memory_space<vmem>>, vector<8x32xf32>
    %c0_33 = arith.constant 0 : index
    %c0_34 = arith.constant 0 : index
    %17 = vector.load %arg20[%c0_33, %c0_34] : memref<8x1xf32, #tpu.memory_space<vmem>>, vector<8x1xf32>
    %c0_35 = arith.constant 0 : index
    %c0_36 = arith.constant 0 : index
    %18 = vector.load %arg1[%c0_35, %c0_36] : memref<80x128xbf16, #tpu.memory_space<vmem>>, vector<80x128xbf16>
    %19 = arith.extf %18 : vector<80x128xbf16> to vector<80x128xf32>
    %c0_37 = arith.constant 0 : index
    %c0_38 = arith.constant 0 : index
    %c0_39 = arith.constant 0 : index
    %20 = vector.load %arg2[%c0_37, %c0_38, %c0_39] : memref<3x20x128xbf16, #tpu.memory_space<vmem>>, vector<1x20x128xbf16>
    %21 = vector.shape_cast %20 : vector<1x20x128xbf16> to vector<20x128xbf16>
    %22 = arith.extf %21 : vector<20x128xbf16> to vector<20x128xf32>
    %c1 = arith.constant 1 : index
    %c0_40 = arith.constant 0 : index
    %c0_41 = arith.constant 0 : index
    %23 = vector.load %arg2[%c1, %c0_40, %c0_41] : memref<3x20x128xbf16, #tpu.memory_space<vmem>>, vector<1x20x128xbf16>
    %24 = vector.shape_cast %23 : vector<1x20x128xbf16> to vector<20x128xbf16>
    %25 = arith.extf %24 : vector<20x128xbf16> to vector<20x128xf32>
    %c2 = arith.constant 2 : index
    %c0_42 = arith.constant 0 : index
    %c0_43 = arith.constant 0 : index
    %26 = vector.load %arg2[%c2, %c0_42, %c0_43] : memref<3x20x128xbf16, #tpu.memory_space<vmem>>, vector<1x20x128xbf16>
    %27 = vector.shape_cast %26 : vector<1x20x128xbf16> to vector<20x128xbf16>
    %28 = arith.extf %27 : vector<20x128xbf16> to vector<20x128xf32>
    %cst = arith.constant dense<0.000000e+00> : vector<24x128xf32>
    %29 = tpu.matmul %0, %22, %cst {dimension_numbers = #tpu.dot_dimension_numbers<[1], [0], [0], [1], [0, 0, 1, 1], [], []>} : vector<24x20xf32>, vector<20x128xf32>, vector<24x128xf32> -> vector<24x128xf32>
    %cst_44 = arith.constant dense<0.000000e+00> : vector<24x128xf32>
    %30 = tpu.matmul %0, %25, %cst_44 {dimension_numbers = #tpu.dot_dimension_numbers<[1], [0], [0], [1], [0, 0, 1, 1], [], []>} : vector<24x20xf32>, vector<20x128xf32>, vector<24x128xf32> -> vector<24x128xf32>
    %cst_45 = arith.constant dense<0.000000e+00> : vector<24x128xf32>
    %31 = tpu.matmul %0, %28, %cst_45 {dimension_numbers = #tpu.dot_dimension_numbers<[1], [0], [0], [1], [0, 0, 1, 1], [], []>} : vector<24x20xf32>, vector<20x128xf32>, vector<24x128xf32> -> vector<24x128xf32>
    %32 = arith.mulf %29, %29 : vector<24x128xf32>
    %33 = arith.mulf %30, %30 : vector<24x128xf32>
    %34 = arith.addf %32, %33 : vector<24x128xf32>
    %35 = arith.mulf %31, %31 : vector<24x128xf32>
    %36 = arith.addf %34, %35 : vector<24x128xf32>
    %cst_46 = arith.constant 9.99999993E-9 : f32
    %37 = vector.broadcast %cst_46 : f32 to vector<24x128xf32>
    %38 = arith.maximumf %36, %37 : vector<24x128xf32>
    %39 = math.sqrt %38 : vector<24x128xf32>
    %40 = tpu.concatenate %19, %39 in 0 : vector<80x128xf32>, vector<24x128xf32> -> vector<104x128xf32>
    %cst_47 = arith.constant dense<0.000000e+00> : vector<32x128xf32>
    %41 = tpu.matmul %1, %40, %cst_47 {dimension_numbers = #tpu.dot_dimension_numbers<[1], [0], [0], [1], [0, 0, 1, 1], [], []>} : vector<32x104xf32>, vector<104x128xf32>, vector<32x128xf32> -> vector<32x128xf32>
    %42 = vector.broadcast %2 : vector<32x1xf32> to vector<32x128xf32>
    %43 = arith.addf %41, %42 : vector<32x128xf32>
    %cst_48 = arith.constant dense<0.000000e+00> : vector<8x128xf32>
    %44 = tpu.matmul %3, %29, %cst_48 {dimension_numbers = #tpu.dot_dimension_numbers<[1], [0], [0], [1], [0, 0, 1, 1], [], []>} : vector<8x24xf32>, vector<24x128xf32>, vector<8x128xf32> -> vector<8x128xf32>
    %cst_49 = arith.constant dense<0.000000e+00> : vector<8x128xf32>
    %45 = tpu.matmul %3, %30, %cst_49 {dimension_numbers = #tpu.dot_dimension_numbers<[1], [0], [0], [1], [0, 0, 1, 1], [], []>} : vector<8x24xf32>, vector<24x128xf32>, vector<8x128xf32> -> vector<8x128xf32>
    %cst_50 = arith.constant dense<0.000000e+00> : vector<8x128xf32>
    %46 = tpu.matmul %3, %31, %cst_50 {dimension_numbers = #tpu.dot_dimension_numbers<[1], [0], [0], [1], [0, 0, 1, 1], [], []>} : vector<8x24xf32>, vector<24x128xf32>, vector<8x128xf32> -> vector<8x128xf32>
    %47 = arith.negf %43 : vector<32x128xf32>
    %48 = math.exp %47 : vector<32x128xf32>
    %cst_51 = arith.constant 1.000000e+00 : f32
    %49 = vector.broadcast %cst_51 : f32 to vector<32x128xf32>
    %50 = arith.addf %49, %48 : vector<32x128xf32>
    %51 = arith.divf %49, %50 : vector<32x128xf32>
    %cst_52 = arith.constant dense<0.000000e+00> : vector<8x128xf32>
    %52 = tpu.matmul %4, %51, %cst_52 {dimension_numbers = #tpu.dot_dimension_numbers<[1], [0], [0], [1], [0, 0, 1, 1], [], []>} : vector<8x32xf32>, vector<32x128xf32>, vector<8x128xf32> -> vector<8x128xf32>
    %53 = vector.broadcast %5 : vector<8x1xf32> to vector<8x128xf32>
    %54 = arith.addf %52, %53 : vector<8x128xf32>
    %55 = arith.negf %54 : vector<8x128xf32>
    %56 = math.exp %55 : vector<8x128xf32>
    %cst_53 = arith.constant 1.000000e+00 : f32
    %57 = vector.broadcast %cst_53 : f32 to vector<8x128xf32>
    %58 = arith.addf %57, %56 : vector<8x128xf32>
    %59 = arith.divf %57, %58 : vector<8x128xf32>
    %60 = arith.mulf %44, %59 : vector<8x128xf32>
    %61 = arith.mulf %45, %59 : vector<8x128xf32>
    %62 = arith.mulf %46, %59 : vector<8x128xf32>
    %cst_54 = arith.constant 0.000000e+00 : f32
    %63 = vector.broadcast %cst_54 : f32 to vector<32x128xf32>
    %64 = arith.maximumf %43, %63 : vector<32x128xf32>
    %cst_55 = arith.constant dense<0.000000e+00> : vector<8x128xf32>
    %65 = tpu.matmul %6, %60, %cst_55 {dimension_numbers = #tpu.dot_dimension_numbers<[1], [0], [0], [1], [0, 0, 1, 1], [], []>} : vector<8x8xf32>, vector<8x128xf32>, vector<8x128xf32> -> vector<8x128xf32>
    %cst_56 = arith.constant dense<0.000000e+00> : vector<8x128xf32>
    %66 = tpu.matmul %6, %61, %cst_56 {dimension_numbers = #tpu.dot_dimension_numbers<[1], [0], [0], [1], [0, 0, 1, 1], [], []>} : vector<8x8xf32>, vector<8x128xf32>, vector<8x128xf32> -> vector<8x128xf32>
    %cst_57 = arith.constant dense<0.000000e+00> : vector<8x128xf32>
    %67 = tpu.matmul %6, %62, %cst_57 {dimension_numbers = #tpu.dot_dimension_numbers<[1], [0], [0], [1], [0, 0, 1, 1], [], []>} : vector<8x8xf32>, vector<8x128xf32>, vector<8x128xf32> -> vector<8x128xf32>
    %68 = arith.mulf %65, %65 : vector<8x128xf32>
    %69 = arith.mulf %66, %66 : vector<8x128xf32>
    %70 = arith.addf %68, %69 : vector<8x128xf32>
    %71 = arith.mulf %67, %67 : vector<8x128xf32>
    %72 = arith.addf %70, %71 : vector<8x128xf32>
    %cst_58 = arith.constant 9.99999993E-9 : f32
    %73 = vector.broadcast %cst_58 : f32 to vector<8x128xf32>
    %74 = arith.maximumf %72, %73 : vector<8x128xf32>
    %75 = math.sqrt %74 : vector<8x128xf32>
    %76 = tpu.concatenate %64, %75 in 0 : vector<32x128xf32>, vector<8x128xf32> -> vector<40x128xf32>
    %cst_59 = arith.constant dense<0.000000e+00> : vector<32x128xf32>
    %77 = tpu.matmul %7, %76, %cst_59 {dimension_numbers = #tpu.dot_dimension_numbers<[1], [0], [0], [1], [0, 0, 1, 1], [], []>} : vector<32x40xf32>, vector<40x128xf32>, vector<32x128xf32> -> vector<32x128xf32>
    %78 = vector.broadcast %8 : vector<32x1xf32> to vector<32x128xf32>
    %79 = arith.addf %77, %78 : vector<32x128xf32>
    %cst_60 = arith.constant dense<0.000000e+00> : vector<8x128xf32>
    %80 = tpu.matmul %9, %65, %cst_60 {dimension_numbers = #tpu.dot_dimension_numbers<[1], [0], [0], [1], [0, 0, 1, 1], [], []>} : vector<8x8xf32>, vector<8x128xf32>, vector<8x128xf32> -> vector<8x128xf32>
    %cst_61 = arith.constant dense<0.000000e+00> : vector<8x128xf32>
    %81 = tpu.matmul %9, %66, %cst_61 {dimension_numbers = #tpu.dot_dimension_numbers<[1], [0], [0], [1], [0, 0, 1, 1], [], []>} : vector<8x8xf32>, vector<8x128xf32>, vector<8x128xf32> -> vector<8x128xf32>
    %cst_62 = arith.constant dense<0.000000e+00> : vector<8x128xf32>
    %82 = tpu.matmul %9, %67, %cst_62 {dimension_numbers = #tpu.dot_dimension_numbers<[1], [0], [0], [1], [0, 0, 1, 1], [], []>} : vector<8x8xf32>, vector<8x128xf32>, vector<8x128xf32> -> vector<8x128xf32>
    %83 = arith.negf %79 : vector<32x128xf32>
    %84 = math.exp %83 : vector<32x128xf32>
    %cst_63 = arith.constant 1.000000e+00 : f32
    %85 = vector.broadcast %cst_63 : f32 to vector<32x128xf32>
    %86 = arith.addf %85, %84 : vector<32x128xf32>
    %87 = arith.divf %85, %86 : vector<32x128xf32>
    %cst_64 = arith.constant dense<0.000000e+00> : vector<8x128xf32>
    %88 = tpu.matmul %10, %87, %cst_64 {dimension_numbers = #tpu.dot_dimension_numbers<[1], [0], [0], [1], [0, 0, 1, 1], [], []>} : vector<8x32xf32>, vector<32x128xf32>, vector<8x128xf32> -> vector<8x128xf32>
    %89 = vector.broadcast %11 : vector<8x1xf32> to vector<8x128xf32>
    %90 = arith.addf %88, %89 : vector<8x128xf32>
    %91 = arith.negf %90 : vector<8x128xf32>
    %92 = math.exp %91 : vector<8x128xf32>
    %cst_65 = arith.constant 1.000000e+00 : f32
    %93 = vector.broadcast %cst_65 : f32 to vector<8x128xf32>
    %94 = arith.addf %93, %92 : vector<8x128xf32>
    %95 = arith.divf %93, %94 : vector<8x128xf32>
    %96 = arith.mulf %80, %95 : vector<8x128xf32>
    %97 = arith.mulf %81, %95 : vector<8x128xf32>
    %98 = arith.mulf %82, %95 : vector<8x128xf32>
    %cst_66 = arith.constant 0.000000e+00 : f32
    %99 = vector.broadcast %cst_66 : f32 to vector<32x128xf32>
    %100 = arith.maximumf %79, %99 : vector<32x128xf32>
    %cst_67 = arith.constant dense<0.000000e+00> : vector<8x128xf32>
    %101 = tpu.matmul %12, %96, %cst_67 {dimension_numbers = #tpu.dot_dimension_numbers<[1], [0], [0], [1], [0, 0, 1, 1], [], []>} : vector<8x8xf32>, vector<8x128xf32>, vector<8x128xf32> -> vector<8x128xf32>
    %cst_68 = arith.constant dense<0.000000e+00> : vector<8x128xf32>
    %102 = tpu.matmul %12, %97, %cst_68 {dimension_numbers = #tpu.dot_dimension_numbers<[1], [0], [0], [1], [0, 0, 1, 1], [], []>} : vector<8x8xf32>, vector<8x128xf32>, vector<8x128xf32> -> vector<8x128xf32>
    %cst_69 = arith.constant dense<0.000000e+00> : vector<8x128xf32>
    %103 = tpu.matmul %12, %98, %cst_69 {dimension_numbers = #tpu.dot_dimension_numbers<[1], [0], [0], [1], [0, 0, 1, 1], [], []>} : vector<8x8xf32>, vector<8x128xf32>, vector<8x128xf32> -> vector<8x128xf32>
    %104 = arith.mulf %101, %101 : vector<8x128xf32>
    %105 = arith.mulf %102, %102 : vector<8x128xf32>
    %106 = arith.addf %104, %105 : vector<8x128xf32>
    %107 = arith.mulf %103, %103 : vector<8x128xf32>
    %108 = arith.addf %106, %107 : vector<8x128xf32>
    %cst_70 = arith.constant 9.99999993E-9 : f32
    %109 = vector.broadcast %cst_70 : f32 to vector<8x128xf32>
    %110 = arith.maximumf %108, %109 : vector<8x128xf32>
    %111 = math.sqrt %110 : vector<8x128xf32>
    %112 = tpu.concatenate %100, %111 in 0 : vector<32x128xf32>, vector<8x128xf32> -> vector<40x128xf32>
    %cst_71 = arith.constant dense<0.000000e+00> : vector<32x128xf32>
    %113 = tpu.matmul %13, %112, %cst_71 {dimension_numbers = #tpu.dot_dimension_numbers<[1], [0], [0], [1], [0, 0, 1, 1], [], []>} : vector<32x40xf32>, vector<40x128xf32>, vector<32x128xf32> -> vector<32x128xf32>
    %114 = vector.broadcast %14 : vector<32x1xf32> to vector<32x128xf32>
    %115 = arith.addf %113, %114 : vector<32x128xf32>
    %cst_72 = arith.constant dense<0.000000e+00> : vector<8x128xf32>
    %116 = tpu.matmul %15, %101, %cst_72 {dimension_numbers = #tpu.dot_dimension_numbers<[1], [0], [0], [1], [0, 0, 1, 1], [], []>} : vector<8x8xf32>, vector<8x128xf32>, vector<8x128xf32> -> vector<8x128xf32>
    %cst_73 = arith.constant dense<0.000000e+00> : vector<8x128xf32>
    %117 = tpu.matmul %15, %102, %cst_73 {dimension_numbers = #tpu.dot_dimension_numbers<[1], [0], [0], [1], [0, 0, 1, 1], [], []>} : vector<8x8xf32>, vector<8x128xf32>, vector<8x128xf32> -> vector<8x128xf32>
    %cst_74 = arith.constant dense<0.000000e+00> : vector<8x128xf32>
    %118 = tpu.matmul %15, %103, %cst_74 {dimension_numbers = #tpu.dot_dimension_numbers<[1], [0], [0], [1], [0, 0, 1, 1], [], []>} : vector<8x8xf32>, vector<8x128xf32>, vector<8x128xf32> -> vector<8x128xf32>
    %cst_75 = arith.constant dense<0.000000e+00> : vector<8x128xf32>
    %119 = tpu.matmul %16, %115, %cst_75 {dimension_numbers = #tpu.dot_dimension_numbers<[1], [0], [0], [1], [0, 0, 1, 1], [], []>} : vector<8x32xf32>, vector<32x128xf32>, vector<8x128xf32> -> vector<8x128xf32>
    %120 = vector.broadcast %17 : vector<8x1xf32> to vector<8x128xf32>
    %121 = arith.addf %119, %120 : vector<8x128xf32>
    %122 = arith.negf %121 : vector<8x128xf32>
    %123 = math.exp %122 : vector<8x128xf32>
    %cst_76 = arith.constant 1.000000e+00 : f32
    %124 = vector.broadcast %cst_76 : f32 to vector<8x128xf32>
    %125 = arith.addf %124, %123 : vector<8x128xf32>
    %126 = arith.divf %124, %125 : vector<8x128xf32>
    %127 = arith.mulf %116, %126 : vector<8x128xf32>
    %128 = arith.mulf %117, %126 : vector<8x128xf32>
    %129 = arith.mulf %118, %126 : vector<8x128xf32>
    %130 = arith.truncf %115 : vector<32x128xf32> to vector<32x128xbf16>
    %c0_77 = arith.constant 0 : index
    %c0_78 = arith.constant 0 : index
    %131 = vector.load %arg21[%c0_77, %c0_78] : memref<32x128xbf16, #tpu.memory_space<vmem>>, vector<32x128xbf16>
    tpu.vector_store %arg21[%c0_77, %c0_78], %130 {strides = array<i32>} : memref<32x128xbf16, #tpu.memory_space<vmem>>, vector<32x128xbf16>,
    %132 = arith.truncf %127 : vector<8x128xf32> to vector<8x128xbf16>
    %c0_79 = arith.constant 0 : index
    %c0_80 = arith.constant 0 : index
    %c0_81 = arith.constant 0 : index
    %133 = vector.load %arg22[%c0_79, %c0_80, %c0_81] : memref<3x8x128xbf16, #tpu.memory_space<vmem>>, vector<1x8x128xbf16>
    %134 = vector.shape_cast %133 : vector<1x8x128xbf16> to vector<8x128xbf16>
    %135 = vector.shape_cast %132 : vector<8x128xbf16> to vector<1x8x128xbf16>
    tpu.vector_store %arg22[%c0_79, %c0_80, %c0_81], %135 {strides = array<i32>} : memref<3x8x128xbf16, #tpu.memory_space<vmem>>, vector<1x8x128xbf16>,
    %136 = arith.truncf %128 : vector<8x128xf32> to vector<8x128xbf16>
    %c1_82 = arith.constant 1 : index
    %c0_83 = arith.constant 0 : index
    %c0_84 = arith.constant 0 : index
    %137 = vector.load %arg22[%c1_82, %c0_83, %c0_84] : memref<3x8x128xbf16, #tpu.memory_space<vmem>>, vector<1x8x128xbf16>
    %138 = vector.shape_cast %137 : vector<1x8x128xbf16> to vector<8x128xbf16>
    %139 = vector.shape_cast %136 : vector<8x128xbf16> to vector<1x8x128xbf16>
    tpu.vector_store %arg22[%c1_82, %c0_83, %c0_84], %139 {strides = array<i32>} : memref<3x8x128xbf16, #tpu.memory_space<vmem>>, vector<1x8x128xbf16>,
    %140 = arith.truncf %129 : vector<8x128xf32> to vector<8x128xbf16>
    %c2_85 = arith.constant 2 : index
    %c0_86 = arith.constant 0 : index
    %c0_87 = arith.constant 0 : index
    %141 = vector.load %arg22[%c2_85, %c0_86, %c0_87] : memref<3x8x128xbf16, #tpu.memory_space<vmem>>, vector<1x8x128xbf16>
    %142 = vector.shape_cast %141 : vector<1x8x128xbf16> to vector<8x128xbf16>
    %143 = vector.shape_cast %140 : vector<8x128xbf16> to vector<1x8x128xbf16>
    tpu.vector_store %arg22[%c2_85, %c0_86, %c0_87], %143 {strides = array<i32>} : memref<3x8x128xbf16, #tpu.memory_space<vmem>>, vector<1x8x128xbf16>,
    return
  }
  func.func @transform_0(%arg0: i32) -> (i32, i32) {
    %c0_i32 = arith.constant 0 : i32
    %c0_i32_0 = arith.constant 0 : i32
    return %c0_i32, %arg0 : i32, i32
  }
  func.func @transform_1(%arg0: i32) -> (i32, i32, i32) {
    %c0_i32 = arith.constant 0 : i32
    %c0_i32_0 = arith.constant 0 : i32
    %c0_i32_1 = arith.constant 0 : i32
    return %c0_i32, %c0_i32_0, %arg0 : i32, i32, i32
  }
  func.func @transform_2(%arg0: i32) -> (i32, i32) {
    %c0_i32 = arith.constant 0 : i32
    %c0_i32_0 = arith.constant 0 : i32
    %c0_i32_1 = arith.constant 0 : i32
    return %c0_i32, %c0_i32_0 : i32, i32
  }
  func.func @transform_3(%arg0: i32) -> (i32, i32) {
    %c0_i32 = arith.constant 0 : i32
    %c0_i32_0 = arith.constant 0 : i32
    %c0_i32_1 = arith.constant 0 : i32
    return %c0_i32, %c0_i32_0 : i32, i32
  }
  func.func @transform_4(%arg0: i32) -> (i32, i32) {
    %c0_i32 = arith.constant 0 : i32
    %c0_i32_0 = arith.constant 0 : i32
    %c0_i32_1 = arith.constant 0 : i32
    return %c0_i32, %c0_i32_0 : i32, i32
  }
  func.func @transform_5(%arg0: i32) -> (i32, i32) {
    %c0_i32 = arith.constant 0 : i32
    %c0_i32_0 = arith.constant 0 : i32
    %c0_i32_1 = arith.constant 0 : i32
    return %c0_i32, %c0_i32_0 : i32, i32
  }
  func.func @transform_6(%arg0: i32) -> (i32, i32) {
    %c0_i32 = arith.constant 0 : i32
    %c0_i32_0 = arith.constant 0 : i32
    %c0_i32_1 = arith.constant 0 : i32
    return %c0_i32, %c0_i32_0 : i32, i32
  }
  func.func @transform_7(%arg0: i32) -> (i32, i32) {
    %c0_i32 = arith.constant 0 : i32
    %c0_i32_0 = arith.constant 0 : i32
    %c0_i32_1 = arith.constant 0 : i32
    return %c0_i32, %c0_i32_0 : i32, i32
  }
  func.func @transform_8(%arg0: i32) -> (i32, i32) {
    %c0_i32 = arith.constant 0 : i32
    %c0_i32_0 = arith.constant 0 : i32
    %c0_i32_1 = arith.constant 0 : i32
    return %c0_i32, %c0_i32_0 : i32, i32
  }
  func.func @transform_9(%arg0: i32) -> (i32, i32) {
    %c0_i32 = arith.constant 0 : i32
    %c0_i32_0 = arith.constant 0 : i32
    %c0_i32_1 = arith.constant 0 : i32
    return %c0_i32, %c0_i32_0 : i32, i32
  }
  func.func @transform_10(%arg0: i32) -> (i32, i32) {
    %c0_i32 = arith.constant 0 : i32
    %c0_i32_0 = arith.constant 0 : i32
    %c0_i32_1 = arith.constant 0 : i32
    return %c0_i32, %c0_i32_0 : i32, i32
  }
  func.func @transform_11(%arg0: i32) -> (i32, i32) {
    %c0_i32 = arith.constant 0 : i32
    %c0_i32_0 = arith.constant 0 : i32
    %c0_i32_1 = arith.constant 0 : i32
    return %c0_i32, %c0_i32_0 : i32, i32
  }
  func.func @transform_12(%arg0: i32) -> (i32, i32) {
    %c0_i32 = arith.constant 0 : i32
    %c0_i32_0 = arith.constant 0 : i32
    %c0_i32_1 = arith.constant 0 : i32
    return %c0_i32, %c0_i32_0 : i32, i32
  }
  func.func @transform_13(%arg0: i32) -> (i32, i32) {
    %c0_i32 = arith.constant 0 : i32
    %c0_i32_0 = arith.constant 0 : i32
    %c0_i32_1 = arith.constant 0 : i32
    return %c0_i32, %c0_i32_0 : i32, i32
  }
  func.func @transform_14(%arg0: i32) -> (i32, i32) {
    %c0_i32 = arith.constant 0 : i32
    %c0_i32_0 = arith.constant 0 : i32
    %c0_i32_1 = arith.constant 0 : i32
    return %c0_i32, %c0_i32_0 : i32, i32
  }
  func.func @transform_15(%arg0: i32) -> (i32, i32) {
    %c0_i32 = arith.constant 0 : i32
    %c0_i32_0 = arith.constant 0 : i32
    %c0_i32_1 = arith.constant 0 : i32
    return %c0_i32, %c0_i32_0 : i32, i32
  }
  func.func @transform_16(%arg0: i32) -> (i32, i32) {
    %c0_i32 = arith.constant 0 : i32
    %c0_i32_0 = arith.constant 0 : i32
    %c0_i32_1 = arith.constant 0 : i32
    return %c0_i32, %c0_i32_0 : i32, i32
  }
  func.func @transform_17(%arg0: i32) -> (i32, i32) {
    %c0_i32 = arith.constant 0 : i32
    %c0_i32_0 = arith.constant 0 : i32
    %c0_i32_1 = arith.constant 0 : i32
    return %c0_i32, %c0_i32_0 : i32, i32
  }
  func.func @transform_18(%arg0: i32) -> (i32, i32) {
    %c0_i32 = arith.constant 0 : i32
    %c0_i32_0 = arith.constant 0 : i32
    %c0_i32_1 = arith.constant 0 : i32
    return %c0_i32, %c0_i32_0 : i32, i32
  }
  func.func @transform_19(%arg0: i32) -> (i32, i32) {
    %c0_i32 = arith.constant 0 : i32
    %c0_i32_0 = arith.constant 0 : i32
    %c0_i32_1 = arith.constant 0 : i32
    return %c0_i32, %c0_i32_0 : i32, i32
  }
  func.func @transform_20(%arg0: i32) -> (i32, i32) {
    %c0_i32 = arith.constant 0 : i32
    %c0_i32_0 = arith.constant 0 : i32
    return %c0_i32, %arg0 : i32, i32
  }
  func.func @transform_21(%arg0: i32) -> (i32, i32, i32) {
    %c0_i32 = arith.constant 0 : i32
    %c0_i32_0 = arith.constant 0 : i32
    %c0_i32_1 = arith.constant 0 : i32
    return %c0_i32, %c0_i32_0, %arg0 : i32, i32, i32
  }
}

module attributes {stable_mosaic.version = 11 : i64} {
  func.func @kernel(%arg0: i32, %arg1: memref<40x128xbf16, #tpu.memory_space<vmem>>, %arg2: memref<3x1x128xbf16, #tpu.memory_space<vmem>>, %arg3: memref<8x1xf32, #tpu.memory_space<vmem>>, %arg4: memref<16x48xf32, #tpu.memory_space<vmem>>, %arg5: memref<16x1xf32, #tpu.memory_space<vmem>>, %arg6: memref<4x8xf32, #tpu.memory_space<vmem>>, %arg7: memref<16x1xf32, #tpu.memory_space<vmem>>, %arg8: memref<16x1xf32, #tpu.memory_space<vmem>>, %arg9: memref<16x128xbf16, #tpu.memory_space<vmem>>, %arg10: memref<3x4x128xbf16, #tpu.memory_space<vmem>>) attributes {dimension_semantics = [#tpu.dimension_semantics<parallel>], iteration_bounds = array<i64: 1>, scalar_prefetch = 0 : i64, scratch_operands = 0 : i64, tpu.core_type = #tpu.core_type<tc>, window_params = [{transform_indices = @transform_0, window_bounds = array<i64: 40, 128>}, {transform_indices = @transform_1, window_bounds = array<i64: 3, 1, 128>}, {pipeline_mode = #tpu.pipeline_mode<synchronous>, transform_indices = @transform_2, window_bounds = array<i64: 8, 1>}, {pipeline_mode = #tpu.pipeline_mode<synchronous>, transform_indices = @transform_3, window_bounds = array<i64: 16, 48>}, {pipeline_mode = #tpu.pipeline_mode<synchronous>, transform_indices = @transform_4, window_bounds = array<i64: 16, 1>}, {pipeline_mode = #tpu.pipeline_mode<synchronous>, transform_indices = @transform_5, window_bounds = array<i64: 4, 8>}, {pipeline_mode = #tpu.pipeline_mode<synchronous>, transform_indices = @transform_6, window_bounds = array<i64: 16, 1>}, {pipeline_mode = #tpu.pipeline_mode<synchronous>, transform_indices = @transform_7, window_bounds = array<i64: 16, 1>}, {transform_indices = @transform_8, window_bounds = array<i64: 16, 128>}, {transform_indices = @transform_9, window_bounds = array<i64: 3, 4, 128>}]} {
    %c0 = arith.constant 0 : index
    %c0_0 = arith.constant 0 : index
    %0 = vector.load %arg3[%c0, %c0_0] : memref<8x1xf32, #tpu.memory_space<vmem>>, vector<8x1xf32>
    %c0_1 = arith.constant 0 : index
    %c0_2 = arith.constant 0 : index
    %1 = vector.load %arg4[%c0_1, %c0_2] : memref<16x48xf32, #tpu.memory_space<vmem>>, vector<16x48xf32>
    %c0_3 = arith.constant 0 : index
    %c0_4 = arith.constant 0 : index
    %2 = vector.load %arg5[%c0_3, %c0_4] : memref<16x1xf32, #tpu.memory_space<vmem>>, vector<16x1xf32>
    %c0_5 = arith.constant 0 : index
    %c0_6 = arith.constant 0 : index
    %3 = vector.load %arg6[%c0_5, %c0_6] : memref<4x8xf32, #tpu.memory_space<vmem>>, vector<4x8xf32>
    %c0_7 = arith.constant 0 : index
    %c0_8 = arith.constant 0 : index
    %4 = vector.load %arg7[%c0_7, %c0_8] : memref<16x1xf32, #tpu.memory_space<vmem>>, vector<16x1xf32>
    %c0_9 = arith.constant 0 : index
    %c0_10 = arith.constant 0 : index
    %5 = vector.load %arg8[%c0_9, %c0_10] : memref<16x1xf32, #tpu.memory_space<vmem>>, vector<16x1xf32>
    %c0_11 = arith.constant 0 : index
    %c0_12 = arith.constant 0 : index
    %6 = vector.load %arg1[%c0_11, %c0_12] : memref<40x128xbf16, #tpu.memory_space<vmem>>, vector<40x128xbf16>
    %7 = arith.extf %6 : vector<40x128xbf16> to vector<40x128xf32>
    %c0_13 = arith.constant 0 : index
    %c0_14 = arith.constant 0 : index
    %c0_15 = arith.constant 0 : index
    %8 = vector.load %arg2[%c0_13, %c0_14, %c0_15] : memref<3x1x128xbf16, #tpu.memory_space<vmem>>, vector<1x1x128xbf16>
    %9 = vector.shape_cast %8 : vector<1x1x128xbf16> to vector<1x128xbf16>
    %10 = arith.extf %9 : vector<1x128xbf16> to vector<1x128xf32>
    %c1 = arith.constant 1 : index
    %c0_16 = arith.constant 0 : index
    %c0_17 = arith.constant 0 : index
    %11 = vector.load %arg2[%c1, %c0_16, %c0_17] : memref<3x1x128xbf16, #tpu.memory_space<vmem>>, vector<1x1x128xbf16>
    %12 = vector.shape_cast %11 : vector<1x1x128xbf16> to vector<1x128xbf16>
    %13 = arith.extf %12 : vector<1x128xbf16> to vector<1x128xf32>
    %c2 = arith.constant 2 : index
    %c0_18 = arith.constant 0 : index
    %c0_19 = arith.constant 0 : index
    %14 = vector.load %arg2[%c2, %c0_18, %c0_19] : memref<3x1x128xbf16, #tpu.memory_space<vmem>>, vector<1x1x128xbf16>
    %15 = vector.shape_cast %14 : vector<1x1x128xbf16> to vector<1x128xbf16>
    %16 = arith.extf %15 : vector<1x128xbf16> to vector<1x128xf32>
    %cst = arith.constant dense<0.000000e+00> : vector<8x128xf32>
    %17 = tpu.matmul %0, %10, %cst {dimension_numbers = #tpu.dot_dimension_numbers<[1], [0], [0], [1], [0, 0, 1, 1], [], []>} : vector<8x1xf32>, vector<1x128xf32>, vector<8x128xf32> -> vector<8x128xf32>
    %cst_20 = arith.constant dense<0.000000e+00> : vector<8x128xf32>
    %18 = tpu.matmul %0, %13, %cst_20 {dimension_numbers = #tpu.dot_dimension_numbers<[1], [0], [0], [1], [0, 0, 1, 1], [], []>} : vector<8x1xf32>, vector<1x128xf32>, vector<8x128xf32> -> vector<8x128xf32>
    %cst_21 = arith.constant dense<0.000000e+00> : vector<8x128xf32>
    %19 = tpu.matmul %0, %16, %cst_21 {dimension_numbers = #tpu.dot_dimension_numbers<[1], [0], [0], [1], [0, 0, 1, 1], [], []>} : vector<8x1xf32>, vector<1x128xf32>, vector<8x128xf32> -> vector<8x128xf32>
    %20 = arith.mulf %17, %17 : vector<8x128xf32>
    %21 = arith.mulf %18, %18 : vector<8x128xf32>
    %22 = arith.addf %20, %21 : vector<8x128xf32>
    %23 = arith.mulf %19, %19 : vector<8x128xf32>
    %24 = arith.addf %22, %23 : vector<8x128xf32>
    %cst_22 = arith.constant 9.99999993E-9 : f32
    %25 = vector.broadcast %cst_22 : f32 to vector<8x128xf32>
    %26 = arith.maximumf %24, %25 : vector<8x128xf32>
    %27 = math.sqrt %26 : vector<8x128xf32>
    %28 = tpu.concatenate %7, %27 in 0 : vector<40x128xf32>, vector<8x128xf32> -> vector<48x128xf32>
    %cst_23 = arith.constant dense<0.000000e+00> : vector<16x128xf32>
    %29 = tpu.matmul %1, %28, %cst_23 {dimension_numbers = #tpu.dot_dimension_numbers<[1], [0], [0], [1], [0, 0, 1, 1], [], []>} : vector<16x48xf32>, vector<48x128xf32>, vector<16x128xf32> -> vector<16x128xf32>
    %30 = vector.broadcast %2 : vector<16x1xf32> to vector<16x128xf32>
    %31 = arith.addf %29, %30 : vector<16x128xf32>
    %cst_24 = arith.constant dense<0.000000e+00> : vector<4x128xf32>
    %32 = tpu.matmul %3, %17, %cst_24 {dimension_numbers = #tpu.dot_dimension_numbers<[1], [0], [0], [1], [0, 0, 1, 1], [], []>} : vector<4x8xf32>, vector<8x128xf32>, vector<4x128xf32> -> vector<4x128xf32>
    %cst_25 = arith.constant dense<0.000000e+00> : vector<4x128xf32>
    %33 = tpu.matmul %3, %18, %cst_25 {dimension_numbers = #tpu.dot_dimension_numbers<[1], [0], [0], [1], [0, 0, 1, 1], [], []>} : vector<4x8xf32>, vector<8x128xf32>, vector<4x128xf32> -> vector<4x128xf32>
    %cst_26 = arith.constant dense<0.000000e+00> : vector<4x128xf32>
    %34 = tpu.matmul %3, %19, %cst_26 {dimension_numbers = #tpu.dot_dimension_numbers<[1], [0], [0], [1], [0, 0, 1, 1], [], []>} : vector<4x8xf32>, vector<8x128xf32>, vector<4x128xf32> -> vector<4x128xf32>
    %cst_27 = arith.constant dense<0.000000e+00> : vector<128xf32>
    %35 = vector.multi_reduction <add>, %31, %cst_27 [0] : vector<16x128xf32> to vector<128xf32>
    %36 = vector.shape_cast %35 : vector<128xf32> to vector<1x128xf32>
    %cst_28 = arith.constant 1.600000e+01 : f32
    %37 = vector.broadcast %cst_28 : f32 to vector<1x128xf32>
    %38 = arith.divf %36, %37 : vector<1x128xf32>
    %39 = vector.broadcast %38 : vector<1x128xf32> to vector<16x128xf32>
    %40 = arith.subf %31, %39 : vector<16x128xf32>
    %41 = arith.mulf %40, %40 : vector<16x128xf32>
    %cst_29 = arith.constant dense<0.000000e+00> : vector<128xf32>
    %42 = vector.multi_reduction <add>, %41, %cst_29 [0] : vector<16x128xf32> to vector<128xf32>
    %43 = vector.shape_cast %42 : vector<128xf32> to vector<1x128xf32>
    %cst_30 = arith.constant 1.600000e+01 : f32
    %44 = vector.broadcast %cst_30 : f32 to vector<1x128xf32>
    %45 = arith.divf %43, %44 : vector<1x128xf32>
    %46 = vector.broadcast %38 : vector<1x128xf32> to vector<16x128xf32>
    %47 = arith.subf %31, %46 : vector<16x128xf32>
    %cst_31 = arith.constant 9.99999974E-6 : f32
    %48 = vector.broadcast %cst_31 : f32 to vector<1x128xf32>
    %49 = arith.addf %45, %48 : vector<1x128xf32>
    %50 = math.rsqrt %49 : vector<1x128xf32>
    %51 = vector.broadcast %50 : vector<1x128xf32> to vector<16x128xf32>
    %52 = arith.mulf %47, %51 : vector<16x128xf32>
    %53 = vector.broadcast %4 : vector<16x1xf32> to vector<16x128xf32>
    %54 = arith.mulf %52, %53 : vector<16x128xf32>
    %55 = vector.broadcast %5 : vector<16x1xf32> to vector<16x128xf32>
    %56 = arith.addf %54, %55 : vector<16x128xf32>
    %57 = arith.mulf %32, %32 : vector<4x128xf32>
    %58 = arith.mulf %33, %33 : vector<4x128xf32>
    %59 = arith.addf %57, %58 : vector<4x128xf32>
    %60 = arith.mulf %34, %34 : vector<4x128xf32>
    %61 = arith.addf %59, %60 : vector<4x128xf32>
    %cst_32 = arith.constant 2.000000e-04 : f32
    %62 = vector.broadcast %cst_32 : f32 to vector<4x128xf32>
    %63 = arith.cmpf ogt, %61, %62 : vector<4x128xf32>
    %64 = arith.extui %63 : vector<4x128xi1> to vector<4x128xi32>
    %65 = arith.sitofp %64 : vector<4x128xi32> to vector<4x128xf32>
    %cst_33 = arith.constant dense<0.000000e+00> : vector<128xf32>
    %66 = vector.multi_reduction <add>, %65, %cst_33 [0] : vector<4x128xf32> to vector<128xf32>
    %67 = vector.shape_cast %66 : vector<128xf32> to vector<1x128xf32>
    %cst_34 = arith.constant 9.99999974E-5 : f32
    %68 = vector.broadcast %cst_34 : f32 to vector<1x128xf32>
    %69 = arith.addf %68, %67 : vector<1x128xf32>
    %70 = arith.mulf %61, %65 : vector<4x128xf32>
    %cst_35 = arith.constant dense<0.000000e+00> : vector<128xf32>
    %71 = vector.multi_reduction <add>, %70, %cst_35 [0] : vector<4x128xf32> to vector<128xf32>
    %72 = vector.shape_cast %71 : vector<128xf32> to vector<1x128xf32>
    %73 = arith.divf %72, %69 : vector<1x128xf32>
    %cst_36 = arith.constant 9.99999974E-5 : f32
    %74 = vector.broadcast %cst_36 : f32 to vector<1x128xf32>
    %75 = arith.addf %73, %74 : vector<1x128xf32>
    %76 = math.rsqrt %75 : vector<1x128xf32>
    %77 = vector.broadcast %76 : vector<1x128xf32> to vector<4x128xf32>
    %78 = arith.mulf %65, %77 : vector<4x128xf32>
    %79 = arith.mulf %32, %78 : vector<4x128xf32>
    %80 = arith.mulf %33, %78 : vector<4x128xf32>
    %81 = arith.mulf %34, %78 : vector<4x128xf32>
    %82 = arith.truncf %56 : vector<16x128xf32> to vector<16x128xbf16>
    %c0_37 = arith.constant 0 : index
    %c0_38 = arith.constant 0 : index
    %83 = vector.load %arg9[%c0_37, %c0_38] : memref<16x128xbf16, #tpu.memory_space<vmem>>, vector<16x128xbf16>
    tpu.vector_store %arg9[%c0_37, %c0_38], %82 {strides = array<i32>} : memref<16x128xbf16, #tpu.memory_space<vmem>>, vector<16x128xbf16>,
    %84 = arith.truncf %79 : vector<4x128xf32> to vector<4x128xbf16>
    %c0_39 = arith.constant 0 : index
    %c0_40 = arith.constant 0 : index
    %c0_41 = arith.constant 0 : index
    %85 = vector.load %arg10[%c0_39, %c0_40, %c0_41] : memref<3x4x128xbf16, #tpu.memory_space<vmem>>, vector<1x4x128xbf16>
    %86 = vector.shape_cast %85 : vector<1x4x128xbf16> to vector<4x128xbf16>
    %87 = vector.shape_cast %84 : vector<4x128xbf16> to vector<1x4x128xbf16>
    tpu.vector_store %arg10[%c0_39, %c0_40, %c0_41], %87 {strides = array<i32>} : memref<3x4x128xbf16, #tpu.memory_space<vmem>>, vector<1x4x128xbf16>,
    %88 = arith.truncf %80 : vector<4x128xf32> to vector<4x128xbf16>
    %c1_42 = arith.constant 1 : index
    %c0_43 = arith.constant 0 : index
    %c0_44 = arith.constant 0 : index
    %89 = vector.load %arg10[%c1_42, %c0_43, %c0_44] : memref<3x4x128xbf16, #tpu.memory_space<vmem>>, vector<1x4x128xbf16>
    %90 = vector.shape_cast %89 : vector<1x4x128xbf16> to vector<4x128xbf16>
    %91 = vector.shape_cast %88 : vector<4x128xbf16> to vector<1x4x128xbf16>
    tpu.vector_store %arg10[%c1_42, %c0_43, %c0_44], %91 {strides = array<i32>} : memref<3x4x128xbf16, #tpu.memory_space<vmem>>, vector<1x4x128xbf16>,
    %92 = arith.truncf %81 : vector<4x128xf32> to vector<4x128xbf16>
    %c2_45 = arith.constant 2 : index
    %c0_46 = arith.constant 0 : index
    %c0_47 = arith.constant 0 : index
    %93 = vector.load %arg10[%c2_45, %c0_46, %c0_47] : memref<3x4x128xbf16, #tpu.memory_space<vmem>>, vector<1x4x128xbf16>
    %94 = vector.shape_cast %93 : vector<1x4x128xbf16> to vector<4x128xbf16>
    %95 = vector.shape_cast %92 : vector<4x128xbf16> to vector<1x4x128xbf16>
    tpu.vector_store %arg10[%c2_45, %c0_46, %c0_47], %95 {strides = array<i32>} : memref<3x4x128xbf16, #tpu.memory_space<vmem>>, vector<1x4x128xbf16>,
    return
  }
  func.func @transform_0(%arg0: i32) -> (i32, i32) {
    %c0_i32 = arith.constant 0 : i32
    %c0_i32_0 = arith.constant 0 : i32
    return %c0_i32, %arg0 : i32, i32
  }
  func.func @transform_1(%arg0: i32) -> (i32, i32, i32) {
    %c0_i32 = arith.constant 0 : i32
    %c0_i32_0 = arith.constant 0 : i32
    %c0_i32_1 = arith.constant 0 : i32
    return %c0_i32, %c0_i32_0, %arg0 : i32, i32, i32
  }
  func.func @transform_2(%arg0: i32) -> (i32, i32) {
    %c0_i32 = arith.constant 0 : i32
    %c0_i32_0 = arith.constant 0 : i32
    %c0_i32_1 = arith.constant 0 : i32
    return %c0_i32, %c0_i32_0 : i32, i32
  }
  func.func @transform_3(%arg0: i32) -> (i32, i32) {
    %c0_i32 = arith.constant 0 : i32
    %c0_i32_0 = arith.constant 0 : i32
    %c0_i32_1 = arith.constant 0 : i32
    return %c0_i32, %c0_i32_0 : i32, i32
  }
  func.func @transform_4(%arg0: i32) -> (i32, i32) {
    %c0_i32 = arith.constant 0 : i32
    %c0_i32_0 = arith.constant 0 : i32
    %c0_i32_1 = arith.constant 0 : i32
    return %c0_i32, %c0_i32_0 : i32, i32
  }
  func.func @transform_5(%arg0: i32) -> (i32, i32) {
    %c0_i32 = arith.constant 0 : i32
    %c0_i32_0 = arith.constant 0 : i32
    %c0_i32_1 = arith.constant 0 : i32
    return %c0_i32, %c0_i32_0 : i32, i32
  }
  func.func @transform_6(%arg0: i32) -> (i32, i32) {
    %c0_i32 = arith.constant 0 : i32
    %c0_i32_0 = arith.constant 0 : i32
    %c0_i32_1 = arith.constant 0 : i32
    return %c0_i32, %c0_i32_0 : i32, i32
  }
  func.func @transform_7(%arg0: i32) -> (i32, i32) {
    %c0_i32 = arith.constant 0 : i32
    %c0_i32_0 = arith.constant 0 : i32
    %c0_i32_1 = arith.constant 0 : i32
    return %c0_i32, %c0_i32_0 : i32, i32
  }
  func.func @transform_8(%arg0: i32) -> (i32, i32) {
    %c0_i32 = arith.constant 0 : i32
    %c0_i32_0 = arith.constant 0 : i32
    return %c0_i32, %arg0 : i32, i32
  }
  func.func @transform_9(%arg0: i32) -> (i32, i32, i32) {
    %c0_i32 = arith.constant 0 : i32
    %c0_i32_0 = arith.constant 0 : i32
    %c0_i32_1 = arith.constant 0 : i32
    return %c0_i32, %c0_i32_0, %arg0 : i32, i32, i32
  }
}

module attributes {stable_mosaic.version = 11 : i64} {
  func.func @kernel(%arg0: i32, %arg1: memref<32x128xbf16, #tpu.memory_space<vmem>>, %arg2: memref<32x128xf32, #tpu.memory_space<vmem>>, %arg3: memref<3x8x128xbf16, #tpu.memory_space<vmem>>, %arg4: memref<3x8x128xf32, #tpu.memory_space<vmem>>, %arg5: memref<32x1xf32, #tpu.memory_space<vmem>>, %arg6: memref<32x1xf32, #tpu.memory_space<vmem>>, %arg7: memref<16x8xf32, #tpu.memory_space<vmem>>, %arg8: memref<128x48xf32, #tpu.memory_space<vmem>>, %arg9: memref<128x1xf32, #tpu.memory_space<vmem>>, %arg10: memref<16x16xf32, #tpu.memory_space<vmem>>, %arg11: memref<16x128xf32, #tpu.memory_space<vmem>>, %arg12: memref<16x1xf32, #tpu.memory_space<vmem>>, %arg13: memref<16x16xf32, #tpu.memory_space<vmem>>, %arg14: memref<32x144xf32, #tpu.memory_space<vmem>>, %arg15: memref<32x1xf32, #tpu.memory_space<vmem>>, %arg16: memref<8x16xf32, #tpu.memory_space<vmem>>, %arg17: memref<8x32xf32, #tpu.memory_space<vmem>>, %arg18: memref<8x1xf32, #tpu.memory_space<vmem>>, %arg19: memref<32x1xf32, #tpu.memory_space<vmem>>, %arg20: memref<32x1xf32, #tpu.memory_space<vmem>>, %arg21: memref<32x128xbf16, #tpu.memory_space<vmem>>, %arg22: memref<3x8x128xbf16, #tpu.memory_space<vmem>>) attributes {dimension_semantics = [#tpu.dimension_semantics<parallel>], iteration_bounds = array<i64: 1>, scalar_prefetch = 0 : i64, scratch_operands = 0 : i64, tpu.core_type = #tpu.core_type<tc>, window_params = [{transform_indices = @transform_0, window_bounds = array<i64: 32, 128>}, {transform_indices = @transform_1, window_bounds = array<i64: 32, 128>}, {transform_indices = @transform_2, window_bounds = array<i64: 3, 8, 128>}, {transform_indices = @transform_3, window_bounds = array<i64: 3, 8, 128>}, {pipeline_mode = #tpu.pipeline_mode<synchronous>, transform_indices = @transform_4, window_bounds = array<i64: 32, 1>}, {pipeline_mode = #tpu.pipeline_mode<synchronous>, transform_indices = @transform_5, window_bounds = array<i64: 32, 1>}, {pipeline_mode = #tpu.pipeline_mode<synchronous>, transform_indices = @transform_6, window_bounds = array<i64: 16, 8>}, {pipeline_mode = #tpu.pipeline_mode<synchronous>, transform_indices = @transform_7, window_bounds = array<i64: 128, 48>}, {pipeline_mode = #tpu.pipeline_mode<synchronous>, transform_indices = @transform_8, window_bounds = array<i64: 128, 1>}, {pipeline_mode = #tpu.pipeline_mode<synchronous>, transform_indices = @transform_9, window_bounds = array<i64: 16, 16>}, {pipeline_mode = #tpu.pipeline_mode<synchronous>, transform_indices = @transform_10, window_bounds = array<i64: 16, 128>}, {pipeline_mode = #tpu.pipeline_mode<synchronous>, transform_indices = @transform_11, window_bounds = array<i64: 16, 1>}, {pipeline_mode = #tpu.pipeline_mode<synchronous>, transform_indices = @transform_12, window_bounds = array<i64: 16, 16>}, {pipeline_mode = #tpu.pipeline_mode<synchronous>, transform_indices = @transform_13, window_bounds = array<i64: 32, 144>}, {pipeline_mode = #tpu.pipeline_mode<synchronous>, transform_indices = @transform_14, window_bounds = array<i64: 32, 1>}, {pipeline_mode = #tpu.pipeline_mode<synchronous>, transform_indices = @transform_15, window_bounds = array<i64: 8, 16>}, {pipeline_mode = #tpu.pipeline_mode<synchronous>, transform_indices = @transform_16, window_bounds = array<i64: 8, 32>}, {pipeline_mode = #tpu.pipeline_mode<synchronous>, transform_indices = @transform_17, window_bounds = array<i64: 8, 1>}, {pipeline_mode = #tpu.pipeline_mode<synchronous>, transform_indices = @transform_18, window_bounds = array<i64: 32, 1>}, {pipeline_mode = #tpu.pipeline_mode<synchronous>, transform_indices = @transform_19, window_bounds = array<i64: 32, 1>}, {transform_indices = @transform_20, window_bounds = array<i64: 32, 128>}, {transform_indices = @transform_21, window_bounds = array<i64: 3, 8, 128>}]} {
    %c0 = arith.constant 0 : index
    %c0_0 = arith.constant 0 : index
    %0 = vector.load %arg5[%c0, %c0_0] : memref<32x1xf32, #tpu.memory_space<vmem>>, vector<32x1xf32>
    %c0_1 = arith.constant 0 : index
    %c0_2 = arith.constant 0 : index
    %1 = vector.load %arg6[%c0_1, %c0_2] : memref<32x1xf32, #tpu.memory_space<vmem>>, vector<32x1xf32>
    %c0_3 = arith.constant 0 : index
    %c0_4 = arith.constant 0 : index
    %2 = vector.load %arg7[%c0_3, %c0_4] : memref<16x8xf32, #tpu.memory_space<vmem>>, vector<16x8xf32>
    %c0_5 = arith.constant 0 : index
    %c0_6 = arith.constant 0 : index
    %3 = vector.load %arg8[%c0_5, %c0_6] : memref<128x48xf32, #tpu.memory_space<vmem>>, vector<128x48xf32>
    %c0_7 = arith.constant 0 : index
    %c0_8 = arith.constant 0 : index
    %4 = vector.load %arg9[%c0_7, %c0_8] : memref<128x1xf32, #tpu.memory_space<vmem>>, vector<128x1xf32>
    %c0_9 = arith.constant 0 : index
    %c0_10 = arith.constant 0 : index
    %5 = vector.load %arg10[%c0_9, %c0_10] : memref<16x16xf32, #tpu.memory_space<vmem>>, vector<16x16xf32>
    %c0_11 = arith.constant 0 : index
    %c0_12 = arith.constant 0 : index
    %6 = vector.load %arg11[%c0_11, %c0_12] : memref<16x128xf32, #tpu.memory_space<vmem>>, vector<16x128xf32>
    %c0_13 = arith.constant 0 : index
    %c0_14 = arith.constant 0 : index
    %7 = vector.load %arg12[%c0_13, %c0_14] : memref<16x1xf32, #tpu.memory_space<vmem>>, vector<16x1xf32>
    %c0_15 = arith.constant 0 : index
    %c0_16 = arith.constant 0 : index
    %8 = vector.load %arg13[%c0_15, %c0_16] : memref<16x16xf32, #tpu.memory_space<vmem>>, vector<16x16xf32>
    %c0_17 = arith.constant 0 : index
    %c0_18 = arith.constant 0 : index
    %9 = vector.load %arg14[%c0_17, %c0_18] : memref<32x144xf32, #tpu.memory_space<vmem>>, vector<32x144xf32>
    %c0_19 = arith.constant 0 : index
    %c0_20 = arith.constant 0 : index
    %10 = vector.load %arg15[%c0_19, %c0_20] : memref<32x1xf32, #tpu.memory_space<vmem>>, vector<32x1xf32>
    %c0_21 = arith.constant 0 : index
    %c0_22 = arith.constant 0 : index
    %11 = vector.load %arg16[%c0_21, %c0_22] : memref<8x16xf32, #tpu.memory_space<vmem>>, vector<8x16xf32>
    %c0_23 = arith.constant 0 : index
    %c0_24 = arith.constant 0 : index
    %12 = vector.load %arg17[%c0_23, %c0_24] : memref<8x32xf32, #tpu.memory_space<vmem>>, vector<8x32xf32>
    %c0_25 = arith.constant 0 : index
    %c0_26 = arith.constant 0 : index
    %13 = vector.load %arg18[%c0_25, %c0_26] : memref<8x1xf32, #tpu.memory_space<vmem>>, vector<8x1xf32>
    %c0_27 = arith.constant 0 : index
    %c0_28 = arith.constant 0 : index
    %14 = vector.load %arg19[%c0_27, %c0_28] : memref<32x1xf32, #tpu.memory_space<vmem>>, vector<32x1xf32>
    %c0_29 = arith.constant 0 : index
    %c0_30 = arith.constant 0 : index
    %15 = vector.load %arg20[%c0_29, %c0_30] : memref<32x1xf32, #tpu.memory_space<vmem>>, vector<32x1xf32>
    %c0_31 = arith.constant 0 : index
    %c0_32 = arith.constant 0 : index
    %16 = vector.load %arg1[%c0_31, %c0_32] : memref<32x128xbf16, #tpu.memory_space<vmem>>, vector<32x128xbf16>
    %17 = arith.extf %16 : vector<32x128xbf16> to vector<32x128xf32>
    %c0_33 = arith.constant 0 : index
    %c0_34 = arith.constant 0 : index
    %18 = vector.load %arg2[%c0_33, %c0_34] : memref<32x128xf32, #tpu.memory_space<vmem>>, vector<32x128xf32>
    %19 = arith.addf %17, %18 : vector<32x128xf32>
    %c0_35 = arith.constant 0 : index
    %c0_36 = arith.constant 0 : index
    %c0_37 = arith.constant 0 : index
    %20 = vector.load %arg3[%c0_35, %c0_36, %c0_37] : memref<3x8x128xbf16, #tpu.memory_space<vmem>>, vector<1x8x128xbf16>
    %21 = vector.shape_cast %20 : vector<1x8x128xbf16> to vector<8x128xbf16>
    %22 = arith.extf %21 : vector<8x128xbf16> to vector<8x128xf32>
    %c0_38 = arith.constant 0 : index
    %c0_39 = arith.constant 0 : index
    %c0_40 = arith.constant 0 : index
    %23 = vector.load %arg4[%c0_38, %c0_39, %c0_40] : memref<3x8x128xf32, #tpu.memory_space<vmem>>, vector<1x8x128xf32>
    %24 = vector.shape_cast %23 : vector<1x8x128xf32> to vector<8x128xf32>
    %25 = arith.addf %22, %24 : vector<8x128xf32>
    %c1 = arith.constant 1 : index
    %c0_41 = arith.constant 0 : index
    %c0_42 = arith.constant 0 : index
    %26 = vector.load %arg3[%c1, %c0_41, %c0_42] : memref<3x8x128xbf16, #tpu.memory_space<vmem>>, vector<1x8x128xbf16>
    %27 = vector.shape_cast %26 : vector<1x8x128xbf16> to vector<8x128xbf16>
    %28 = arith.extf %27 : vector<8x128xbf16> to vector<8x128xf32>
    %c1_43 = arith.constant 1 : index
    %c0_44 = arith.constant 0 : index
    %c0_45 = arith.constant 0 : index
    %29 = vector.load %arg4[%c1_43, %c0_44, %c0_45] : memref<3x8x128xf32, #tpu.memory_space<vmem>>, vector<1x8x128xf32>
    %30 = vector.shape_cast %29 : vector<1x8x128xf32> to vector<8x128xf32>
    %31 = arith.addf %28, %30 : vector<8x128xf32>
    %c2 = arith.constant 2 : index
    %c0_46 = arith.constant 0 : index
    %c0_47 = arith.constant 0 : index
    %32 = vector.load %arg3[%c2, %c0_46, %c0_47] : memref<3x8x128xbf16, #tpu.memory_space<vmem>>, vector<1x8x128xbf16>
    %33 = vector.shape_cast %32 : vector<1x8x128xbf16> to vector<8x128xbf16>
    %34 = arith.extf %33 : vector<8x128xbf16> to vector<8x128xf32>
    %c2_48 = arith.constant 2 : index
    %c0_49 = arith.constant 0 : index
    %c0_50 = arith.constant 0 : index
    %35 = vector.load %arg4[%c2_48, %c0_49, %c0_50] : memref<3x8x128xf32, #tpu.memory_space<vmem>>, vector<1x8x128xf32>
    %36 = vector.shape_cast %35 : vector<1x8x128xf32> to vector<8x128xf32>
    %37 = arith.addf %34, %36 : vector<8x128xf32>
    %cst = arith.constant dense<0.000000e+00> : vector<128xf32>
    %38 = vector.multi_reduction <add>, %19, %cst [0] : vector<32x128xf32> to vector<128xf32>
    %39 = vector.shape_cast %38 : vector<128xf32> to vector<1x128xf32>
    %cst_51 = arith.constant 3.200000e+01 : f32
    %40 = vector.broadcast %cst_51 : f32 to vector<1x128xf32>
    %41 = arith.divf %39, %40 : vector<1x128xf32>
    %42 = vector.broadcast %41 : vector<1x128xf32> to vector<32x128xf32>
    %43 = arith.subf %19, %42 : vector<32x128xf32>
    %44 = arith.mulf %43, %43 : vector<32x128xf32>
    %cst_52 = arith.constant dense<0.000000e+00> : vector<128xf32>
    %45 = vector.multi_reduction <add>, %44, %cst_52 [0] : vector<32x128xf32> to vector<128xf32>
    %46 = vector.shape_cast %45 : vector<128xf32> to vector<1x128xf32>
    %cst_53 = arith.constant 3.200000e+01 : f32
    %47 = vector.broadcast %cst_53 : f32 to vector<1x128xf32>
    %48 = arith.divf %46, %47 : vector<1x128xf32>
    %49 = vector.broadcast %41 : vector<1x128xf32> to vector<32x128xf32>
    %50 = arith.subf %19, %49 : vector<32x128xf32>
    %cst_54 = arith.constant 9.99999974E-6 : f32
    %51 = vector.broadcast %cst_54 : f32 to vector<1x128xf32>
    %52 = arith.addf %48, %51 : vector<1x128xf32>
    %53 = math.rsqrt %52 : vector<1x128xf32>
    %54 = vector.broadcast %53 : vector<1x128xf32> to vector<32x128xf32>
    %55 = arith.mulf %50, %54 : vector<32x128xf32>
    %56 = vector.broadcast %0 : vector<32x1xf32> to vector<32x128xf32>
    %57 = arith.mulf %55, %56 : vector<32x128xf32>
    %58 = vector.broadcast %1 : vector<32x1xf32> to vector<32x128xf32>
    %59 = arith.addf %57, %58 : vector<32x128xf32>
    %60 = arith.mulf %25, %25 : vector<8x128xf32>
    %61 = arith.mulf %31, %31 : vector<8x128xf32>
    %62 = arith.addf %60, %61 : vector<8x128xf32>
    %63 = arith.mulf %37, %37 : vector<8x128xf32>
    %64 = arith.addf %62, %63 : vector<8x128xf32>
    %cst_55 = arith.constant 2.000000e-04 : f32
    %65 = vector.broadcast %cst_55 : f32 to vector<8x128xf32>
    %66 = arith.cmpf ogt, %64, %65 : vector<8x128xf32>
    %67 = arith.extui %66 : vector<8x128xi1> to vector<8x128xi32>
    %68 = arith.sitofp %67 : vector<8x128xi32> to vector<8x128xf32>
    %cst_56 = arith.constant dense<0.000000e+00> : vector<128xf32>
    %69 = vector.multi_reduction <add>, %68, %cst_56 [0] : vector<8x128xf32> to vector<128xf32>
    %70 = vector.shape_cast %69 : vector<128xf32> to vector<1x128xf32>
    %cst_57 = arith.constant 9.99999974E-5 : f32
    %71 = vector.broadcast %cst_57 : f32 to vector<1x128xf32>
    %72 = arith.addf %71, %70 : vector<1x128xf32>
    %73 = arith.mulf %64, %68 : vector<8x128xf32>
    %cst_58 = arith.constant dense<0.000000e+00> : vector<128xf32>
    %74 = vector.multi_reduction <add>, %73, %cst_58 [0] : vector<8x128xf32> to vector<128xf32>
    %75 = vector.shape_cast %74 : vector<128xf32> to vector<1x128xf32>
    %76 = arith.divf %75, %72 : vector<1x128xf32>
    %cst_59 = arith.constant 9.99999974E-5 : f32
    %77 = vector.broadcast %cst_59 : f32 to vector<1x128xf32>
    %78 = arith.addf %76, %77 : vector<1x128xf32>
    %79 = math.rsqrt %78 : vector<1x128xf32>
    %80 = vector.broadcast %79 : vector<1x128xf32> to vector<8x128xf32>
    %81 = arith.mulf %68, %80 : vector<8x128xf32>
    %82 = arith.mulf %25, %81 : vector<8x128xf32>
    %83 = arith.mulf %31, %81 : vector<8x128xf32>
    %84 = arith.mulf %37, %81 : vector<8x128xf32>
    %cst_60 = arith.constant dense<0.000000e+00> : vector<16x128xf32>
    %85 = tpu.matmul %2, %82, %cst_60 {dimension_numbers = #tpu.dot_dimension_numbers<[1], [0], [0], [1], [0, 0, 1, 1], [], []>} : vector<16x8xf32>, vector<8x128xf32>, vector<16x128xf32> -> vector<16x128xf32>
    %cst_61 = arith.constant dense<0.000000e+00> : vector<16x128xf32>
    %86 = tpu.matmul %2, %83, %cst_61 {dimension_numbers = #tpu.dot_dimension_numbers<[1], [0], [0], [1], [0, 0, 1, 1], [], []>} : vector<16x8xf32>, vector<8x128xf32>, vector<16x128xf32> -> vector<16x128xf32>
    %cst_62 = arith.constant dense<0.000000e+00> : vector<16x128xf32>
    %87 = tpu.matmul %2, %84, %cst_62 {dimension_numbers = #tpu.dot_dimension_numbers<[1], [0], [0], [1], [0, 0, 1, 1], [], []>} : vector<16x8xf32>, vector<8x128xf32>, vector<16x128xf32> -> vector<16x128xf32>
    %88 = arith.mulf %85, %85 : vector<16x128xf32>
    %89 = arith.mulf %86, %86 : vector<16x128xf32>
    %90 = arith.addf %88, %89 : vector<16x128xf32>
    %91 = arith.mulf %87, %87 : vector<16x128xf32>
    %92 = arith.addf %90, %91 : vector<16x128xf32>
    %cst_63 = arith.constant 9.99999993E-9 : f32
    %93 = vector.broadcast %cst_63 : f32 to vector<16x128xf32>
    %94 = arith.maximumf %92, %93 : vector<16x128xf32>
    %95 = math.sqrt %94 : vector<16x128xf32>
    %96 = tpu.concatenate %59, %95 in 0 : vector<32x128xf32>, vector<16x128xf32> -> vector<48x128xf32>
    %cst_64 = arith.constant dense<0.000000e+00> : vector<128x128xf32>
    %97 = tpu.matmul %3, %96, %cst_64 {dimension_numbers = #tpu.dot_dimension_numbers<[1], [0], [0], [1], [0, 0, 1, 1], [], []>} : vector<128x48xf32>, vector<48x128xf32>, vector<128x128xf32> -> vector<128x128xf32>
    %98 = vector.broadcast %4 : vector<128x1xf32> to vector<128x128xf32>
    %99 = arith.addf %97, %98 : vector<128x128xf32>
    %cst_65 = arith.constant dense<0.000000e+00> : vector<16x128xf32>
    %100 = tpu.matmul %5, %85, %cst_65 {dimension_numbers = #tpu.dot_dimension_numbers<[1], [0], [0], [1], [0, 0, 1, 1], [], []>} : vector<16x16xf32>, vector<16x128xf32>, vector<16x128xf32> -> vector<16x128xf32>
    %cst_66 = arith.constant dense<0.000000e+00> : vector<16x128xf32>
    %101 = tpu.matmul %5, %86, %cst_66 {dimension_numbers = #tpu.dot_dimension_numbers<[1], [0], [0], [1], [0, 0, 1, 1], [], []>} : vector<16x16xf32>, vector<16x128xf32>, vector<16x128xf32> -> vector<16x128xf32>
    %cst_67 = arith.constant dense<0.000000e+00> : vector<16x128xf32>
    %102 = tpu.matmul %5, %87, %cst_67 {dimension_numbers = #tpu.dot_dimension_numbers<[1], [0], [0], [1], [0, 0, 1, 1], [], []>} : vector<16x16xf32>, vector<16x128xf32>, vector<16x128xf32> -> vector<16x128xf32>
    %103 = arith.negf %99 : vector<128x128xf32>
    %104 = math.exp %103 : vector<128x128xf32>
    %cst_68 = arith.constant 1.000000e+00 : f32
    %105 = vector.broadcast %cst_68 : f32 to vector<128x128xf32>
    %106 = arith.addf %105, %104 : vector<128x128xf32>
    %107 = arith.divf %105, %106 : vector<128x128xf32>
    %cst_69 = arith.constant dense<0.000000e+00> : vector<16x128xf32>
    %108 = tpu.matmul %6, %107, %cst_69 {dimension_numbers = #tpu.dot_dimension_numbers<[1], [0], [0], [1], [0, 0, 1, 1], [], []>} : vector<16x128xf32>, vector<128x128xf32>, vector<16x128xf32> -> vector<16x128xf32>
    %109 = vector.broadcast %7 : vector<16x1xf32> to vector<16x128xf32>
    %110 = arith.addf %108, %109 : vector<16x128xf32>
    %111 = arith.negf %110 : vector<16x128xf32>
    %112 = math.exp %111 : vector<16x128xf32>
    %cst_70 = arith.constant 1.000000e+00 : f32
    %113 = vector.broadcast %cst_70 : f32 to vector<16x128xf32>
    %114 = arith.addf %113, %112 : vector<16x128xf32>
    %115 = arith.divf %113, %114 : vector<16x128xf32>
    %116 = arith.mulf %100, %115 : vector<16x128xf32>
    %117 = arith.mulf %101, %115 : vector<16x128xf32>
    %118 = arith.mulf %102, %115 : vector<16x128xf32>
    %cst_71 = arith.constant 0.000000e+00 : f32
    %119 = vector.broadcast %cst_71 : f32 to vector<128x128xf32>
    %120 = arith.maximumf %99, %119 : vector<128x128xf32>
    %cst_72 = arith.constant dense<0.000000e+00> : vector<16x128xf32>
    %121 = tpu.matmul %8, %116, %cst_72 {dimension_numbers = #tpu.dot_dimension_numbers<[1], [0], [0], [1], [0, 0, 1, 1], [], []>} : vector<16x16xf32>, vector<16x128xf32>, vector<16x128xf32> -> vector<16x128xf32>
    %cst_73 = arith.constant dense<0.000000e+00> : vector<16x128xf32>
    %122 = tpu.matmul %8, %117, %cst_73 {dimension_numbers = #tpu.dot_dimension_numbers<[1], [0], [0], [1], [0, 0, 1, 1], [], []>} : vector<16x16xf32>, vector<16x128xf32>, vector<16x128xf32> -> vector<16x128xf32>
    %cst_74 = arith.constant dense<0.000000e+00> : vector<16x128xf32>
    %123 = tpu.matmul %8, %118, %cst_74 {dimension_numbers = #tpu.dot_dimension_numbers<[1], [0], [0], [1], [0, 0, 1, 1], [], []>} : vector<16x16xf32>, vector<16x128xf32>, vector<16x128xf32> -> vector<16x128xf32>
    %124 = arith.mulf %121, %121 : vector<16x128xf32>
    %125 = arith.mulf %122, %122 : vector<16x128xf32>
    %126 = arith.addf %124, %125 : vector<16x128xf32>
    %127 = arith.mulf %123, %123 : vector<16x128xf32>
    %128 = arith.addf %126, %127 : vector<16x128xf32>
    %cst_75 = arith.constant 9.99999993E-9 : f32
    %129 = vector.broadcast %cst_75 : f32 to vector<16x128xf32>
    %130 = arith.maximumf %128, %129 : vector<16x128xf32>
    %131 = math.sqrt %130 : vector<16x128xf32>
    %132 = tpu.concatenate %120, %131 in 0 : vector<128x128xf32>, vector<16x128xf32> -> vector<144x128xf32>
    %cst_76 = arith.constant dense<0.000000e+00> : vector<32x128xf32>
    %133 = tpu.matmul %9, %132, %cst_76 {dimension_numbers = #tpu.dot_dimension_numbers<[1], [0], [0], [1], [0, 0, 1, 1], [], []>} : vector<32x144xf32>, vector<144x128xf32>, vector<32x128xf32> -> vector<32x128xf32>
    %134 = vector.broadcast %10 : vector<32x1xf32> to vector<32x128xf32>
    %135 = arith.addf %133, %134 : vector<32x128xf32>
    %cst_77 = arith.constant dense<0.000000e+00> : vector<8x128xf32>
    %136 = tpu.matmul %11, %121, %cst_77 {dimension_numbers = #tpu.dot_dimension_numbers<[1], [0], [0], [1], [0, 0, 1, 1], [], []>} : vector<8x16xf32>, vector<16x128xf32>, vector<8x128xf32> -> vector<8x128xf32>
    %cst_78 = arith.constant dense<0.000000e+00> : vector<8x128xf32>
    %137 = tpu.matmul %11, %122, %cst_78 {dimension_numbers = #tpu.dot_dimension_numbers<[1], [0], [0], [1], [0, 0, 1, 1], [], []>} : vector<8x16xf32>, vector<16x128xf32>, vector<8x128xf32> -> vector<8x128xf32>
    %cst_79 = arith.constant dense<0.000000e+00> : vector<8x128xf32>
    %138 = tpu.matmul %11, %123, %cst_79 {dimension_numbers = #tpu.dot_dimension_numbers<[1], [0], [0], [1], [0, 0, 1, 1], [], []>} : vector<8x16xf32>, vector<16x128xf32>, vector<8x128xf32> -> vector<8x128xf32>
    %cst_80 = arith.constant dense<0.000000e+00> : vector<8x128xf32>
    %139 = tpu.matmul %12, %135, %cst_80 {dimension_numbers = #tpu.dot_dimension_numbers<[1], [0], [0], [1], [0, 0, 1, 1], [], []>} : vector<8x32xf32>, vector<32x128xf32>, vector<8x128xf32> -> vector<8x128xf32>
    %140 = vector.broadcast %13 : vector<8x1xf32> to vector<8x128xf32>
    %141 = arith.addf %139, %140 : vector<8x128xf32>
    %142 = arith.negf %141 : vector<8x128xf32>
    %143 = math.exp %142 : vector<8x128xf32>
    %cst_81 = arith.constant 1.000000e+00 : f32
    %144 = vector.broadcast %cst_81 : f32 to vector<8x128xf32>
    %145 = arith.addf %144, %143 : vector<8x128xf32>
    %146 = arith.divf %144, %145 : vector<8x128xf32>
    %147 = arith.mulf %136, %146 : vector<8x128xf32>
    %148 = arith.mulf %137, %146 : vector<8x128xf32>
    %149 = arith.mulf %138, %146 : vector<8x128xf32>
    %150 = arith.addf %59, %135 : vector<32x128xf32>
    %151 = arith.addf %82, %147 : vector<8x128xf32>
    %152 = arith.addf %83, %148 : vector<8x128xf32>
    %153 = arith.addf %84, %149 : vector<8x128xf32>
    %cst_82 = arith.constant dense<0.000000e+00> : vector<128xf32>
    %154 = vector.multi_reduction <add>, %150, %cst_82 [0] : vector<32x128xf32> to vector<128xf32>
    %155 = vector.shape_cast %154 : vector<128xf32> to vector<1x128xf32>
    %cst_83 = arith.constant 3.200000e+01 : f32
    %156 = vector.broadcast %cst_83 : f32 to vector<1x128xf32>
    %157 = arith.divf %155, %156 : vector<1x128xf32>
    %158 = vector.broadcast %157 : vector<1x128xf32> to vector<32x128xf32>
    %159 = arith.subf %150, %158 : vector<32x128xf32>
    %160 = arith.mulf %159, %159 : vector<32x128xf32>
    %cst_84 = arith.constant dense<0.000000e+00> : vector<128xf32>
    %161 = vector.multi_reduction <add>, %160, %cst_84 [0] : vector<32x128xf32> to vector<128xf32>
    %162 = vector.shape_cast %161 : vector<128xf32> to vector<1x128xf32>
    %cst_85 = arith.constant 3.200000e+01 : f32
    %163 = vector.broadcast %cst_85 : f32 to vector<1x128xf32>
    %164 = arith.divf %162, %163 : vector<1x128xf32>
    %165 = vector.broadcast %157 : vector<1x128xf32> to vector<32x128xf32>
    %166 = arith.subf %150, %165 : vector<32x128xf32>
    %cst_86 = arith.constant 9.99999974E-6 : f32
    %167 = vector.broadcast %cst_86 : f32 to vector<1x128xf32>
    %168 = arith.addf %164, %167 : vector<1x128xf32>
    %169 = math.rsqrt %168 : vector<1x128xf32>
    %170 = vector.broadcast %169 : vector<1x128xf32> to vector<32x128xf32>
    %171 = arith.mulf %166, %170 : vector<32x128xf32>
    %172 = vector.broadcast %14 : vector<32x1xf32> to vector<32x128xf32>
    %173 = arith.mulf %171, %172 : vector<32x128xf32>
    %174 = vector.broadcast %15 : vector<32x1xf32> to vector<32x128xf32>
    %175 = arith.addf %173, %174 : vector<32x128xf32>
    %176 = arith.mulf %151, %151 : vector<8x128xf32>
    %177 = arith.mulf %152, %152 : vector<8x128xf32>
    %178 = arith.addf %176, %177 : vector<8x128xf32>
    %179 = arith.mulf %153, %153 : vector<8x128xf32>
    %180 = arith.addf %178, %179 : vector<8x128xf32>
    %cst_87 = arith.constant 2.000000e-04 : f32
    %181 = vector.broadcast %cst_87 : f32 to vector<8x128xf32>
    %182 = arith.cmpf ogt, %180, %181 : vector<8x128xf32>
    %183 = arith.extui %182 : vector<8x128xi1> to vector<8x128xi32>
    %184 = arith.sitofp %183 : vector<8x128xi32> to vector<8x128xf32>
    %cst_88 = arith.constant dense<0.000000e+00> : vector<128xf32>
    %185 = vector.multi_reduction <add>, %184, %cst_88 [0] : vector<8x128xf32> to vector<128xf32>
    %186 = vector.shape_cast %185 : vector<128xf32> to vector<1x128xf32>
    %cst_89 = arith.constant 9.99999974E-5 : f32
    %187 = vector.broadcast %cst_89 : f32 to vector<1x128xf32>
    %188 = arith.addf %187, %186 : vector<1x128xf32>
    %189 = arith.mulf %180, %184 : vector<8x128xf32>
    %cst_90 = arith.constant dense<0.000000e+00> : vector<128xf32>
    %190 = vector.multi_reduction <add>, %189, %cst_90 [0] : vector<8x128xf32> to vector<128xf32>
    %191 = vector.shape_cast %190 : vector<128xf32> to vector<1x128xf32>
    %192 = arith.divf %191, %188 : vector<1x128xf32>
    %cst_91 = arith.constant 9.99999974E-5 : f32
    %193 = vector.broadcast %cst_91 : f32 to vector<1x128xf32>
    %194 = arith.addf %192, %193 : vector<1x128xf32>
    %195 = math.rsqrt %194 : vector<1x128xf32>
    %196 = vector.broadcast %195 : vector<1x128xf32> to vector<8x128xf32>
    %197 = arith.mulf %184, %196 : vector<8x128xf32>
    %198 = arith.mulf %151, %197 : vector<8x128xf32>
    %199 = arith.mulf %152, %197 : vector<8x128xf32>
    %200 = arith.mulf %153, %197 : vector<8x128xf32>
    %201 = arith.truncf %175 : vector<32x128xf32> to vector<32x128xbf16>
    %c0_92 = arith.constant 0 : index
    %c0_93 = arith.constant 0 : index
    %202 = vector.load %arg21[%c0_92, %c0_93] : memref<32x128xbf16, #tpu.memory_space<vmem>>, vector<32x128xbf16>
    tpu.vector_store %arg21[%c0_92, %c0_93], %201 {strides = array<i32>} : memref<32x128xbf16, #tpu.memory_space<vmem>>, vector<32x128xbf16>,
    %203 = arith.truncf %198 : vector<8x128xf32> to vector<8x128xbf16>
    %c0_94 = arith.constant 0 : index
    %c0_95 = arith.constant 0 : index
    %c0_96 = arith.constant 0 : index
    %204 = vector.load %arg22[%c0_94, %c0_95, %c0_96] : memref<3x8x128xbf16, #tpu.memory_space<vmem>>, vector<1x8x128xbf16>
    %205 = vector.shape_cast %204 : vector<1x8x128xbf16> to vector<8x128xbf16>
    %206 = vector.shape_cast %203 : vector<8x128xbf16> to vector<1x8x128xbf16>
    tpu.vector_store %arg22[%c0_94, %c0_95, %c0_96], %206 {strides = array<i32>} : memref<3x8x128xbf16, #tpu.memory_space<vmem>>, vector<1x8x128xbf16>,
    %207 = arith.truncf %199 : vector<8x128xf32> to vector<8x128xbf16>
    %c1_97 = arith.constant 1 : index
    %c0_98 = arith.constant 0 : index
    %c0_99 = arith.constant 0 : index
    %208 = vector.load %arg22[%c1_97, %c0_98, %c0_99] : memref<3x8x128xbf16, #tpu.memory_space<vmem>>, vector<1x8x128xbf16>
    %209 = vector.shape_cast %208 : vector<1x8x128xbf16> to vector<8x128xbf16>
    %210 = vector.shape_cast %207 : vector<8x128xbf16> to vector<1x8x128xbf16>
    tpu.vector_store %arg22[%c1_97, %c0_98, %c0_99], %210 {strides = array<i32>} : memref<3x8x128xbf16, #tpu.memory_space<vmem>>, vector<1x8x128xbf16>,
    %211 = arith.truncf %200 : vector<8x128xf32> to vector<8x128xbf16>
    %c2_100 = arith.constant 2 : index
    %c0_101 = arith.constant 0 : index
    %c0_102 = arith.constant 0 : index
    %212 = vector.load %arg22[%c2_100, %c0_101, %c0_102] : memref<3x8x128xbf16, #tpu.memory_space<vmem>>, vector<1x8x128xbf16>
    %213 = vector.shape_cast %212 : vector<1x8x128xbf16> to vector<8x128xbf16>
    %214 = vector.shape_cast %211 : vector<8x128xbf16> to vector<1x8x128xbf16>
    tpu.vector_store %arg22[%c2_100, %c0_101, %c0_102], %214 {strides = array<i32>} : memref<3x8x128xbf16, #tpu.memory_space<vmem>>, vector<1x8x128xbf16>,
    return
  }
  func.func @transform_0(%arg0: i32) -> (i32, i32) {
    %c0_i32 = arith.constant 0 : i32
    %c0_i32_0 = arith.constant 0 : i32
    return %c0_i32, %arg0 : i32, i32
  }
  func.func @transform_1(%arg0: i32) -> (i32, i32) {
    %c0_i32 = arith.constant 0 : i32
    %c0_i32_0 = arith.constant 0 : i32
    return %c0_i32, %arg0 : i32, i32
  }
  func.func @transform_2(%arg0: i32) -> (i32, i32, i32) {
    %c0_i32 = arith.constant 0 : i32
    %c0_i32_0 = arith.constant 0 : i32
    %c0_i32_1 = arith.constant 0 : i32
    return %c0_i32, %c0_i32_0, %arg0 : i32, i32, i32
  }
  func.func @transform_3(%arg0: i32) -> (i32, i32, i32) {
    %c0_i32 = arith.constant 0 : i32
    %c0_i32_0 = arith.constant 0 : i32
    %c0_i32_1 = arith.constant 0 : i32
    return %c0_i32, %c0_i32_0, %arg0 : i32, i32, i32
  }
  func.func @transform_4(%arg0: i32) -> (i32, i32) {
    %c0_i32 = arith.constant 0 : i32
    %c0_i32_0 = arith.constant 0 : i32
    %c0_i32_1 = arith.constant 0 : i32
    return %c0_i32, %c0_i32_0 : i32, i32
  }
  func.func @transform_5(%arg0: i32) -> (i32, i32) {
    %c0_i32 = arith.constant 0 : i32
    %c0_i32_0 = arith.constant 0 : i32
    %c0_i32_1 = arith.constant 0 : i32
    return %c0_i32, %c0_i32_0 : i32, i32
  }
  func.func @transform_6(%arg0: i32) -> (i32, i32) {
    %c0_i32 = arith.constant 0 : i32
    %c0_i32_0 = arith.constant 0 : i32
    %c0_i32_1 = arith.constant 0 : i32
    return %c0_i32, %c0_i32_0 : i32, i32
  }
  func.func @transform_7(%arg0: i32) -> (i32, i32) {
    %c0_i32 = arith.constant 0 : i32
    %c0_i32_0 = arith.constant 0 : i32
    %c0_i32_1 = arith.constant 0 : i32
    return %c0_i32, %c0_i32_0 : i32, i32
  }
  func.func @transform_8(%arg0: i32) -> (i32, i32) {
    %c0_i32 = arith.constant 0 : i32
    %c0_i32_0 = arith.constant 0 : i32
    %c0_i32_1 = arith.constant 0 : i32
    return %c0_i32, %c0_i32_0 : i32, i32
  }
  func.func @transform_9(%arg0: i32) -> (i32, i32) {
    %c0_i32 = arith.constant 0 : i32
    %c0_i32_0 = arith.constant 0 : i32
    %c0_i32_1 = arith.constant 0 : i32
    return %c0_i32, %c0_i32_0 : i32, i32
  }
  func.func @transform_10(%arg0: i32) -> (i32, i32) {
    %c0_i32 = arith.constant 0 : i32
    %c0_i32_0 = arith.constant 0 : i32
    %c0_i32_1 = arith.constant 0 : i32
    return %c0_i32, %c0_i32_0 : i32, i32
  }
  func.func @transform_11(%arg0: i32) -> (i32, i32) {
    %c0_i32 = arith.constant 0 : i32
    %c0_i32_0 = arith.constant 0 : i32
    %c0_i32_1 = arith.constant 0 : i32
    return %c0_i32, %c0_i32_0 : i32, i32
  }
  func.func @transform_12(%arg0: i32) -> (i32, i32) {
    %c0_i32 = arith.constant 0 : i32
    %c0_i32_0 = arith.constant 0 : i32
    %c0_i32_1 = arith.constant 0 : i32
    return %c0_i32, %c0_i32_0 : i32, i32
  }
  func.func @transform_13(%arg0: i32) -> (i32, i32) {
    %c0_i32 = arith.constant 0 : i32
    %c0_i32_0 = arith.constant 0 : i32
    %c0_i32_1 = arith.constant 0 : i32
    return %c0_i32, %c0_i32_0 : i32, i32
  }
  func.func @transform_14(%arg0: i32) -> (i32, i32) {
    %c0_i32 = arith.constant 0 : i32
    %c0_i32_0 = arith.constant 0 : i32
    %c0_i32_1 = arith.constant 0 : i32
    return %c0_i32, %c0_i32_0 : i32, i32
  }
  func.func @transform_15(%arg0: i32) -> (i32, i32) {
    %c0_i32 = arith.constant 0 : i32
    %c0_i32_0 = arith.constant 0 : i32
    %c0_i32_1 = arith.constant 0 : i32
    return %c0_i32, %c0_i32_0 : i32, i32
  }
  func.func @transform_16(%arg0: i32) -> (i32, i32) {
    %c0_i32 = arith.constant 0 : i32
    %c0_i32_0 = arith.constant 0 : i32
    %c0_i32_1 = arith.constant 0 : i32
    return %c0_i32, %c0_i32_0 : i32, i32
  }
  func.func @transform_17(%arg0: i32) -> (i32, i32) {
    %c0_i32 = arith.constant 0 : i32
    %c0_i32_0 = arith.constant 0 : i32
    %c0_i32_1 = arith.constant 0 : i32
    return %c0_i32, %c0_i32_0 : i32, i32
  }
  func.func @transform_18(%arg0: i32) -> (i32, i32) {
    %c0_i32 = arith.constant 0 : i32
    %c0_i32_0 = arith.constant 0 : i32
    %c0_i32_1 = arith.constant 0 : i32
    return %c0_i32, %c0_i32_0 : i32, i32
  }
  func.func @transform_19(%arg0: i32) -> (i32, i32) {
    %c0_i32 = arith.constant 0 : i32
    %c0_i32_0 = arith.constant 0 : i32
    %c0_i32_1 = arith.constant 0 : i32
    return %c0_i32, %c0_i32_0 : i32, i32
  }
  func.func @transform_20(%arg0: i32) -> (i32, i32) {
    %c0_i32 = arith.constant 0 : i32
    %c0_i32_0 = arith.constant 0 : i32
    return %c0_i32, %arg0 : i32, i32
  }
  func.func @transform_21(%arg0: i32) -> (i32, i32, i32) {
    %c0_i32 = arith.constant 0 : i32
    %c0_i32_0 = arith.constant 0 : i32
    %c0_i32_1 = arith.constant 0 : i32
    return %c0_i32, %c0_i32_0, %arg0 : i32, i32, i32
  }
}

</mosaic_0001>

<bundles_post_ra>
// kernel: sub.66
= control target key start
LH: loop header
LB: loop body
LE: loop exit
PB: predicated region body
PF: predicated region fallthrough
CT: control target
= control target key end

     0   :  { %vm7_vm0 = vcmask 64512   ;;  %vm13_vm1 = vcmask 130112   ;;  %s39_s0 = inlined_call_operand.vmem [shape: f32[2,8], index: 0, kind: input, shape index: {}]   ;;  %s40_s1 = inlined_call_operand.vmem [shape: f32[16], index: 1, kind: output, shape index: {}]  }
   0x1   :  { %v4_v0 = vld [vmem:[%s39_s0] sm:$0x3]  ;;  %s22_s0 = smov 8  }
   0x2   :  { %5 = vst [vmem:[#allocation1] sm:$0x3] %v4_v0 }
   0x9   :  { %v10_v1 = vld [vmem:[#allocation1 + $0x1] sm:$0x1]   ;;  %v6_v2 = vld [vmem:[#allocation1] sm:$0x1]  }
   0xa   :  { %11 = vrot.lane.b32.xlu0 %v10_v1, %s22_s0  ;;  %8 = vst.msk [vmem:[#allocation0] sm:$0x1] %vm7_vm0, %v6_v2  }
  0x7c   :  { %v12_v3 = vpop.permute.xlu0 %11  }
  0x7d   :  { %14 = vst.msk [vmem:[#allocation0] sm:$0x1] %vm13_vm1, %v12_v3  }
  0x84   :  { %v18_v4 = vld [vmem:[#allocation0] sm:$0x1] }
  0x85   :  { %20 = vst [vmem:[%s40_s1] sm:$0x1] %v18_v4 }

// kernel: gvp_encoder_forward.6
= control target key start
LH: loop header
LB: loop body
LE: loop exit
PB: predicated region body
PF: predicated region fallthrough
CT: control target
= control target key end

     0   :  { %v1068_v0 = vmov 0.0   ;;  %vm80_vm0 = vcmask 1042432   ;;  %vm1069_vm1 = vmmov 0   ;;  %vm76_vm2 = vcmask 23552   ;;  %s1301_s1 = inlined_call_operand.vmem [shape: bf16[3,3,128], index: 1, kind: input, shape index: {}]   ;;  %s1302_s3 = inlined_call_operand.vmem [shape: f32[8,3], index: 3, kind: input, shape index: {}]   ;;  %s1303_s4 = inlined_call_operand.vmem [shape: f32[32,16], index: 4, kind: input, shape index: {}]   ;;  %s1304_s5 = inlined_call_operand.vmem [shape: f32[32,1], index: 5, kind: input, shape index: {}]   ;;  %s1305_s7 = inlined_call_operand.vmem [shape: f32[32,1], index: 7, kind: input, shape index: {}]   ;;  %s1306_s8 = inlined_call_operand.vmem [shape: f32[32,1], index: 8, kind: input, shape index: {}]   ;;  %s1307_s10 = inlined_call_operand.vmem [shape: f32[32,1], index: 10, kind: input, shape index: {}]   ;;  %s1308_s6 = inlined_call_operand.vmem [shape: f32[8,8], index: 6, kind: input, shape index: {}]   ;;  %s1309_s2 = inlined_call_operand.vmem [shape: bf16[16,128], index: 2, kind: input, shape index: {}]   ;;  %s1310_s9 = inlined_call_operand.vmem [shape: f32[32,16], index: 9, kind: input, shape index: {}]   ;;  %s1311_s0 = inlined_call_operand.vmem [shape: bf16[8,128], index: 0, kind: input, shape index: {}]   ;;  %s1312_s12 = inlined_call_operand.vmem [shape: bf16[3,8,128], index: 12, kind: output, shape index: {1}]   ;;  %s1313_s11 = inlined_call_operand.vmem [shape: bf16[32,128], index: 11, kind: output, shape index: {0}]  }
   0x1   :  { %997 = vmatprep.subr.mxu1 %v1068_v0  ;;  %v68_v1 = vld [vmem:[%s1301_s1] sm:$0x3]  ;;  %v923_v2 = vld [vmem:[%s1301_s1 + $0x2] sm:$0x3]  ;;  %999 = vmatprep.mubr.msk.f32.mxu1 %vm1069_vm1, %v1068_v0  ;;  %v924_v6 = vld [vmem:[%s1301_s1 + $0x4] sm:$0x3] }
   0x2   :  { %v69_v3 = vunpack.c.l.bf16 %v68_v1  ;;  %v72_v4 = vunpack.c.l.bf16 %v923_v2  ;;  %v40_v5 = vld [vmem:[%s1302_s3] sm:$0xff]  ;;  %1007 = vmatprep.subr.mxu0 %v1068_v0  ;;  %1009 = vmatprep.mubr.msk.f32.mxu0 %vm1069_vm1, %v1068_v0  ;;  %v75_v7 = vunpack.c.l.bf16 %v924_v6  ;;  %vm333_vm3 = vcmask 130048   ;;  %v47_v11 = vld [vmem:[%s1304_s5 + $0x10] sm:$0xff]  ;;  %v46_v12 = vld [vmem:[%s1304_s5 + $0x8] sm:$0xff] }
   0x3   :  { %v41_v8 = vld [vmem:[%s1303_s4] sm:$0xff]  ;;  %v1070_v9 = vmov 0   ;;  %v48_v13 = vld [vmem:[%s1304_s5 + $0x18] sm:$0xff]  ;;  %v51_v15 = vld [vmem:[%s1305_s7 + $0x8] sm:$0xff]  ;;  %vm431_vm4 = vcmask 64512  }
   0x4   :  { %998 = vmatpush3.msk.msra.mxu1 %vm80_vm0, %v69_v3  ;;  %1008 = vmatpush3.msk.msra.mxu0 %vm80_vm0, %v75_v7  ;;  %v45_v10 = vld [vmem:[%s1304_s5] sm:$0xff]  ;;  %v52_v16 = vld [vmem:[%s1305_s7 + $0x10] sm:$0xff]  ;;  %v53_v17 = vld [vmem:[%s1305_s7 + $0x18] sm:$0xff] }
   0x5   :  { %1000 = vmatmul.mubr.msk.f32.vlgmr.msra.gmra.mrb[0].mxu1 %vm76_vm2, %v40_v5  ;;  %1002 = vmatprep.subr.mxu1 %v1068_v0  ;;  %v50_v14 = vld [vmem:[%s1305_s7] sm:$0xff]  ;;  %v55_v19 = vld [vmem:[%s1306_s8 + $0x8] sm:$0xff]  ;;  %v56_v20 = vld [vmem:[%s1306_s8 + $0x10] sm:$0xff] }
   0x6   :  { %1003 = vmatpush3.msk.msra.mxu1 %vm80_vm0, %v72_v4  ;;  %1004 = vmatprep.mubr.msk.f32.mxu1 %vm1069_vm1, %v1068_v0  ;;  %v54_v18 = vld [vmem:[%s1306_s8] sm:$0xff]  ;;  %v57_v21 = vld [vmem:[%s1306_s8 + $0x18] sm:$0xff]  ;;  %v63_v23 = vld [vmem:[%s1307_s10 + $0x8] sm:$0xff] }
   0x7   :  { %1010 = vmatmul.mubr.msk.f32.vlgmr.msra.gmra.mrb[0].mxu0 %vm76_vm2, %v40_v5  ;;  %1022 = vmatprep.subr.mxu0 %v1068_v0  ;;  %v62_v22 = vld [vmem:[%s1307_s10] sm:$0xff]  ;;  %v64_v24 = vld [vmem:[%s1307_s10 + $0x10] sm:$0xff]  ;;  %v65_v25 = vld [vmem:[%s1307_s10 + $0x18] sm:$0xff] }
   0x8   :  { %1024 = vmatprep.mubr.msk.f32.mxu0 %vm1069_vm1, %v1068_v0  ;;  %1058 = vset.pattern.permute.xlu0 %v1070_v9  ;;  %v49_v26 = vld [vmem:[%s1308_s6] sm:$0xff]  ;;  %v59_v39 = vld [vmem:[%s1310_s9 + $0x8] sm:$0xff]  ;;  %v60_v40 = vld [vmem:[%s1310_s9 + $0x10] sm:$0xff] }
   0x9   :  { %1005 = vmatmul.mubr.msk.f32.vlgmr.msra.gmra.mrb[2].mxu1 %vm76_vm2, %v40_v5  ;;  %1059 = vset.pattern.permute.xlu1 %v1070_v9  ;;  %v954_v30 = vld [vmem:[%s1309_s2] sm:$0xff]   ;;  %v61_v43 = vld [vmem:[%s1310_s9 + $0x18] sm:$0xff]  ;;  %v42_v52 = vld [vmem:[%s1303_s4 + $0x8] sm:$0xff] }
   0xa   :  { %1016 = vmatprep.mubr.msk.f32.mxu1 %vm333_vm3, %v41_v8  ;;  %315 = vperm.xlu0 %1058, %v45_v10   ;;  %v58_v33 = vld [vmem:[%s1310_s9] sm:$0xff]  ;;  %v43_v53 = vld [vmem:[%s1303_s4 + $0x10] sm:$0xff]  ;;  %v44_v54 = vld [vmem:[%s1303_s4 + $0x18] sm:$0xff] }
   0xb   :  { %325 = vperm.xlu1 %1059, %v47_v11   ;;  %v66_v44 = vld [vmem:[%s1311_s0] sm:$0xf] }
   0xc   :  { %v67_v46 = vunpack.c.l.bf16 %v66_v44 }
   0xe   :  { %320 = vperm.xlu0 %1058, %v46_v12  }
   0xf   :  { %330 = vperm.xlu1 %1059, %v48_v13  }
  0x12   :  { %682 = vperm.xlu0 %1058, %v50_v14  }
  0x13   :  { %687 = vperm.xlu1 %1059, %v51_v15  }
  0x16   :  { %692 = vperm.xlu0 %1058, %v52_v16  }
  0x17   :  { %697 = vperm.xlu1 %1059, %v53_v17  }
  0x1a   :  { %706 = vperm.xlu0 %1058, %v54_v18  }
  0x1b   :  { %711 = vperm.xlu1 %1059, %v55_v19  }
  0x1e   :  { %716 = vperm.xlu0 %1058, %v56_v20  }
  0x1f   :  { %721 = vperm.xlu1 %1059, %v57_v21  }
  0x22   :  { %865 = vperm.xlu0 %1058, %v62_v22  }
  0x23   :  { %870 = vperm.xlu1 %1059, %v63_v23  }
  0x26   :  { %875 = vperm.xlu0 %1058, %v64_v24  }
  0x27   :  { %880 = vperm.xlu1 %1059, %v65_v25  }
  0x89   :  { %v316_v3 = vpop.permute.xlu0 %315 }
  0x8a   :  { %v326_v6 = vpop.permute.xlu1 %325 }
  0x8d   :  { %v321_v4 = vpop.permute.xlu0 %320 }
  0x8e   :  { %v331_v14 = vpop.permute.xlu1 %330 }
  0xd8   :  { %v150_v27 = vpop.f32.mrb[0].mxu1 }
  0xd9   :  { %v1001_v28 = vpop.f32.mrb[1].mxu1  ;;  %1023 = vmatpush3.msra.mxu0 %v150_v27  ;;  %v300_v34 = vmul.f32 %v150_v27, %v150_v27 }
  0xda   :  { %1027 = vmatprep.subr.mxu0 %v1068_v0  ;;  %1025 = vmatmul.mubr.msk.f32.vlgmr.msra.gmra.mrb[2].mxu0 %vm431_vm4, %v49_v26  ;;  %v296_v29 = vpop.f32.mrb[0].mxu0 }
  0xdb   :  { %1029 = vmatprep.mubr.msk.f32.mxu0 %vm1069_vm1, %v1068_v0  ;;  %v1011_v32 = vpop.f32.mrb[1].mxu0  ;;  %v303_v37 = vmul.f32 %v296_v29, %v296_v29 }
  0xdc   :  { %v223_v31 = vpop.f32.mrb[2].mxu1 }
  0xdd   :  { %v301_v35 = vmul.f32 %v223_v31, %v223_v31  ;;  %v1006_v36 = vpop.f32.mrb[3].mxu1  ;;  %1028 = vmatpush3.msra.mxu0 %v223_v31 }
  0xde   :  { %1030 = vmatmul.mubr.msk.f32.vlgmr.msra.gmra.mrb[4].mxu0 %vm431_vm4, %v49_v26  ;;  %1052 = vmatprep.subr.bf16.mxu0 %v954_v30 }
  0xdf   :  { %v302_v38 = vadd.f32 %v301_v35, %v300_v34  ;;  %1054 = vmatpush3.bf16.msra.mxu0 %v954_v30  ;;  %1041 = vmatprep.mubr.msk.f32.mxu0 %vm333_vm3, %v58_v33 }
  0xe1   :  { %v304_v41 = vadd.f32 %v303_v37, %v302_v38 }
  0xe2   :  { %1042 = vmatmul.mubr.msk.f32.vlgmr.msra.gmra.mrb[6].mxu0 %vm333_vm3, %v59_v39 }
  0xe3   :  { %v305_v42 = vmax.f32 %v304_v41, 1e-08  ;;  %1044 = vmatprep.mubr.msk.f32.mxu0 %vm333_vm3, %v60_v40 }
  0xe5   :  { %1060 = vrsqrt.f32 %v305_v42  ;;  %vm308_vm5 = vcmp.eq.f32.partialorder %v305_v42, inf  ;;  %v311_v48 = vand.u32 2147483648, %v305_v42  ;;  %vm310_vm6 = vcmp.eq.f32.partialorder %v305_v42, 0.0 }
  0xe6   :  { %1045 = vmatmul.mubr.msk.f32.gmra.mrb[8].mxu0 %vm333_vm3, %v61_v43 }
  0xef   :  { %v1061_v45 = vpop.eup %1060 }
  0xf0   :  { %v307_v47 = vmul.f32 %v1061_v45, %v305_v42 }
  0xf2   :  { %v309_v49 = vsel %vm308_vm5, %v305_v42, %v307_v47 }
  0xf3   :  { %v312_v50 = vsel %vm310_vm6, %v311_v48, %v309_v49 }
  0xf4   :  { %v1047_v51 = vpack.c.bf16 %v312_v50, %v67_v46 }
  0xf6   :  { %1048 = vmatprep.subr.bf16.mxu1 %v1047_v51 }
  0xf7   :  { %1050 = vmatpush3.bf16.msra.mxu1 %v1047_v51 }
  0xf8   :  { %1032 = vmatprep.subr.mxu1 %v1068_v0 }
  0xfa   :  { %1017 = vmatmul.mubr.msk.f32.vlgmr.msra.gmra.mrb[4].mxu1 %vm333_vm3, %v42_v52 }
  0xfb   :  { %1033 = vmatpush3.msra.mxu1 %v296_v29  ;;  %1019 = vmatprep.mubr.msk.f32.mxu1 %vm333_vm3, %v43_v53 }
  0xfe   :  { %1020 = vmatmul.mubr.msk.f32.gmra.mrb[6].mxu1 %vm333_vm3, %v44_v54 }
  0xff   :  { %1034 = vmatprep.mubr.msk.f32.mxu1 %vm1069_vm1, %v1068_v0 }
 0x102   :  { %1035 = vmatmul.mubr.msk.f32.vlgmr.msra.gmra.mrb[8].mxu1 %vm431_vm4, %v49_v26 }
 0x1ad   :  { %v1261_v55 = vpop.f32.mrb[2].mxu0 }
 0x1ae   :  { %v1026_v56 = vpop.f32.mrb[3].mxu0  ;;  %v728_v57 = vmul.f32 %v1261_v55, %v1261_v55 }
 0x1b1   :  { %v1265_v58 = vpop.f32.mrb[4].mxu0 }
 0x1b2   :  { %v729_v59 = vmul.f32 %v1265_v58, %v1265_v58  ;;  %v1031_v60 = vpop.f32.mrb[5].mxu0 }
 0x1b3   :  { %v688_v60 = vpop.permute.xlu1 %687 }
 0x1b4   :  { %v730_v61 = vadd.f32 %v729_v59, %v728_v57  ;;  %v683_v59 = vpop.permute.xlu0 %682 }
 0x1b5   :  { %v1269_v62 = vpop.f32.mrb[6].mxu0 }
 0x1b6   :  { %v1271_v63 = vpop.f32.mrb[7].mxu0 }
 0x1b9   :  { %v1273_v1 = vpop.f32.mrb[8].mxu0 }
 0x1ba   :  { %v1275_v2 = vpop.f32.mrb[9].mxu0 }
 0x1cd   :  { %v1018_v5 = vpop.f32.mrb[4].mxu1 }
 0x1ce   :  { %v418_v7 = vadd.f32 %v1018_v5, %v321_v4  ;;  %v412_v8 = vpop.f32.mrb[5].mxu1 }
 0x1cf   :  { %v413_v9 = vadd.f32 %v412_v8, %v316_v3  ;;  %v698_v8 = vpop.permute.xlu1 %697 }
 0x1d1   :  { %v645_v10 = vadd.f32 %v418_v7, %v413_v9  ;;  %v1021_v11 = vpop.f32.mrb[6].mxu1 }
 0x1d2   :  { %v422_v12 = vpop.f32.mrb[7].mxu1  ;;  %v428_v15 = vadd.f32 %v1021_v11, %v331_v14 }
 0x1d3   :  { %v423_v13 = vadd.f32 %v422_v12, %v326_v6 }
 0x1d5   :  { %v646_v16 = vadd.f32 %v645_v10, %v423_v13  ;;  %v1277_v17 = vpop.f32.mrb[8].mxu1 }
 0x1d6   :  { %v731_v18 = vmul.f32 %v1277_v17, %v1277_v17  ;;  %v1036_v19 = vpop.f32.mrb[9].mxu1 }
 0x1d7   :  { %v647_v20 = vadd.f32 %v646_v16, %v428_v15 }
 0x1d8   :  { %v732_v21 = vadd.f32 %v731_v18, %v730_v61 }
 0x1d9   :  { %v648_v22 = vrot.slane %v647_v20, 4 }
 0x1da   :  { %vm733_vm7 = vcmp.gt.f32.partialorder %v732_v21, 0.0002 }
 0x1db   :  { %v649_v23 = vadd.f32 %v648_v22, %v647_v20  ;;  %v938_v24 = vsel %vm733_vm7, 1.0, %v1068_v0 }
 0x1dc   :  { %v736_v25 = vrot.slane %v938_v24, 4  ;;  %v743_v26 = vmul.f32 %v938_v24, %v732_v21 }
 0x1dd   :  { %v650_v27 = vrot.slane %v649_v23, 2 }
 0x1de   :  { %v737_v28 = vadd.f32 %v938_v24, %v736_v25  ;;  %v744_v29 = vrot.slane %v743_v26, 4 }
 0x1df   :  { %v651_v30 = vadd.f32 %v650_v27, %v649_v23 }
 0x1e0   :  { %v738_v31 = vrot.slane %v737_v28, 2  ;;  %v745_v34 = vadd.f32 %v744_v29, %v743_v26 }
 0x1e1   :  { %v652_v32 = vrot.slane %v651_v30, 1 }
 0x1e2   :  { %v739_v33 = vadd.f32 %v738_v31, %v737_v28  ;;  %v746_v39 = vrot.slane %v745_v34, 2 }
 0x1e3   :  { %v653_v35 = vadd.f32 %v652_v32, %v651_v30 }
 0x1e4   :  { %v740_v36 = vrot.slane %v739_v33, 1  ;;  %v747_v48 = vadd.f32 %v746_v39, %v745_v34 }
 0x1e5   :  { %v655_v37 = vmul.f32 0.03125, %v653_v35 }
 0x1e6   :  { %v741_v38 = vadd.f32 %v740_v36, %v739_v33  ;;  %v748_v52 = vrot.slane %v747_v48, 1 }
 0x1e7   :  { %v656_v40 = vsub.f32 %v413_v9, %v655_v37  ;;  %v657_v41 = vsub.f32 %v418_v7, %v655_v37  ;;  %v658_v42 = vsub.f32 %v423_v13, %v655_v37  ;;  %v659_v43 = vsub.f32 %v428_v15, %v655_v37  ;;  %v693_v7 = vpop.permute.xlu0 %692  ;;  %v712_v13 = vpop.permute.xlu1 %711 }
 0x1e8   :  { %v742_v0 = vadd.f32 0.0001, %v741_v38  ;;  %v749_v56 = vadd.f32 %v748_v52, %v747_v48 }
 0x1e9   :  { %v660_v44 = vmul.f32 %v656_v40, %v656_v40  ;;  %v661_v45 = vmul.f32 %v657_v41, %v657_v41  ;;  %v662_v46 = vmul.f32 %v658_v42, %v658_v42  ;;  %v663_v49 = vmul.f32 %v659_v43, %v659_v43 }
 0x1ea   :  { %1062 = vrcp.f32 %v742_v0 }
 0x1eb   :  { %v664_v47 = vadd.f32 %v661_v45, %v660_v44  ;;  %v707_v12 = vpop.permute.xlu0 %706  ;;  %v722_v21 = vpop.permute.xlu1 %721 }
 0x1ed   :  { %v665_v50 = vadd.f32 %v664_v47, %v662_v46 }
 0x1ef   :  { %v666_v51 = vadd.f32 %v665_v50, %v663_v49  ;;  %v717_v20 = vpop.permute.xlu0 %716  ;;  %v871_v28 = vpop.permute.xlu1 %870 }
 0x1f1   :  { %v667_v53 = vrot.slane %v666_v51, 4 }
 0x1f3   :  { %v668_v54 = vadd.f32 %v667_v53, %v666_v51 }
 0x1f4   :  { %v1063_v57 = vpop.eup %1062 }
 0x1f5   :  { %v669_v61 = vrot.slane %v668_v54, 2  ;;  %v751_v3 = vmul.f32 %v1063_v57, %v749_v56 }
 0x1f7   :  { %v670_v4 = vadd.f32 %v669_v61, %v668_v54  ;;  %v752_v5 = vadd.f32 0.0001, %v751_v3 }
 0x1f9   :  { %v671_v6 = vrot.slane %v670_v4, 1  ;;  %1064 = vrsqrt.f32 %v752_v5 }
 0x1fb   :  { %v672_v9 = vadd.f32 %v671_v6, %v670_v4 }
 0x1fd   :  { %v673_v10 = vmul.f32 0.03125, %v672_v9 }
 0x1ff   :  { %v674_v11 = vadd.f32 1e-05, %v673_v10 }
 0x201   :  { %1066 = vrsqrt.f32 %v674_v11 }
 0x203   :  { %v1065_v14 = vpop.eup %1064 }
 0x204   :  { %v754_v15 = vmul.f32 %v1065_v14, %v938_v24 }
 0x206   :  { %v755_v16 = vmul.f32 %v754_v15, %v1261_v55  ;;  %v756_v18 = vmul.f32 %v754_v15, %v1265_v58  ;;  %v757_v19 = vmul.f32 %v754_v15, %v1277_v17  ;;  %v866_v58 = vpop.permute.xlu0 %865 }
 0x208   :  { %v970_v22 = vpack.c.bf16 %v756_v18, %v755_v16  ;;  %v912_v23 = vpack.c.bf16 %v757_v19, %v757_v19 }
 0x20a   :  { %971 = vst [vmem:[%s1312_s12] sm:$0xff] %v970_v22   ;;  %948 = vst [vmem:[%s1312_s12 + $0x8] sm:$0xf] %v912_v23 }
 0x20b   :  { %v1067_v25 = vpop.eup %1066 }
 0x20c   :  { %v678_v24 = vmul.f32 %v1067_v25, %v658_v42  ;;  %v677_v26 = vmul.f32 %v1067_v25, %v657_v41  ;;  %v676_v55 = vmul.f32 %v1067_v25, %v656_v40  ;;  %v679_v27 = vmul.f32 %v1067_v25, %v659_v43  ;;  %v876_v40 = vpop.permute.xlu0 %875  ;;  %v881_v41 = vpop.permute.xlu1 %880 }
 0x20e   :  { %v701_v17 = vmul.f32 %v688_v60, %v677_v26  ;;  %v700_v29 = vmul.f32 %v683_v59, %v676_v55  ;;  %v703_v30 = vmul.f32 %v698_v8, %v679_v27  ;;  %v702_v31 = vmul.f32 %v693_v7, %v678_v24 }
 0x210   :  { %v725_v32 = vadd.f32 %v712_v13, %v701_v17  ;;  %v724_v33 = vadd.f32 %v707_v12, %v700_v29  ;;  %v727_v34 = vadd.f32 %v722_v21, %v703_v30  ;;  %v726_v35 = vadd.f32 %v717_v20, %v702_v31 }
 0x212   :  { %v860_v36 = vadd.f32 %v1269_v62, %v725_v32  ;;  %v859_v37 = vadd.f32 %v1271_v63, %v724_v33  ;;  %v862_v38 = vadd.f32 %v1273_v1, %v727_v34  ;;  %v861_v39 = vadd.f32 %v1275_v2, %v726_v35 }
 0x214   :  { %v884_v42 = vadd.f32 %v871_v28, %v860_v36  ;;  %v883_v43 = vadd.f32 %v866_v58, %v859_v37  ;;  %v886_v0 = vadd.f32 %v881_v41, %v862_v38  ;;  %v885_v44 = vadd.f32 %v876_v40, %v861_v39 }
 0x216   :  { %v960_v45 = vpack.c.bf16 %v884_v42, %v883_v43  ;;  %v965_v46 = vpack.c.bf16 %v886_v0, %v885_v44 }
 0x218   :  { %961 = vst [vmem:[%s1313_s11] sm:$0xff] %v960_v45   ;;  %972 = vst [vmem:[%s1313_s11 + $0x8] sm:$0xff] %v965_v46  }

// kernel: gvp_encoder_forward.7
= control target key start
LH: loop header
LB: loop body
LE: loop exit
PB: predicated region body
PF: predicated region fallthrough
CT: control target
= control target key end

     0   :  { %v834_v0 = vmov 0.0   ;;  %vm63_vm0 = vcmask 1040384   ;;  %vm835_vm1 = vmmov 0   ;;  %vm59_vm2 = vcmask 7168   ;;  %s974_s1 = inlined_call_operand.vmem [shape: bf16[3,1,128], index: 1, kind: input, shape index: {}]   ;;  %s975_s2 = inlined_call_operand.vmem [shape: f32[8,1], index: 2, kind: input, shape index: {}]   ;;  %s976_s0 = inlined_call_operand.vmem [shape: bf16[40,128], index: 0, kind: input, shape index: {}]   ;;  %s977_s3 = inlined_call_operand.vmem [shape: f32[16,48], index: 3, kind: input, shape index: {}]   ;;  %s978_s4 = inlined_call_operand.vmem [shape: f32[16,1], index: 4, kind: input, shape index: {}]   ;;  %s979_s6 = inlined_call_operand.vmem [shape: f32[16,1], index: 6, kind: input, shape index: {}]   ;;  %s980_s7 = inlined_call_operand.vmem [shape: f32[16,1], index: 7, kind: input, shape index: {}]   ;;  %s981_s5 = inlined_call_operand.vmem [shape: f32[4,8], index: 5, kind: input, shape index: {}]   ;;  %s982_s9 = inlined_call_operand.vmem [shape: bf16[3,4,128], index: 9, kind: output, shape index: {1}]   ;;  %s983_s8 = inlined_call_operand.vmem [shape: bf16[16,128], index: 8, kind: output, shape index: {0}]  }
   0x1   :  { %764 = vmatprep.subr.mxu0 %v834_v0  ;;  %v51_v1 = vld [vmem:[%s974_s1] sm:$0x1]  ;;  %v711_v2 = vld [vmem:[%s974_s1 + $0x2] sm:$0x1]  ;;  %766 = vmatprep.mubr.msk.f32.mxu0 %vm835_vm1, %v834_v0  ;;  %v710_v5 = vld [vmem:[%s974_s1 + $0x1] sm:$0x1] }
   0x2   :  { %v52_v3 = vunpack.c.l.bf16 %v51_v1  ;;  %769 = vmatprep.subr.mxu1 %v834_v0  ;;  %v31_v4 = vld [vmem:[%s975_s2] sm:$0xff]  ;;  %771 = vmatprep.mubr.msk.f32.mxu1 %vm835_vm1, %v834_v0  ;;  %v58_v6 = vunpack.c.l.bf16 %v711_v2  ;;  %v55_v7 = vunpack.c.l.bf16 %v710_v5  ;;  %v743_v9 = vld [vmem:[%s976_s0 + $0x8] sm:$0xff]   ;;  %vm306_vm3 = vcmask 392192   ;;  %v45_v31 = vld [vmem:[%s976_s0 + $0x10] sm:$0xf] }
   0x3   :  { %v731_v8 = vld [vmem:[%s976_s0] sm:$0xff]   ;;  %v836_v11 = vmov 0   ;;  %v35_v14 = vld [vmem:[%s978_s4 + $0x8] sm:$0xff]  ;;  %vm388_vm4 = vcmask 64512   ;;  %v50_v33 = vunpack.c.l.bf16 %v45_v31  ;;  %vm659_vm7 = vcmask 1043456  }
   0x4   :  { %765 = vmatpush3.msk.msra.mxu0 %vm63_vm0, %v52_v3  ;;  %770 = vmatpush3.msk.msra.mxu1 %vm63_vm0, %v55_v7  ;;  %v32_v10 = vld [vmem:[%s977_s3] sm:$0xff]  ;;  %v38_v15 = vld [vmem:[%s979_s6 + $0x8] sm:$0xff] }
   0x5   :  { %767 = vmatmul.mubr.msk.f32.vlgmr.msra.gmra.mrb[0].mxu0 %vm59_vm2, %v31_v4  ;;  %774 = vmatprep.subr.mxu0 %v834_v0  ;;  %v34_v12 = vld [vmem:[%s978_s4] sm:$0xff]  ;;  %v40_v17 = vld [vmem:[%s980_s7 + $0x8] sm:$0xff] }
   0x6   :  { %772 = vmatmul.mubr.msk.f32.vlgmr.msra.gmra.mrb[0].mxu1 %vm59_vm2, %v31_v4  ;;  %775 = vmatpush3.msk.msra.mxu0 %vm63_vm0, %v58_v6  ;;  %v37_v13 = vld [vmem:[%s979_s6] sm:$0xff]  ;;  %v33_v39 = vld [vmem:[%s977_s3 + $0x8] sm:$0xff] }
   0x7   :  { %776 = vmatprep.mubr.msk.f32.mxu0 %vm835_vm1, %v834_v0  ;;  %794 = vmatprep.subr.mxu0 %v834_v0  ;;  %v39_v16 = vld [vmem:[%s980_s7] sm:$0xff] }
   0x8   :  { %810 = vmatprep.subr.bf16.mxu1 %v731_v8  ;;  %791 = vmatprep.mubr.msk.f32.mxu1 %vm306_vm3, %v32_v10  ;;  %v36_v18 = vld [vmem:[%s981_s5] sm:$0xf] }
   0x9   :  { %777 = vmatmul.mubr.msk.f32.vlgmr.msra.gmra.mrb[2].mxu0 %vm59_vm2, %v31_v4  ;;  %812 = vmatpush3.bf16.msra.mxu1 %v731_v8 }
   0xa   :  { %796 = vmatprep.mubr.msk.f32.mxu0 %vm835_vm1, %v834_v0  ;;  %814 = vmatprep.subr.bf16.mxu1 %v743_v9 }
   0xb   :  { %824 = vset.pattern.permute.xlu0 %v836_v11  ;;  %825 = vset.pattern.permute.xlu1 %v836_v11 }
   0xc   :  { %298 = vperm.xlu0 %824, %v34_v12   ;;  %629 = vperm.xlu1 %825, %v37_v13  }
   0xd   :  { %816 = vmatpush3.bf16.msra.mxu1 %v743_v9 }
  0x10   :  { %303 = vperm.xlu0 %824, %v35_v14   ;;  %634 = vperm.xlu1 %825, %v38_v15  }
  0x14   :  { %641 = vperm.xlu0 %824, %v39_v16   ;;  %646 = vperm.xlu1 %825, %v40_v17  }
  0x8b   :  { %v299_v62 = vpop.permute.xlu0 %298 }
  0x8f   :  { %v304_v4 = vpop.permute.xlu0 %303 }
  0xd8   :  { %v133_v19 = vpop.f32.mrb[0].mxu0 }
  0xd9   :  { %v283_v20 = vmul.f32 %v133_v19, %v133_v19  ;;  %v768_v21 = vpop.f32.mrb[1].mxu0  ;;  %v206_v22 = vpop.f32.mrb[0].mxu1  ;;  %795 = vmatpush3.msra.mxu0 %v133_v19 }
  0xda   :  { %v284_v23 = vmul.f32 %v206_v22, %v206_v22  ;;  %797 = vmatmul.mubr.msk.f32.vlgmr.msra.gmra.mrb[4].mxu0 %vm388_vm4, %v36_v18  ;;  %v773_v24 = vpop.f32.mrb[1].mxu1  ;;  %799 = vmatprep.subr.mxu0 %v834_v0 }
  0xdb   :  { %800 = vmatpush3.msra.mxu0 %v206_v22  ;;  %801 = vmatprep.mubr.msk.f32.mxu0 %vm835_vm1, %v834_v0 }
  0xdc   :  { %v285_v25 = vadd.f32 %v284_v23, %v283_v20  ;;  %v279_v26 = vpop.f32.mrb[2].mxu0  ;;  %804 = vmatprep.subr.mxu0 %v834_v0 }
  0xdd   :  { %v286_v27 = vmul.f32 %v279_v26, %v279_v26  ;;  %v778_v28 = vpop.f32.mrb[3].mxu0 }
  0xde   :  { %802 = vmatmul.mubr.msk.f32.vlgmr.msra.gmra.mrb[6].mxu0 %vm388_vm4, %v36_v18 }
  0xdf   :  { %v287_v29 = vadd.f32 %v286_v27, %v285_v25  ;;  %805 = vmatpush3.msra.mxu0 %v279_v26  ;;  %806 = vmatprep.mubr.msk.f32.mxu0 %vm835_vm1, %v834_v0 }
  0xe1   :  { %v288_v30 = vmax.f32 %v287_v29, 1e-08 }
  0xe2   :  { %807 = vmatmul.mubr.msk.f32.vlgmr.msra.gmra.mrb[8].mxu0 %vm388_vm4, %v36_v18 }
  0xe3   :  { %826 = vrsqrt.f32 %v288_v30  ;;  %vm291_vm5 = vcmp.eq.f32.partialorder %v288_v30, inf  ;;  %v294_v35 = vand.u32 2147483648, %v288_v30  ;;  %vm293_vm6 = vcmp.eq.f32.partialorder %v288_v30, 0.0 }
  0xed   :  { %v827_v32 = vpop.eup %826 }
  0xee   :  { %v290_v34 = vmul.f32 %v827_v32, %v288_v30 }
  0xf0   :  { %v292_v36 = vsel %vm291_vm5, %v288_v30, %v290_v34 }
  0xf1   :  { %v295_v37 = vsel %vm293_vm6, %v294_v35, %v292_v36 }
  0xf2   :  { %v817_v38 = vpack.c.bf16 %v295_v37, %v50_v33 }
  0xf4   :  { %818 = vmatprep.subr.bf16.mxu1 %v817_v38 }
  0xf5   :  { %820 = vmatpush3.bf16.msra.mxu1 %v817_v38 }
  0xf8   :  { %792 = vmatmul.mubr.msk.f32.vlgmr.msra.gmra.mrb[2].mxu1 %vm306_vm3, %v33_v39 }
 0x1ad   :  { %v458_v40 = vpop.f32.mrb[4].mxu0 }
 0x1ae   :  { %v798_v41 = vpop.f32.mrb[5].mxu0  ;;  %v651_v42 = vmul.f32 %v458_v40, %v458_v40 }
 0x1b1   :  { %v528_v43 = vpop.f32.mrb[6].mxu0 }
 0x1b2   :  { %v652_v44 = vmul.f32 %v528_v43, %v528_v43  ;;  %v803_v45 = vpop.f32.mrb[7].mxu0 }
 0x1b4   :  { %v653_v46 = vadd.f32 %v652_v44, %v651_v42  ;;  %v630_v42 = vpop.permute.xlu1 %629 }
 0x1b5   :  { %v598_v47 = vpop.f32.mrb[8].mxu0 }
 0x1b6   :  { %v654_v48 = vmul.f32 %v598_v47, %v598_v47  ;;  %v808_v49 = vpop.f32.mrb[9].mxu0 }
 0x1b7   :  { %v642_v49 = vpop.permute.xlu0 %641 }
 0x1b8   :  { %v655_v50 = vadd.f32 %v654_v48, %v653_v46 }
 0x1ba   :  { %vm656_vm8 = vcmp.gt.f32.partialorder %v655_v50, 0.0002 }
 0x1bb   :  { %v723_v51 = vsel %vm656_vm8, 1.0, %v834_v0 }
 0x1bc   :  { %v660_v52 = vsel %vm659_vm7, %v723_v51, 0.0  ;;  %v668_v53 = vmul.f32 %v723_v51, %v655_v50 }
 0x1bd   :  { %v661_v54 = vrot.slane %v660_v52, 4 }
 0x1be   :  { %v669_v55 = vsel %vm659_vm7, %v668_v53, 0.0 }
 0x1bf   :  { %v662_v56 = vadd.f32 %v661_v54, %v660_v52  ;;  %v670_v57 = vrot.slane %v669_v55, 4 }
 0x1c1   :  { %v663_v58 = vrot.slane %v662_v56, 2  ;;  %v671_v59 = vadd.f32 %v670_v57, %v669_v55 }
 0x1c3   :  { %v664_v60 = vadd.f32 %v663_v58, %v662_v56  ;;  %v672_v63 = vrot.slane %v671_v59, 2 }
 0x1c5   :  { %v665_v61 = vrot.slane %v664_v60, 1  ;;  %v673_v3 = vadd.f32 %v672_v63, %v671_v59 }
 0x1c7   :  { %v666_v1 = vadd.f32 %v665_v61, %v664_v60  ;;  %v674_v8 = vrot.slane %v673_v3, 1 }
 0x1c9   :  { %v667_v2 = vadd.f32 0.0001, %v666_v1  ;;  %v675_v11 = vadd.f32 %v674_v8, %v673_v3 }
 0x1cb   :  { %828 = vrcp.f32 %v667_v2  ;;  %v793_v5 = vpop.f32.mrb[2].mxu1 }
 0x1cc   :  { %v385_v6 = vadd.f32 %v793_v5, %v304_v4  ;;  %v379_v0 = vpop.f32.mrb[3].mxu1 }
 0x1cd   :  { %v380_v7 = vadd.f32 %v379_v0, %v299_v62 }
 0x1cf   :  { %v602_v9 = vadd.f32 %v385_v6, %v380_v7 }
 0x1d1   :  { %v603_v10 = vrot.slane %v602_v9, 4 }
 0x1d3   :  { %v604_v12 = vadd.f32 %v603_v10, %v602_v9 }
 0x1d5   :  { %v829_v13 = vpop.eup %828  ;;  %v605_v14 = vrot.slane %v604_v12, 2 }
 0x1d6   :  { %v677_v15 = vmul.f32 %v829_v13, %v675_v11 }
 0x1d7   :  { %v606_v16 = vadd.f32 %v605_v14, %v604_v12 }
 0x1d8   :  { %v678_v17 = vadd.f32 0.0001, %v677_v15 }
 0x1d9   :  { %v607_v18 = vrot.slane %v606_v16, 1 }
 0x1da   :  { %830 = vrsqrt.f32 %v678_v17 }
 0x1db   :  { %v608_v19 = vadd.f32 %v607_v18, %v606_v16 }
 0x1dd   :  { %v610_v20 = vmul.f32 0.0625, %v608_v19 }
 0x1df   :  { %v611_v21 = vsub.f32 %v380_v7, %v610_v20  ;;  %v612_v22 = vsub.f32 %v385_v6, %v610_v20 }
 0x1e1   :  { %v613_v23 = vmul.f32 %v611_v21, %v611_v21  ;;  %v614_v24 = vmul.f32 %v612_v22, %v612_v22 }
 0x1e3   :  { %v615_v25 = vadd.f32 %v614_v24, %v613_v23 }
 0x1e4   :  { %v831_v26 = vpop.eup %830 }
 0x1e5   :  { %v680_v27 = vmul.f32 %v831_v26, %v723_v51  ;;  %v616_v28 = vrot.slane %v615_v25, 4 }
 0x1e7   :  { %v681_v29 = vmul.f32 %v680_v27, %v458_v40  ;;  %v682_v30 = vmul.f32 %v680_v27, %v528_v43  ;;  %v683_v31 = vmul.f32 %v680_v27, %v598_v47  ;;  %v617_v32 = vadd.f32 %v616_v28, %v615_v25  ;;  %v635_v43 = vpop.permute.xlu1 %634 }
 0x1e9   :  { %v694_v33 = vpack.c.bf16 %v681_v29, %v681_v29  ;;  %v696_v34 = vpack.c.bf16 %v682_v30, %v682_v30  ;;  %v699_v35 = vpack.c.bf16 %v683_v31, %v683_v31  ;;  %v618_v36 = vrot.slane %v617_v32, 2 }
 0x1eb   :  { %695 = vst [vmem:[%s982_s9] sm:$0x3] %v694_v33  ;;  %726 = vst [vmem:[%s982_s9 + $0x2] sm:$0x3] %v696_v34  ;;  %v619_v37 = vadd.f32 %v618_v36, %v617_v32  ;;  %v647_v50 = vpop.permute.xlu1 %646 }
 0x1ec   :  { %727 = vst [vmem:[%s982_s9 + $0x4] sm:$0x3] %v699_v35 }
 0x1ed   :  { %v620_v38 = vrot.slane %v619_v37, 1 }
 0x1ef   :  { %v621_v39 = vadd.f32 %v620_v38, %v619_v37 }
 0x1f1   :  { %v622_v40 = vmul.f32 0.0625, %v621_v39 }
 0x1f3   :  { %v623_v41 = vadd.f32 1e-05, %v622_v40 }
 0x1f5   :  { %832 = vrsqrt.f32 %v623_v41 }
 0x1ff   :  { %v833_v44 = vpop.eup %832 }
 0x200   :  { %v625_v45 = vmul.f32 %v833_v44, %v611_v21  ;;  %v626_v46 = vmul.f32 %v833_v44, %v612_v22 }
 0x202   :  { %v637_v47 = vmul.f32 %v630_v42, %v625_v45  ;;  %v638_v48 = vmul.f32 %v635_v43, %v626_v46 }
 0x204   :  { %v649_v51 = vadd.f32 %v642_v49, %v637_v47  ;;  %v650_v52 = vadd.f32 %v647_v50, %v638_v48 }
 0x206   :  { %v741_v53 = vpack.c.bf16 %v650_v52, %v649_v51 }
 0x208   :  { %742 = vst [vmem:[%s983_s8] sm:$0xff] %v741_v53  }

// kernel: gvp_encoder_forward.8
= control target key start
LH: loop header
LB: loop body
LE: loop exit
PB: predicated region body
PF: predicated region fallthrough
CT: control target
= control target key end

     0   :  { %v2833_v0 = vmov 0.0|0.0   ;;  %vm2834_vm0 = vmmov 0   ;;  %v2835_v4 = vmov 0.0   ;;  %vm155_vm1 = vcmask 1043456   ;;  %s3247_s1 = inlined_call_operand.vmem [shape: bf16[3,20,128], index: 1, kind: input, shape index: {}]   ;;  %s3248_s2 = inlined_call_operand.vmem [shape: f32[24,20], index: 2, kind: input, shape index: {}]   ;;  %s3249_s0 = inlined_call_operand.vmem [shape: bf16[80,128], index: 0, kind: input, shape index: {}]   ;;  %s3250_s3 = inlined_call_operand.vmem [shape: f32[32,104], index: 3, kind: input, shape index: {}]   ;;  %s3251_s4 = inlined_call_operand.vmem [shape: f32[32,1], index: 4, kind: input, shape index: {}]   ;;  %s3252_s7 = inlined_call_operand.vmem [shape: f32[8,1], index: 7, kind: input, shape index: {}]   ;;  %s3253_s10 = inlined_call_operand.vmem [shape: f32[32,1], index: 10, kind: input, shape index: {}]   ;;  %s3254_s13 = inlined_call_operand.vmem [shape: f32[8,1], index: 13, kind: input, shape index: {}]   ;;  %s3255_s16 = inlined_call_operand.vmem [shape: f32[32,1], index: 16, kind: input, shape index: {}]   ;;  %s3256_s19 = inlined_call_operand.vmem [shape: f32[8,1], index: 19, kind: input, shape index: {}]   ;;  %s3257_s5 = inlined_call_operand.vmem [shape: f32[8,24], index: 5, kind: input, shape index: {}]   ;;  %s3258_s6 = inlined_call_operand.vmem [shape: f32[8,32], index: 6, kind: input, shape index: {}]   ;;  %s3259_s8 = inlined_call_operand.vmem [shape: f32[8,8], index: 8, kind: input, shape index: {}]   ;;  %s3260_s9 = inlined_call_operand.vmem [shape: f32[32,40], index: 9, kind: input, shape index: {}]   ;;  %s3261_s11 = inlined_call_operand.vmem [shape: f32[8,8], index: 11, kind: input, shape index: {}]   ;;  %s3262_s12 = inlined_call_operand.vmem [shape: f32[8,32], index: 12, kind: input, shape index: {}]   ;;  %s3263_s14 = inlined_call_operand.vmem [shape: f32[8,8], index: 14, kind: input, shape index: {}]   ;;  %s3264_s15 = inlined_call_operand.vmem [shape: f32[32,40], index: 15, kind: input, shape index: {}]   ;;  %s3265_s17 = inlined_call_operand.vmem [shape: f32[8,8], index: 17, kind: input, shape index: {}]   ;;  %s3266_s20 = inlined_call_operand.vmem [shape: bf16[32,128], index: 20, kind: output, shape index: {0}]   ;;  %s3267_s18 = inlined_call_operand.vmem [shape: f32[8,32], index: 18, kind: input, shape index: {}]   ;;  %s3268_s21 = inlined_call_operand.vmem [shape: bf16[3,8,128], index: 21, kind: output, shape index: {1}]  }
   0x1   :  { %3274 = sst [smem:[#allocation2_spill]] %s3247_s1  ;;  %2695 = vmatprep.subr.bf16.mxu0 %v2833_v0  ;;  %2698 = vmatprep.subr.bf16.mxu1 %v2833_v0  ;;  %vm145_vm2 = vcmask 162816   ;;  %vm464_vm3 = vcmask 850944   ;;  %v2836_v20 = vmov 0   ;;  %v86_v26 = vld [vmem:[%s3253_s10] sm:$0xff]  ;;  %v87_v27 = vld [vmem:[%s3253_s10 + $0x8] sm:$0xff] }
   0x2   :  { %3275 = sst [smem:[#allocation3_spill]] %s3248_s2  ;;  %s3280_s26 = sld [smem:[#allocation2_spill]]  ;;  %2472 = vmatprep.mubr.msk.f32.mxu0 %vm2834_vm0, %v2835_v4  ;;  %2487 = vmatprep.mubr.msk.f32.mxu1 %vm2834_vm0, %v2835_v4  ;;  %v88_v28 = vld [vmem:[%s3253_s10 + $0x10] sm:$0xff]  ;;  %v89_v29 = vld [vmem:[%s3253_s10 + $0x18] sm:$0xff]  ;;  %v92_v30 = vld [vmem:[%s3254_s13] sm:$0xff]  ;;  %vm562_vm4 = vcmask 195584  }
   0x3   :  { %3276 = sst [smem:[#allocation4_spill]] %s3249_s0  ;;  %s3281_s22 = sld [smem:[#allocation3_spill]]  ;;  %2776 = vset.pattern.permute.xlu0 %v2836_v20  ;;  %2777 = vset.pattern.permute.xlu1 %v2836_v20  ;;  %v98_v31 = vld [vmem:[%s3255_s16] sm:$0xff]  ;;  %v99_v32 = vld [vmem:[%s3255_s16 + $0x8] sm:$0xff]  ;;  %v100_v33 = vld [vmem:[%s3255_s16 + $0x10] sm:$0xff]  ;;  %vm805_vm11 = vcmask 261120  }
   0x4   :  { %3277 = sst [smem:[#allocation5_spill]] %s3250_s3  ;;  %s3282_s1 = sld [smem:[#allocation4_spill]]  ;;  %v101_v34 = vld [vmem:[%s3255_s16 + $0x18] sm:$0xff]  ;;  %v104_v35 = vld [vmem:[%s3256_s19] sm:$0xff]  ;;  %vm892_vm12 = vcmask 64512   ;;  %vm1139_vm13 = vcmask 326656  }
   0x5   :  { %3278 = sst [smem:[#allocation6_spill]] %s3251_s4  ;;  %v3081_v55 = vld [vmem:[%s3257_s5] sm:$0xff] }
   0x6   :  { %3279 = sst [smem:[#allocation7_spill]] %s3252_s7  ;;  %s3284_s29 = sld [smem:[#allocation6_spill]] }
   0x7   :  { %s3285_s0 = sld [smem:[#allocation7_spill]] }
   0x8   :  { %v2334_v1 = vld [vmem:[%s3280_s26] sm:$0xff]   ;;  %v2778_v2 = vld [vmem:[%s3280_s26 + $0xc] sm:$0xff]   ;;  %v127_v3 = vld [vmem:[%s3280_s26 + $0x8] sm:$0x3] }
   0x9   :  { %2697 = vmatpush3.bf16.msra.mxu0 %v2334_v1  ;;  %v130_v5 = vunpack.c.l.bf16 %v127_v3  ;;  %v2246_v6 = vld [vmem:[%s3280_s26 + $0x14] sm:$0x3]  ;;  %2700 = vmatpush3.bf16.msra.mxu1 %v2778_v2  ;;  %v67_v7 = vld [vmem:[%s3281_s22] sm:$0xff]  ;;  %v2360_v9 = vld [vmem:[%s3280_s26 + $0x18] sm:$0xff]  }
   0xa   :  { %2470 = vmatprep.subr.mxu0 %v2835_v4  ;;  %v137_v8 = vunpack.c.l.bf16 %v2246_v6  ;;  %2485 = vmatprep.subr.mxu1 %v2835_v4  ;;  %v2249_v10 = vld [vmem:[%s3280_s26 + $0x20] sm:$0x3]  ;;  %v68_v11 = vld [vmem:[%s3281_s22 + $0x8] sm:$0xff]  ;;  %v69_v13 = vld [vmem:[%s3281_s22 + $0x10] sm:$0xff]  ;;  %s3283_s26 = sld [smem:[#allocation5_spill]] }
   0xb   :  { %v144_v12 = vunpack.c.l.bf16 %v2249_v10  ;;  %v2314_v14 = vld [vmem:[%s3282_s1] sm:$0xff]   ;;  %v2356_v15 = vld [vmem:[%s3282_s1 + $0x8] sm:$0xff]   ;;  %v2357_v16 = vld [vmem:[%s3282_s1 + $0x10] sm:$0xff]  }
   0xc   :  { %v2358_v17 = vld [vmem:[%s3282_s1 + $0x18] sm:$0xff]   ;;  %v2359_v18 = vld [vmem:[%s3282_s1 + $0x20] sm:$0xff]   ;;  %v76_v22 = vld [vmem:[%s3284_s29 + $0x10] sm:$0xff] }
   0xd   :  { %2471 = vmatpush3.msk.msra.mxu0 %vm155_vm1, %v130_v5  ;;  %2486 = vmatpush3.msk.msra.mxu1 %vm155_vm1, %v137_v8  ;;  %v74_v21 = vld [vmem:[%s3284_s29] sm:$0xff]  ;;  %v75_v23 = vld [vmem:[%s3284_s29 + $0x8] sm:$0xff]  ;;  %v77_v24 = vld [vmem:[%s3284_s29 + $0x18] sm:$0xff] }
   0xe   :  { %2473 = vmatmul.mubr.msk.f32.vlgmr.msra.gmra.mrb[0].mxu0 %vm145_vm2, %v67_v7  ;;  %2701 = vmatprep.subr.bf16.mxu0 %v2833_v0  ;;  %v80_v25 = vld [vmem:[%s3285_s0] sm:$0xff] }
   0xf   :  { %2475 = vmatprep.mubr.msk.f32.mxu0 %vm2834_vm0, %v2835_v4  ;;  %2488 = vmatmul.mubr.msk.f32.vlgmr.msra.gmra.mrb[0].mxu1 %vm145_vm2, %v67_v7 }
  0x10   :  { %2703 = vmatpush3.bf16.msra.mxu0 %v2360_v9  ;;  %2490 = vmatprep.mubr.msk.f32.mxu1 %vm2834_vm0, %v2835_v4  ;;  %v70_v19 = vld [vmem:[%s3283_s26] sm:$0xff] }
  0x11   :  { %2500 = vmatprep.subr.mxu0 %v2835_v4  ;;  %2705 = vmatprep.subr.bf16.mxu1 %v2314_v14 }
  0x12   :  { %2476 = vmatmul.mubr.msk.f32.gmra.mrb[2].mxu0 %vm145_vm2, %v68_v11  ;;  %2707 = vmatpush3.bf16.msra.mxu1 %v2314_v14 }
  0x13   :  { %2478 = vmatprep.mubr.msk.f32.mxu0 %vm2834_vm0, %v2835_v4  ;;  %2491 = vmatmul.mubr.msk.f32.gmra.mrb[2].mxu1 %vm145_vm2, %v68_v11 }
  0x14   :  { %2501 = vmatpush3.msk.msra.mxu0 %vm155_vm1, %v144_v12  ;;  %2493 = vmatprep.mubr.msk.f32.mxu1 %vm2834_vm0, %v2835_v4 }
  0x15   :  { %2728 = vmatprep.subr.bf16.mxu0 %v2833_v0  ;;  %2709 = vmatprep.subr.bf16.mxu1 %v2356_v15 }
  0x16   :  { %2479 = vmatmul.mubr.msk.f32.gmra.mrb[4].mxu0 %vm145_vm2, %v69_v13  ;;  %2711 = vmatpush3.bf16.msra.mxu1 %v2356_v15 }
  0x17   :  { %2502 = vmatprep.mubr.msk.f32.mxu0 %vm2834_vm0, %v2835_v4  ;;  %2494 = vmatmul.mubr.msk.f32.gmra.mrb[4].mxu1 %vm145_vm2, %v69_v13 }
  0x18   :  { %2713 = vmatprep.subr.bf16.mxu1 %v2357_v16  ;;  %2537 = vmatprep.mubr.msk.f32.mxu1 %vm464_vm3, %v70_v19 }
  0x19   :  { %446 = vperm.xlu0 %2776, %v74_v21   ;;  %456 = vperm.xlu1 %2777, %v76_v22  }
  0x1a   :  { %2503 = vmatmul.mubr.msk.f32.vlgmr.msra.gmra.mrb[6].mxu0 %vm145_vm2, %v67_v7  ;;  %2715 = vmatpush3.bf16.msra.mxu1 %v2357_v16 }
  0x1b   :  { %2505 = vmatprep.mubr.msk.f32.mxu0 %vm2834_vm0, %v2835_v4  ;;  %2717 = vmatprep.subr.bf16.mxu1 %v2358_v17 }
  0x1d   :  { %451 = vperm.xlu0 %2776, %v75_v23   ;;  %461 = vperm.xlu1 %2777, %v77_v24  }
  0x1e   :  { %2506 = vmatmul.mubr.msk.f32.gmra.mrb[8].mxu0 %vm145_vm2, %v68_v11  ;;  %2719 = vmatpush3.bf16.msra.mxu1 %v2358_v17 }
  0x1f   :  { %2508 = vmatprep.mubr.msk.f32.mxu0 %vm2834_vm0, %v2835_v4  ;;  %2721 = vmatprep.subr.bf16.mxu1 %v2359_v18 }
  0x21   :  { %802 = vperm.xlu0 %2776, %v80_v25   ;;  %1121 = vperm.xlu1 %2777, %v86_v26  }
  0x22   :  { %2509 = vmatmul.mubr.msk.f32.gmra.mrb[10].mxu0 %vm145_vm2, %v69_v13  ;;  %2723 = vmatpush3.bf16.msra.mxu1 %v2359_v18 }
  0x23   :  { %2549 = vmatprep.mubr.msk.f32.mxu0 %vm2834_vm0, %v2835_v4 }
  0x25   :  { %1126 = vperm.xlu0 %2776, %v87_v27   ;;  %1131 = vperm.xlu1 %2777, %v88_v28  }
  0x29   :  { %1136 = vperm.xlu0 %2776, %v89_v29   ;;  %1476 = vperm.xlu1 %2777, %v92_v30   ;;  %v71_v30 = vld [vmem:[%s3283_s26 + $0x8] sm:$0xff] }
  0x2d   :  { %1793 = vperm.xlu0 %2776, %v98_v31   ;;  %1798 = vperm.xlu1 %2777, %v99_v32   ;;  %v72_v31 = vld [vmem:[%s3283_s26 + $0x10] sm:$0xff]  ;;  %v73_v32 = vld [vmem:[%s3283_s26 + $0x18] sm:$0xff] }
  0x31   :  { %1803 = vperm.xlu0 %2776, %v100_v33   ;;  %1808 = vperm.xlu1 %2777, %v101_v34  }
  0x35   :  { %2123 = vperm.xlu0 %2776, %v104_v35  }
  0xe1   :  { %v225_v36 = vpop.f32.mrb[0].mxu0 }
  0xe2   :  { %v405_v37 = vmul.f32 %v225_v36, %v225_v36  ;;  %v2474_v38 = vpop.f32.mrb[1].mxu0  ;;  %v308_v39 = vpop.f32.mrb[0].mxu1 }
  0xe3   :  { %v408_v40 = vmul.f32 %v308_v39, %v308_v39  ;;  %v2489_v41 = vpop.f32.mrb[1].mxu1  ;;  %v457_v38 = vpop.permute.xlu1 %456 }
  0xe5   :  { %v230_v42 = vpop.f32.mrb[2].mxu0  ;;  %v411_v43 = vadd.f32 %v408_v40, %v405_v37  ;;  %v447_v37 = vpop.permute.xlu0 %446 }
  0xe6   :  { %v406_v44 = vmul.f32 %v230_v42, %v230_v42  ;;  %v2729_v45 = vpack.c.bf16 %v230_v42, %v225_v36  ;;  %v2477_v46 = vpop.f32.mrb[3].mxu0  ;;  %v313_v47 = vpop.f32.mrb[2].mxu1 }
  0xe7   :  { %v409_v48 = vmul.f32 %v313_v47, %v313_v47  ;;  %v2732_v49 = vpack.c.bf16 %v313_v47, %v308_v39  ;;  %v2492_v50 = vpop.f32.mrb[3].mxu1  ;;  %v462_v46 = vpop.permute.xlu1 %461 }
  0xe8   :  { %2730 = vmatpush3.bf16.msra.mxu0 %v2729_v45 }
  0xe9   :  { %v235_v51 = vpop.f32.mrb[4].mxu0  ;;  %2547 = vmatprep.subr.mxu0 %v2835_v4  ;;  %v412_v52 = vadd.f32 %v409_v48, %v406_v44  ;;  %v452_v39 = vpop.permute.xlu0 %451 }
  0xea   :  { %v407_v53 = vmul.f32 %v235_v51, %v235_v51  ;;  %v2480_v54 = vpop.f32.mrb[5].mxu0  ;;  %v318_v56 = vpop.f32.mrb[4].mxu1 }
  0xeb   :  { %v410_v57 = vmul.f32 %v318_v56, %v318_v56  ;;  %v2495_v58 = vpop.f32.mrb[5].mxu1 }
  0xec   :  { %2548 = vmatpush3.msra.mxu0 %v235_v51 }
  0xed   :  { %v391_v59 = vpop.f32.mrb[6].mxu0  ;;  %2731 = vmatprep.subr.bf16.mxu0 %v2833_v0  ;;  %2550 = vmatmul.mubr.msk.f32.vlgmr.msra.gmra.mrb[12].mxu0 %vm562_vm4, %v3081_v55  ;;  %v413_v60 = vadd.f32 %v410_v57, %v407_v53 }
  0xee   :  { %v414_v61 = vmul.f32 %v391_v59, %v391_v59  ;;  %v2504_v62 = vpop.f32.mrb[7].mxu0  ;;  %2733 = vmatpush3.bf16.msra.mxu0 %v2732_v49  ;;  %2558 = vmatprep.mubr.msk.f32.mxu0 %vm2834_vm0, %v2835_v4 }
  0xef   :  { %2556 = vmatprep.subr.mxu0 %v2835_v4 }
  0xf0   :  { %v417_v63 = vadd.f32 %v414_v61, %v411_v43 }
  0xf1   :  { %v396_v1 = vpop.f32.mrb[8].mxu0 }
  0xf2   :  { %v420_v2 = vmax.f32 %v417_v63, 1e-08  ;;  %v415_v3 = vmul.f32 %v396_v1, %v396_v1  ;;  %v2735_v5 = vpack.c.bf16 %v396_v1, %v391_v59  ;;  %v2507_v6 = vpop.f32.mrb[9].mxu0  ;;  %2557 = vmatpush3.msra.mxu0 %v318_v56 }
  0xf3   :  { %2559 = vmatmul.mubr.msk.f32.vlgmr.msra.gmra.mrb[14].mxu0 %vm562_vm4, %v3081_v55  ;;  %2737 = vmatprep.subr.bf16.mxu0 %v2833_v0 }
  0xf4   :  { %2779 = vrsqrt.f32 %v420_v2  ;;  %v418_v7 = vadd.f32 %v415_v3, %v412_v52  ;;  %2578 = vmatprep.mubr.msk.f32.mxu0 %vm2834_vm0, %v2835_v4  ;;  %vm425_vm5 = vcmp.eq.f32.partialorder %v420_v2, inf  ;;  %v428_v19 = vand.u32 2147483648, %v420_v2 }
  0xf5   :  { %v401_v8 = vpop.f32.mrb[10].mxu0  ;;  %vm427_vm7 = vcmp.eq.f32.partialorder %v420_v2, 0.0 }
  0xf6   :  { %v421_v9 = vmax.f32 %v418_v7, 1e-08  ;;  %v416_v10 = vmul.f32 %v401_v8, %v401_v8  ;;  %v2510_v11 = vpop.f32.mrb[11].mxu0 }
  0xf7   :  { %v79_v11 = vld [vmem:[%s3258_s6] sm:$0xff] }
  0xf8   :  { %2781 = vrsqrt.f32 %v421_v9  ;;  %v419_v12 = vadd.f32 %v416_v10, %v413_v60  ;;  %vm432_vm6 = vcmp.eq.f32.partialorder %v421_v9, inf  ;;  %v435_v20 = vand.u32 2147483648, %v421_v9 }
  0xf9   :  { %vm434_vm8 = vcmp.eq.f32.partialorder %v421_v9, 0.0 }
  0xfa   :  { %v422_v13 = vmax.f32 %v419_v12, 1e-08 }
  0xfc   :  { %2783 = vrsqrt.f32 %v422_v13  ;;  %vm439_vm9 = vcmp.eq.f32.partialorder %v422_v13, inf  ;;  %v442_v27 = vand.u32 2147483648, %v422_v13  ;;  %vm441_vm10 = vcmp.eq.f32.partialorder %v422_v13, 0.0 }
  0xfe   :  { %v2780_v14 = vpop.eup %2779 }
  0xff   :  { %v424_v15 = vmul.f32 %v2780_v14, %v420_v2  ;;  %v803_v14 = vpop.permute.xlu0 %802 }
 0x101   :  { %v426_v17 = vsel %vm425_vm5, %v420_v2, %v424_v15 }
 0x102   :  { %v2782_v16 = vpop.eup %2781  ;;  %v429_v23 = vsel %vm427_vm7, %v428_v19, %v426_v17 }
 0x103   :  { %v431_v18 = vmul.f32 %v2782_v16, %v421_v9 }
 0x105   :  { %v433_v21 = vsel %vm432_vm6, %v421_v9, %v431_v18 }
 0x106   :  { %v2784_v22 = vpop.eup %2783  ;;  %v436_v24 = vsel %vm434_vm8, %v435_v20, %v433_v21 }
 0x107   :  { %v2724_v25 = vpack.c.bf16 %v436_v24, %v429_v23  ;;  %v438_v26 = vmul.f32 %v2784_v22, %v422_v13 }
 0x109   :  { %2725 = vmatprep.subr.bf16.mxu1 %v2724_v25  ;;  %v440_v28 = vsel %vm439_vm9, %v422_v13, %v438_v26  ;;  %v82_v26 = vld [vmem:[%s3260_s9] sm:$0xff] }
 0x10a   :  { %2727 = vmatpush3.bf16.msra.mxu1 %v2724_v25  ;;  %v443_v29 = vsel %vm441_vm10, %v442_v27, %v440_v28  ;;  %v81_v25 = vld [vmem:[%s3259_s8] sm:$0xff] }
 0x10b   :  { %2535 = vmatprep.subr.mxu1 %v443_v29  ;;  %v90_v27 = vld [vmem:[%s3261_s11] sm:$0xff] }
 0x10e   :  { %2536 = vmatpush3.msra.mxu1 %v443_v29 }
 0x10f   :  { %2538 = vmatmul.mubr.msk.f32.vlgmr.msra.gmra.mrb[6].mxu1 %vm464_vm3, %v71_v30  ;;  %2734 = vmatprep.subr.bf16.mxu1 %v2833_v0 }
 0x110   :  { %2736 = vmatpush3.bf16.msra.mxu1 %v2735_v5  ;;  %2540 = vmatprep.mubr.msk.f32.mxu1 %vm464_vm3, %v72_v31 }
 0x111   :  { %2565 = vmatprep.subr.mxu1 %v2835_v4 }
 0x113   :  { %2541 = vmatmul.mubr.msk.f32.gmra.mrb[8].mxu1 %vm464_vm3, %v73_v32 }
 0x114   :  { %2566 = vmatpush3.msra.mxu1 %v401_v8  ;;  %2567 = vmatprep.mubr.msk.f32.mxu1 %vm2834_vm0, %v2835_v4 }
 0x115   :  { %2581 = vmatprep.subr.mxu1 %v2835_v4 }
 0x117   :  { %2568 = vmatmul.mubr.msk.f32.vlgmr.msra.gmra.mrb[10].mxu1 %vm562_vm4, %v3081_v55 }
 0x118   :  { %2583 = vmatprep.mubr.msk.f32.mxu1 %vm2834_vm0, %v2835_v4 }
 0x1c0   :  { %v3115_v33 = vpop.f32.mrb[12].mxu0 }
 0x1c1   :  { %v2551_v34 = vpop.f32.mrb[13].mxu0 }
 0x1c6   :  { %v3117_v35 = vpop.f32.mrb[14].mxu0 }
 0x1c7   :  { %v2560_v36 = vpop.f32.mrb[15].mxu0 }
 0x1e2   :  { %v2539_v40 = vpop.f32.mrb[6].mxu1 }
 0x1e3   :  { %v549_v41 = vadd.f32 %v2539_v40, %v452_v39  ;;  %v543_v42 = vpop.f32.mrb[7].mxu1 }
 0x1e4   :  { %v544_v43 = vadd.f32 %v543_v42, %v447_v37 }
 0x1e5   :  { %v2270_v44 = vmul.f32 -1.442695, %v549_v41  ;;  %v889_v45 = vmax.f32 %v549_v41, 0.0 }
 0x1e6   :  { %v2269_v47 = vmul.f32 -1.442695, %v544_v43  ;;  %v888_v48 = vmax.f32 %v544_v43, 0.0  ;;  %v2542_v49 = vpop.f32.mrb[8].mxu1 }
 0x1e7   :  { %2785 = vpow2.f32 %v2270_v44  ;;  %v559_v50 = vadd.f32 %v2542_v49, %v462_v46  ;;  %v553_v51 = vpop.f32.mrb[9].mxu1  ;;  %v84_v46 = vld [vmem:[%s3260_s9 + $0x10] sm:$0xff]  ;;  %v1122_v49 = vpop.permute.xlu1 %1121 }
 0x1e8   :  { %2787 = vpow2.f32 %v2269_v47  ;;  %v554_v52 = vadd.f32 %v553_v51, %v457_v38  ;;  %v2743_v53 = vpack.c.bf16 %v889_v45, %v888_v48  ;;  %v83_v45 = vld [vmem:[%s3260_s9 + $0x8] sm:$0xff]  ;;  %v85_v47 = vld [vmem:[%s3260_s9 + $0x18] sm:$0xff]  ;;  %v1127_v48 = vpop.permute.xlu0 %1126 }
 0x1e9   :  { %v2272_v54 = vmul.f32 -1.442695, %v559_v50  ;;  %v891_v55 = vmax.f32 %v559_v50, 0.0 }
 0x1ea   :  { %v2271_v56 = vmul.f32 -1.442695, %v554_v52  ;;  %v890_v57 = vmax.f32 %v554_v52, 0.0  ;;  %v772_v12 = vpop.f32.mrb[10].mxu1 }
 0x1eb   :  { %2789 = vpow2.f32 %v2272_v54  ;;  %v2569_v13 = vpop.f32.mrb[11].mxu1 }
 0x1ec   :  { %2791 = vpow2.f32 %v2271_v56  ;;  %v2747_v58 = vpack.c.bf16 %v891_v55, %v890_v57  ;;  %v1137_v56 = vpop.permute.xlu0 %1136 }
 0x1f1   :  { %v2786_v59 = vpop.eup %2785 }
 0x1f2   :  { %v2788_v60 = vpop.eup %2787  ;;  %v789_v61 = vadd.f32 1.0, %v2786_v59 }
 0x1f3   :  { %v788_v62 = vadd.f32 1.0, %v2788_v60  ;;  %v1132_v60 = vpop.permute.xlu1 %1131 }
 0x1f4   :  { %2793 = vrcp.f32 %v789_v61 }
 0x1f5   :  { %v2790_v63 = vpop.eup %2789  ;;  %2795 = vrcp.f32 %v788_v62 }
 0x1f6   :  { %v2792_v1 = vpop.eup %2791  ;;  %v791_v2 = vadd.f32 1.0, %v2790_v63 }
 0x1f7   :  { %v790_v3 = vadd.f32 1.0, %v2792_v1 }
 0x1f8   :  { %2797 = vrcp.f32 %v791_v2 }
 0x1f9   :  { %2799 = vrcp.f32 %v790_v3 }
 0x1fe   :  { %v2794_v5 = vpop.eup %2793 }
 0x1ff   :  { %v2796_v6 = vpop.eup %2795 }
 0x200   :  { %v2738_v7 = vpack.c.bf16 %v2794_v5, %v2796_v6 }
 0x202   :  { %v2798_v8 = vpop.eup %2797  ;;  %2739 = vmatpush3.bf16.msra.mxu0 %v2738_v7 }
 0x203   :  { %v2800_v9 = vpop.eup %2799  ;;  %2740 = vmatprep.subr.bf16.mxu0 %v2833_v0 }
 0x204   :  { %v2741_v10 = vpack.c.bf16 %v2798_v8, %v2800_v9 }
 0x206   :  { %2742 = vmatpush3.bf16.msra.mxu0 %v2741_v10 }
 0x207   :  { %2586 = vmatprep.subr.mxu0 %v2835_v4 }
 0x209   :  { %2579 = vmatmul.mubr.msk.f32.vlgmr.msra.gmra.mrb[16].mxu0 %vm805_vm11, %v79_v11 }
 0x20a   :  { %2588 = vmatprep.mubr.msk.f32.mxu0 %vm2834_vm0, %v2835_v4 }
 0x2dc   :  { %v875_v15 = vpop.f32.mrb[16].mxu0 }
 0x2dd   :  { %v876_v16 = vadd.f32 %v875_v15, %v803_v14  ;;  %v2580_v17 = vpop.f32.mrb[17].mxu0 }
 0x2df   :  { %v2274_v18 = vmul.f32 -1.442695, %v876_v16 }
 0x2e1   :  { %2801 = vpow2.f32 %v2274_v18 }
 0x2eb   :  { %v2802_v19 = vpop.eup %2801 }
 0x2ec   :  { %v882_v20 = vadd.f32 1.0, %v2802_v19 }
 0x2ee   :  { %2803 = vrcp.f32 %v882_v20 }
 0x2f8   :  { %v2804_v21 = vpop.eup %2803 }
 0x2f9   :  { %v887_v22 = vmul.f32 %v2804_v21, %v772_v12  ;;  %v885_v23 = vmul.f32 %v2804_v21, %v3115_v33  ;;  %v886_v24 = vmul.f32 %v2804_v21, %v3117_v35 }
 0x2fb   :  { %2582 = vmatpush3.msra.mxu1 %v885_v23  ;;  %2587 = vmatpush3.msra.mxu0 %v886_v24 }
 0x2fc   :  { %2584 = vmatmul.mubr.msk.f32.vlgmr.msra.gmra.mrb[12].mxu1 %vm892_vm12, %v81_v25  ;;  %2589 = vmatmul.mubr.msk.f32.vlgmr.msra.gmra.mrb[18].mxu0 %vm892_vm12, %v81_v25 }
 0x2fd   :  { %2591 = vmatprep.subr.mxu1 %v2835_v4  ;;  %2744 = vmatprep.subr.bf16.mxu0 %v2743_v53 }
 0x2fe   :  { %2592 = vmatpush3.msra.mxu1 %v887_v22  ;;  %2746 = vmatpush3.bf16.msra.mxu0 %v2743_v53  ;;  %v91_v22 = vld [vmem:[%s3262_s12] sm:$0xff] }
 0x2ff   :  { %2748 = vmatprep.subr.bf16.mxu0 %v2747_v58  ;;  %2593 = vmatprep.mubr.msk.f32.mxu1 %vm2834_vm0, %v2835_v4 }
 0x300   :  { %2594 = vmatmul.mubr.msk.f32.vlgmr.msra.gmra.mrb[14].mxu1 %vm892_vm12, %v81_v25  ;;  %2612 = vmatprep.subr.mxu1 %v2835_v4 }
 0x301   :  { %2614 = vmatprep.mubr.msk.f32.mxu1 %vm2834_vm0, %v2835_v4  ;;  %2606 = vmatprep.mubr.msk.f32.mxu0 %vm1139_vm13, %v82_v26 }
 0x302   :  { %2750 = vmatpush3.bf16.msra.mxu0 %v2747_v58 }
 0x3cf   :  { %v962_v28 = vpop.f32.mrb[12].mxu1  ;;  %v1032_v29 = vpop.f32.mrb[18].mxu0 }
 0x3d0   :  { %v1106_v30 = vmul.f32 %v962_v28, %v962_v28  ;;  %v1107_v31 = vmul.f32 %v1032_v29, %v1032_v29  ;;  %v2585_v32 = vpop.f32.mrb[13].mxu1  ;;  %2613 = vmatpush3.msra.mxu1 %v962_v28  ;;  %v2590_v33 = vpop.f32.mrb[19].mxu0 }
 0x3d1   :  { %2615 = vmatmul.mubr.msk.f32.vlgmr.msra.gmra.mrb[16].mxu1 %vm892_vm12, %v90_v27  ;;  %2617 = vmatprep.subr.mxu1 %v2835_v4 }
 0x3d2   :  { %v1108_v34 = vadd.f32 %v1107_v31, %v1106_v30  ;;  %2618 = vmatpush3.msra.mxu1 %v1032_v29  ;;  %2619 = vmatprep.mubr.msk.f32.mxu1 %vm2834_vm0, %v2835_v4  ;;  %v1477_v29 = vpop.permute.xlu1 %1476 }
 0x3d3   :  { %v1102_v35 = vpop.f32.mrb[14].mxu1  ;;  %2622 = vmatprep.subr.mxu1 %v2835_v4 }
 0x3d4   :  { %v1109_v36 = vmul.f32 %v1102_v35, %v1102_v35  ;;  %v2595_v37 = vpop.f32.mrb[15].mxu1 }
 0x3d5   :  { %2620 = vmatmul.mubr.msk.f32.vlgmr.msra.gmra.mrb[18].mxu1 %vm892_vm12, %v90_v27 }
 0x3d6   :  { %v1110_v38 = vadd.f32 %v1109_v36, %v1108_v34  ;;  %2623 = vmatpush3.msra.mxu1 %v1102_v35  ;;  %2624 = vmatprep.mubr.msk.f32.mxu1 %vm2834_vm0, %v2835_v4 }
 0x3d7   :  { %2638 = vmatprep.subr.mxu1 %v2835_v4 }
 0x3d8   :  { %v1111_v39 = vmax.f32 %v1110_v38, 1e-08 }
 0x3d9   :  { %2625 = vmatmul.mubr.msk.f32.vlgmr.msra.gmra.mrb[20].mxu1 %vm892_vm12, %v90_v27 }
 0x3da   :  { %2805 = vrsqrt.f32 %v1111_v39  ;;  %2640 = vmatprep.mubr.msk.f32.mxu1 %vm2834_vm0, %v2835_v4  ;;  %vm1114_vm14 = vcmp.eq.f32.partialorder %v1111_v39, inf  ;;  %v1117_v42 = vand.u32 2147483648, %v1111_v39  ;;  %vm1116_vm15 = vcmp.eq.f32.partialorder %v1111_v39, 0.0 }
 0x3e4   :  { %v2806_v40 = vpop.eup %2805 }
 0x3e5   :  { %v1113_v41 = vmul.f32 %v2806_v40, %v1111_v39  ;;  %v93_v40 = vld [vmem:[%s3263_s14] sm:$0xff] }
 0x3e7   :  { %v1115_v43 = vsel %vm1114_vm14, %v1111_v39, %v1113_v41  ;;  %v94_v41 = vld [vmem:[%s3264_s15] sm:$0xff] }
 0x3e8   :  { %v1118_v44 = vsel %vm1116_vm15, %v1117_v42, %v1115_v43  ;;  %v102_v42 = vld [vmem:[%s3265_s17] sm:$0xff] }
 0x3e9   :  { %2604 = vmatprep.subr.mxu0 %v1118_v44 }
 0x3ea   :  { %2605 = vmatpush3.msra.mxu0 %v1118_v44 }
 0x3eb   :  { %2607 = vmatmul.mubr.msk.f32.vlgmr.msra.gmra.mrb[20].mxu0 %vm1139_vm13, %v83_v45  ;;  %2751 = vmatprep.subr.bf16.mxu0 %v2833_v0 }
 0x3ec   :  { %2609 = vmatprep.mubr.msk.f32.mxu0 %vm1139_vm13, %v84_v46 }
 0x3ef   :  { %2610 = vmatmul.mubr.msk.f32.gmra.mrb[22].mxu0 %vm1139_vm13, %v85_v47 }
 0x3f0   :  { %2635 = vmatprep.mubr.msk.f32.mxu0 %vm2834_vm0, %v2835_v4 }
 0x4a4   :  { %v1306_v23 = vpop.f32.mrb[16].mxu1 }
 0x4a5   :  { %v2616_v24 = vpop.f32.mrb[17].mxu1 }
 0x4a8   :  { %v1376_v25 = vpop.f32.mrb[18].mxu1 }
 0x4a9   :  { %v2621_v26 = vpop.f32.mrb[19].mxu1 }
 0x4ac   :  { %v1446_v27 = vpop.f32.mrb[20].mxu1 }
 0x4ad   :  { %v2626_v28 = vpop.f32.mrb[21].mxu1 }
 0x4be   :  { %v2608_v50 = vpop.f32.mrb[20].mxu0 }
 0x4bf   :  { %v1224_v51 = vadd.f32 %v2608_v50, %v1127_v48  ;;  %v1218_v52 = vpop.f32.mrb[21].mxu0 }
 0x4c0   :  { %v1219_v53 = vadd.f32 %v1218_v52, %v1122_v49 }
 0x4c1   :  { %v2286_v54 = vmul.f32 -1.442695, %v1224_v51  ;;  %v1562_v55 = vmax.f32 %v1224_v51, 0.0 }
 0x4c2   :  { %v2285_v57 = vmul.f32 -1.442695, %v1219_v53  ;;  %v1561_v58 = vmax.f32 %v1219_v53, 0.0  ;;  %v2611_v59 = vpop.f32.mrb[22].mxu0 }
 0x4c3   :  { %2807 = vpow2.f32 %v2286_v54  ;;  %v1234_v61 = vadd.f32 %v2611_v59, %v1137_v56  ;;  %v1228_v62 = vpop.f32.mrb[23].mxu0 }
 0x4c4   :  { %2809 = vpow2.f32 %v2285_v57  ;;  %v1229_v63 = vadd.f32 %v1228_v62, %v1132_v60  ;;  %v3175_v1 = vpack.c.bf16 %v1562_v55, %v1561_v58  ;;  %v95_v60 = vld [vmem:[%s3264_s15 + $0x8] sm:$0xff]  ;;  %v97_v62 = vld [vmem:[%s3264_s15 + $0x18] sm:$0xff] }
 0x4c5   :  { %v2288_v2 = vmul.f32 -1.442695, %v1234_v61  ;;  %v1564_v3 = vmax.f32 %v1234_v61, 0.0  ;;  %v96_v61 = vld [vmem:[%s3264_s15 + $0x10] sm:$0xff] }
 0x4c6   :  { %v2287_v5 = vmul.f32 -1.442695, %v1229_v63  ;;  %v1563_v6 = vmax.f32 %v1229_v63, 0.0  ;;  %v1799_v63 = vpop.permute.xlu1 %1798 }
 0x4c7   :  { %2811 = vpow2.f32 %v2288_v2 }
 0x4c8   :  { %2813 = vpow2.f32 %v2287_v5  ;;  %v2761_v7 = vpack.c.bf16 %v1564_v3, %v1563_v6 }
 0x4cd   :  { %v2808_v8 = vpop.eup %2807 }
 0x4ce   :  { %v2810_v9 = vpop.eup %2809  ;;  %v1463_v10 = vadd.f32 1.0, %v2808_v8 }
 0x4cf   :  { %v1462_v11 = vadd.f32 1.0, %v2810_v9 }
 0x4d0   :  { %2815 = vrcp.f32 %v1463_v10 }
 0x4d1   :  { %v2812_v12 = vpop.eup %2811  ;;  %2817 = vrcp.f32 %v1462_v11 }
 0x4d2   :  { %v2814_v13 = vpop.eup %2813  ;;  %v1465_v14 = vadd.f32 1.0, %v2812_v12 }
 0x4d3   :  { %v1464_v15 = vadd.f32 1.0, %v2814_v13 }
 0x4d4   :  { %2819 = vrcp.f32 %v1465_v14  ;;  %v103_v14 = vld [vmem:[%s3267_s18] sm:$0xff] }
 0x4d5   :  { %2821 = vrcp.f32 %v1464_v15 }
 0x4da   :  { %v2816_v16 = vpop.eup %2815 }
 0x4db   :  { %v2818_v17 = vpop.eup %2817 }
 0x4dc   :  { %v2752_v18 = vpack.c.bf16 %v2816_v16, %v2818_v17 }
 0x4de   :  { %v2820_v19 = vpop.eup %2819  ;;  %2753 = vmatpush3.bf16.msra.mxu0 %v2752_v18 }
 0x4df   :  { %v2822_v20 = vpop.eup %2821  ;;  %2754 = vmatprep.subr.bf16.mxu0 %v2833_v0 }
 0x4e0   :  { %v2755_v21 = vpack.c.bf16 %v2820_v19, %v2822_v20 }
 0x4e2   :  { %2756 = vmatpush3.bf16.msra.mxu0 %v2755_v21 }
 0x4e3   :  { %2648 = vmatprep.subr.mxu0 %v2835_v4 }
 0x4e5   :  { %2636 = vmatmul.mubr.msk.f32.vlgmr.msra.gmra.mrb[24].mxu0 %vm805_vm11, %v91_v22 }
 0x4e6   :  { %2650 = vmatprep.mubr.msk.f32.mxu0 %vm2834_vm0, %v2835_v4 }
 0x5b8   :  { %v1548_v30 = vpop.f32.mrb[24].mxu0 }
 0x5b9   :  { %v1549_v31 = vadd.f32 %v1548_v30, %v1477_v29  ;;  %v2637_v32 = vpop.f32.mrb[25].mxu0 }
 0x5bb   :  { %v2290_v33 = vmul.f32 -1.442695, %v1549_v31 }
 0x5bd   :  { %2823 = vpow2.f32 %v2290_v33 }
 0x5c7   :  { %v2824_v34 = vpop.eup %2823 }
 0x5c8   :  { %v1555_v35 = vadd.f32 1.0, %v2824_v34 }
 0x5ca   :  { %2825 = vrcp.f32 %v1555_v35 }
 0x5d4   :  { %v2826_v36 = vpop.eup %2825 }
 0x5d5   :  { %v1558_v37 = vmul.f32 %v2826_v36, %v1306_v23  ;;  %v1559_v38 = vmul.f32 %v2826_v36, %v1376_v25  ;;  %v1560_v39 = vmul.f32 %v2826_v36, %v1446_v27 }
 0x5d7   :  { %2639 = vmatpush3.msra.mxu1 %v1558_v37  ;;  %2649 = vmatpush3.msra.mxu0 %v1560_v39 }
 0x5d8   :  { %2641 = vmatmul.mubr.msk.f32.vlgmr.msra.gmra.mrb[22].mxu1 %vm892_vm12, %v93_v40  ;;  %2643 = vmatprep.subr.mxu1 %v2835_v4 }
 0x5d9   :  { %2644 = vmatpush3.msra.mxu1 %v1559_v38  ;;  %2645 = vmatprep.mubr.msk.f32.mxu1 %vm2834_vm0, %v2835_v4 }
 0x5da   :  { %2758 = vmatprep.subr.bf16.mxu1 %v3175_v1  ;;  %2651 = vmatmul.mubr.msk.f32.vlgmr.msra.gmra.mrb[26].mxu0 %vm892_vm12, %v93_v40 }
 0x5db   :  { %2669 = vmatprep.subr.mxu0 %v2835_v4  ;;  %2671 = vmatprep.mubr.msk.f32.mxu0 %vm2834_vm0, %v2835_v4 }
 0x5dc   :  { %2646 = vmatmul.mubr.msk.f32.vlgmr.msra.gmra.mrb[24].mxu1 %vm892_vm12, %v93_v40 }
 0x5dd   :  { %2760 = vmatpush3.bf16.msra.mxu1 %v3175_v1  ;;  %2663 = vmatprep.mubr.msk.f32.mxu1 %vm1139_vm13, %v94_v41  ;;  %v1794_v1 = vpop.permute.xlu0 %1793 }
 0x5de   :  { %2762 = vmatprep.subr.bf16.mxu1 %v2761_v7 }
 0x5e1   :  { %2764 = vmatpush3.bf16.msra.mxu1 %v2761_v7  ;;  %v1809_v7 = vpop.permute.xlu1 %1808  ;;  %v1804_v10 = vpop.permute.xlu0 %1803 }
 0x5e5   :  { %v2124_v21 = vpop.permute.xlu0 %2123 }
 0x6ab   :  { %v1634_v43 = vpop.f32.mrb[22].mxu1 }
 0x6ac   :  { %v2642_v44 = vpop.f32.mrb[23].mxu1  ;;  %2670 = vmatpush3.msra.mxu0 %v1634_v43  ;;  %v1778_v48 = vmul.f32 %v1634_v43, %v1634_v43 }
 0x6ad   :  { %2672 = vmatmul.mubr.msk.f32.vlgmr.msra.gmra.mrb[28].mxu0 %vm892_vm12, %v102_v42  ;;  %v1774_v45 = vpop.f32.mrb[26].mxu0  ;;  %2674 = vmatprep.subr.mxu0 %v2835_v4 }
 0x6ae   :  { %v2652_v46 = vpop.f32.mrb[27].mxu0  ;;  %2676 = vmatprep.mubr.msk.f32.mxu0 %vm2834_vm0, %v2835_v4  ;;  %v1781_v51 = vmul.f32 %v1774_v45, %v1774_v45 }
 0x6af   :  { %v1704_v47 = vpop.f32.mrb[24].mxu1 }
 0x6b0   :  { %v1779_v49 = vmul.f32 %v1704_v47, %v1704_v47  ;;  %v2647_v50 = vpop.f32.mrb[25].mxu1  ;;  %2675 = vmatpush3.msra.mxu0 %v1704_v47 }
 0x6b1   :  { %2679 = vmatprep.subr.mxu0 %v2835_v4  ;;  %2677 = vmatmul.mubr.msk.f32.vlgmr.msra.gmra.mrb[30].mxu0 %vm892_vm12, %v102_v42 }
 0x6b2   :  { %v1780_v52 = vadd.f32 %v1779_v49, %v1778_v48  ;;  %2680 = vmatpush3.msra.mxu0 %v1774_v45  ;;  %2681 = vmatprep.mubr.msk.f32.mxu0 %vm2834_vm0, %v2835_v4 }
 0x6b4   :  { %v1782_v53 = vadd.f32 %v1781_v51, %v1780_v52 }
 0x6b5   :  { %2682 = vmatmul.mubr.msk.f32.vlgmr.msra.gmra.mrb[32].mxu0 %vm892_vm12, %v102_v42 }
 0x6b6   :  { %v1783_v54 = vmax.f32 %v1782_v53, 1e-08 }
 0x6b8   :  { %2827 = vrsqrt.f32 %v1783_v54  ;;  %vm1786_vm1 = vcmp.eq.f32.partialorder %v1783_v54, inf  ;;  %v1789_v57 = vand.u32 2147483648, %v1783_v54  ;;  %vm1788_vm2 = vcmp.eq.f32.partialorder %v1783_v54, 0.0 }
 0x6c2   :  { %v2828_v55 = vpop.eup %2827 }
 0x6c3   :  { %v1785_v56 = vmul.f32 %v2828_v55, %v1783_v54 }
 0x6c5   :  { %v1787_v58 = vsel %vm1786_vm1, %v1783_v54, %v1785_v56 }
 0x6c6   :  { %v1790_v59 = vsel %vm1788_vm2, %v1789_v57, %v1787_v58 }
 0x6c7   :  { %2661 = vmatprep.subr.mxu1 %v1790_v59 }
 0x6c8   :  { %2662 = vmatpush3.msra.mxu1 %v1790_v59 }
 0x6c9   :  { %2664 = vmatmul.mubr.msk.f32.vlgmr.msra.gmra.mrb[26].mxu1 %vm1139_vm13, %v95_v60  ;;  %2765 = vmatprep.subr.bf16.mxu1 %v2833_v0 }
 0x6ca   :  { %2666 = vmatprep.mubr.msk.f32.mxu1 %vm1139_vm13, %v96_v61 }
 0x6cd   :  { %2667 = vmatmul.mubr.msk.f32.gmra.mrb[28].mxu1 %vm1139_vm13, %v97_v62 }
 0x6ce   :  { %2692 = vmatprep.mubr.msk.f32.mxu1 %vm2834_vm0, %v2835_v4 }
 0x780   :  { %v1977_v15 = vpop.f32.mrb[28].mxu0 }
 0x781   :  { %v2673_v16 = vpop.f32.mrb[29].mxu0 }
 0x784   :  { %v2047_v17 = vpop.f32.mrb[30].mxu0 }
 0x785   :  { %v2678_v18 = vpop.f32.mrb[31].mxu0 }
 0x788   :  { %v2117_v19 = vpop.f32.mrb[32].mxu0 }
 0x789   :  { %v2683_v20 = vpop.f32.mrb[33].mxu0 }
 0x79c   :  { %v2665_v2 = vpop.f32.mrb[26].mxu1 }
 0x79d   :  { %v1895_v3 = vadd.f32 %v2665_v2, %v1799_v63  ;;  %v1889_v5 = vpop.f32.mrb[27].mxu1 }
 0x79e   :  { %v1890_v6 = vadd.f32 %v1889_v5, %v1794_v1 }
 0x7a0   :  { %v2766_v8 = vpack.c.bf16 %v1895_v3, %v1890_v6  ;;  %v2668_v9 = vpop.f32.mrb[28].mxu1 }
 0x7a1   :  { %v1905_v11 = vadd.f32 %v2668_v9, %v1809_v7  ;;  %v1899_v12 = vpop.f32.mrb[29].mxu1 }
 0x7a2   :  { %2345 = vst [vmem:[%s3266_s20] sm:$0xff] %v2766_v8   ;;  %v1900_v13 = vadd.f32 %v1899_v12, %v1804_v10  ;;  %2767 = vmatpush3.bf16.msra.mxu1 %v2766_v8 }
 0x7a3   :  { %2768 = vmatprep.subr.bf16.mxu1 %v2833_v0 }
 0x7a4   :  { %v2769_v4 = vpack.c.bf16 %v1905_v11, %v1900_v13 }
 0x7a6   :  { %2361 = vst [vmem:[%s3266_s20 + $0x8] sm:$0xff] %v2769_v4   ;;  %2770 = vmatpush3.bf16.msra.mxu1 %v2769_v4 }
 0x7a9   :  { %2693 = vmatmul.mubr.msk.f32.vlgmr.msra.gmra.mrb[30].mxu1 %vm805_vm11, %v103_v14 }
 0x87c   :  { %v2195_v0 = vpop.f32.mrb[30].mxu1 }
 0x87d   :  { %v2196_v22 = vadd.f32 %v2195_v0, %v2124_v21  ;;  %v2694_v23 = vpop.f32.mrb[31].mxu1 }
 0x87f   :  { %v2302_v24 = vmul.f32 -1.442695, %v2196_v22 }
 0x881   :  { %2829 = vpow2.f32 %v2302_v24 }
 0x88b   :  { %v2830_v25 = vpop.eup %2829 }
 0x88c   :  { %v2202_v26 = vadd.f32 1.0, %v2830_v25 }
 0x88e   :  { %2831 = vrcp.f32 %v2202_v26 }
 0x898   :  { %v2832_v27 = vpop.eup %2831 }
 0x899   :  { %v2205_v28 = vmul.f32 %v2832_v27, %v1977_v15  ;;  %v2206_v29 = vmul.f32 %v2832_v27, %v2047_v17  ;;  %v2207_v30 = vmul.f32 %v2832_v27, %v2117_v19 }
 0x89b   :  { %v2354_v31 = vpack.c.bf16 %v2206_v29, %v2205_v28  ;;  %v2233_v32 = vpack.c.bf16 %v2207_v30, %v2207_v30 }
 0x89d   :  { %2355 = vst [vmem:[%s3268_s21] sm:$0xff] %v2354_v31   ;;  %2308 = vst [vmem:[%s3268_s21 + $0x8] sm:$0xf] %v2233_v32 }

// kernel: gvp_encoder_forward.9
= control target key start
LH: loop header
LB: loop body
LE: loop exit
PB: predicated region body
PF: predicated region fallthrough
CT: control target
= control target key end

     0   :  { %vm285_vm0 = vcmask 64512   ;;  %v2659_v3 = vmov 0   ;;  %v2660_v24 = vmov 0.0   ;;  %vm817_vm2 = vcmask 130048   ;;  %s3208_s2 = inlined_call_operand.vmem [shape: bf16[3,8,128], index: 2, kind: input, shape index: {}]   ;;  %s3209_s3 = inlined_call_operand.vmem [shape: f32[3,8,128], index: 3, kind: input, shape index: {}]   ;;  %s3210_s6 = inlined_call_operand.vmem [shape: f32[16,8], index: 6, kind: input, shape index: {}]   ;;  %s3211_s4 = inlined_call_operand.vmem [shape: f32[32,1], index: 4, kind: input, shape index: {}]   ;;  %s3212_s5 = inlined_call_operand.vmem [shape: f32[32,1], index: 5, kind: input, shape index: {}]   ;;  %s3213_s8 = inlined_call_operand.vmem [shape: f32[128,1], index: 8, kind: input, shape index: {}]   ;;  %s3214_s0 = inlined_call_operand.vmem [shape: bf16[32,128], index: 0, kind: input, shape index: {}]   ;;  %s3215_s1 = inlined_call_operand.vmem [shape: f32[32,128], index: 1, kind: input, shape index: {}]   ;;  %s3216_s11 = inlined_call_operand.vmem [shape: f32[16,1], index: 11, kind: input, shape index: {}]   ;;  %s3217_s14 = inlined_call_operand.vmem [shape: f32[32,1], index: 14, kind: input, shape index: {}]   ;;  %s3218_s17 = inlined_call_operand.vmem [shape: f32[8,1], index: 17, kind: input, shape index: {}]   ;;  %s3219_s18 = inlined_call_operand.vmem [shape: f32[32,1], index: 18, kind: input, shape index: {}]   ;;  %s3220_s19 = inlined_call_operand.vmem [shape: f32[32,1], index: 19, kind: input, shape index: {}]   ;;  %s3221_s9 = inlined_call_operand.vmem [shape: f32[16,16], index: 9, kind: input, shape index: {}]   ;;  %s3222_s7 = inlined_call_operand.vmem [shape: f32[128,48], index: 7, kind: input, shape index: {}]   ;;  %s3223_s10 = inlined_call_operand.vmem [shape: f32[16,128], index: 10, kind: input, shape index: {}]   ;;  %s3224_s12 = inlined_call_operand.vmem [shape: f32[16,16], index: 12, kind: input, shape index: {}]   ;;  %s3225_s13 = inlined_call_operand.vmem [shape: f32[32,144], index: 13, kind: input, shape index: {}]   ;;  %s3226_s15 = inlined_call_operand.vmem [shape: f32[8,16], index: 15, kind: input, shape index: {}]   ;;  %s3227_s16 = inlined_call_operand.vmem [shape: f32[8,32], index: 16, kind: input, shape index: {}]   ;;  %s3228_s20 = inlined_call_operand.vmem [shape: bf16[32,128], index: 20, kind: output, shape index: {0}]   ;;  %s3229_s21 = inlined_call_operand.vmem [shape: bf16[3,8,128], index: 21, kind: output, shape index: {1}]  }
   0x1   :  { %3236 = sst [smem:[#allocation2_spill]] %s3208_s2  ;;  %2561 = vset.pattern.permute.xlu0 %v2659_v3  ;;  %2562 = vset.pattern.permute.xlu1 %v2659_v3  ;;  %v2172_v33 = vld [vmem:[%s3214_s0] sm:$0xff]   ;;  %v2198_v34 = vld [vmem:[%s3214_s0 + $0x8] sm:$0xff]   ;;  %v150_v46 = vld [vmem:[%s3215_s1 + $0x10] sm:$0xff]  ;;  %vm623_vm3 = vcmask 392192   ;;  %vm2662_vm8 = vmmov 0  }
   0x2   :  { %3237 = sst [smem:[#allocation3_spill]] %s3209_s3  ;;  %s3242_s26 = sld [smem:[#allocation2_spill]]  ;;  %v2173_v36 = vunpack.c.l.bf16 %v2172_v33  ;;  %v2174_v37 = vunpack.c.h.bf16 %v2172_v33  ;;  %v148_v38 = vld [vmem:[%s3215_s1] sm:$0xff]  ;;  %v149_v39 = vld [vmem:[%s3215_s1 + $0x8] sm:$0xff]  ;;  %v2177_v42 = vunpack.c.l.bf16 %v2198_v34  ;;  %v2178_v51 = vunpack.c.h.bf16 %v2198_v34  ;;  %v151_v55 = vld [vmem:[%s3215_s1 + $0x18] sm:$0xff] }
   0x3   :  { %3238 = sst [smem:[#allocation4_spill]] %s3210_s6  ;;  %s3243_s28 = sld [smem:[#allocation3_spill]]  ;;  %vm1856_vm13 = vcmask 261120  }
   0x4   :  { %3239 = sst [smem:[#allocation5_spill]] %s3211_s4  ;;  %s3244_s24 = sld [smem:[#allocation4_spill]]  ;;  %v2857_v43 = vadd.f32 %v2173_v36, %v148_v38  ;;  %v2859_v44 = vadd.f32 %v2174_v37, %v149_v39  ;;  %v2870_v52 = vadd.f32 %v2177_v42, %v150_v46  ;;  %v2883_v60 = vadd.f32 %v2178_v51, %v151_v55  ;;  %v132_v38 = vld [vmem:[%s3219_s18] sm:$0xff]  ;;  %v134_v42 = vld [vmem:[%s3219_s18 + $0x10] sm:$0xff] }
   0x5   :  { %3240 = sst [smem:[#allocation6_spill]] %s3212_s5  ;;  %s3245_s27 = sld [smem:[#allocation5_spill]]  ;;  %v138_v51 = vld [vmem:[%s3220_s19 + $0x10] sm:$0xff] }
   0x6   :  { %3241 = sst [smem:[#allocation7_spill]] %s3213_s8  ;;  %s3246_s29 = sld [smem:[#allocation6_spill]]  ;;  %v172_v53 = vadd.f32 %v2859_v44, %v2857_v43 }
   0x7   :  { %s3247_s2 = sld [smem:[#allocation7_spill]] }
   0x8   :  { %v2180_v0 = vld [vmem:[%s3242_s26] sm:$0xff]   ;;  %v2096_v6 = vld [vmem:[%s3242_s26 + $0x8] sm:$0xf]  ;;  %v173_v61 = vadd.f32 %v172_v53, %v2870_v52 }
   0x9   :  { %v158_v1 = vld [vmem:[%s3243_s28] sm:$0xff]  ;;  %v2095_v2 = vld [vmem:[%s3243_s28 + $0x8] sm:$0xff]  ;;  %v2181_v4 = vunpack.c.l.bf16 %v2180_v0  ;;  %v2182_v5 = vunpack.c.h.bf16 %v2180_v0  ;;  %v2097_v7 = vld [vmem:[%s3243_s28 + $0x10] sm:$0xff]  ;;  %v168_v9 = vunpack.c.l.bf16 %v2096_v6 }
   0xa   :  { %v2791_v8 = vld [vmem:[%s3244_s24] sm:$0xff] }
   0xb   :  { %2289 = vmatprep.mubr.msk.f32.mxu1 %vm285_vm0, %v2791_v8  ;;  %2299 = vmatprep.mubr.msk.f32.mxu0 %vm285_vm0, %v2791_v8  ;;  %v67_v10 = vld [vmem:[%s3245_s27] sm:$0xff]  ;;  %v2803_v12 = vadd.f32 %v2181_v4, %v158_v1  ;;  %v2805_v13 = vadd.f32 %v2182_v5, %v2095_v2  ;;  %v2807_v14 = vadd.f32 %v2097_v7, %v168_v9  ;;  %v68_v15 = vld [vmem:[%s3245_s27 + $0x8] sm:$0xff]  ;;  %v69_v21 = vld [vmem:[%s3245_s27 + $0x10] sm:$0xff] }
   0xc   :  { %v71_v11 = vld [vmem:[%s3246_s29] sm:$0xff]  ;;  %209 = vperm.xlu0 %2561, %v67_v10   ;;  %v72_v16 = vld [vmem:[%s3246_s29 + $0x8] sm:$0xff]  ;;  %v70_v22 = vld [vmem:[%s3245_s27 + $0x18] sm:$0xff]  ;;  %v174_v1 = vadd.f32 %v173_v61, %v2883_v60 }
   0xd   :  { %233 = vperm.xlu1 %2562, %v71_v11   ;;  %v255_v17 = vmul.f32 %v2803_v12, %v2803_v12  ;;  %v256_v18 = vmul.f32 %v2805_v13, %v2805_v13  ;;  %v258_v19 = vmul.f32 %v2807_v14, %v2807_v14  ;;  %v73_v26 = vld [vmem:[%s3246_s29 + $0x10] sm:$0xff]  ;;  %v74_v27 = vld [vmem:[%s3246_s29 + $0x18] sm:$0xff]  ;;  %v93_v32 = vld [vmem:[%s3247_s2] sm:$0xff] }
   0xe   :  { %v94_v35 = vld [vmem:[%s3247_s2 + $0x8] sm:$0xff]  ;;  %v95_v47 = vld [vmem:[%s3247_s2 + $0x10] sm:$0xff]  ;;  %v96_v48 = vld [vmem:[%s3247_s2 + $0x18] sm:$0xff]  ;;  %v175_v5 = vrot.slane %v174_v1, 4 }
   0xf   :  { %v257_v20 = vadd.f32 %v256_v18, %v255_v17  ;;  %v97_v56 = vld [vmem:[%s3247_s2 + $0x20] sm:$0xff]  ;;  %v98_v57 = vld [vmem:[%s3247_s2 + $0x28] sm:$0xff]  ;;  %v99_v62 = vld [vmem:[%s3247_s2 + $0x30] sm:$0xff] }
  0x10   :  { %214 = vperm.xlu0 %2561, %v68_v15   ;;  %v100_v63 = vld [vmem:[%s3247_s2 + $0x38] sm:$0xff]  ;;  %v101_v2 = vld [vmem:[%s3247_s2 + $0x40] sm:$0xff]  ;;  %v102_v3 = vld [vmem:[%s3247_s2 + $0x48] sm:$0xff]  ;;  %v176_v11 = vadd.f32 %v175_v5, %v174_v1 }
  0x11   :  { %238 = vperm.xlu1 %2562, %v72_v16   ;;  %v259_v23 = vadd.f32 %v258_v19, %v257_v20  ;;  %v103_v6 = vld [vmem:[%s3247_s2 + $0x50] sm:$0xff]  ;;  %v104_v7 = vld [vmem:[%s3247_s2 + $0x58] sm:$0xff]  ;;  %v105_v16 = vld [vmem:[%s3247_s2 + $0x60] sm:$0xff] }
  0x12   :  { %v106_v17 = vld [vmem:[%s3247_s2 + $0x68] sm:$0xff]  ;;  %v177_v18 = vrot.slane %v176_v11, 2  ;;  %v107_v19 = vld [vmem:[%s3247_s2 + $0x70] sm:$0xff]  ;;  %v108_v20 = vld [vmem:[%s3247_s2 + $0x78] sm:$0xff] }
  0x13   :  { %vm260_vm1 = vcmp.gt.f32.partialorder %v259_v23, 0.0002 }
  0x14   :  { %219 = vperm.xlu0 %2561, %v69_v21   ;;  %v2828_v25 = vsel %vm260_vm1, 1.0, %v2660_v24  ;;  %v178_v21 = vadd.f32 %v177_v18, %v176_v11 }
  0x15   :  { %224 = vperm.xlu1 %2562, %v70_v22   ;;  %v263_v28 = vrot.slane %v2828_v25, 4  ;;  %v270_v29 = vmul.f32 %v2828_v25, %v259_v23  ;;  %v113_v22 = vld [vmem:[%s3216_s11] sm:$0xff]  ;;  %v114_v23 = vld [vmem:[%s3216_s11 + $0x8] sm:$0xff] }
  0x17   :  { %v264_v30 = vadd.f32 %v2828_v25, %v263_v28  ;;  %v271_v31 = vrot.slane %v270_v29, 4  ;;  %v125_v28 = vld [vmem:[%s3217_s14] sm:$0xff] }
  0x18   :  { %243 = vperm.xlu0 %2561, %v73_v26   ;;  %v179_v26 = vrot.slane %v178_v21, 1 }
  0x19   :  { %248 = vperm.xlu1 %2562, %v74_v27   ;;  %v265_v40 = vrot.slane %v264_v30, 2  ;;  %v272_v41 = vadd.f32 %v271_v31, %v270_v29  ;;  %v126_v29 = vld [vmem:[%s3217_s14 + $0x8] sm:$0xff] }
  0x1a   :  { %v180_v31 = vadd.f32 %v179_v26, %v178_v21 }
  0x1b   :  { %v266_v45 = vadd.f32 %v265_v40, %v264_v30  ;;  %v273_v50 = vrot.slane %v272_v41, 2 }
  0x1c   :  { %545 = vperm.xlu0 %2561, %v93_v32  }
  0x1d   :  { %550 = vperm.xlu1 %2562, %v94_v35   ;;  %v267_v49 = vrot.slane %v266_v45, 1  ;;  %v274_v59 = vadd.f32 %v273_v50, %v272_v41  ;;  %v76_v35 = vld [vmem:[%s3244_s24 + $0x8] sm:$0xff] }
  0x1f   :  { %v268_v54 = vadd.f32 %v267_v49, %v266_v45  ;;  %v275_v0 = vrot.slane %v274_v59, 1 }
  0x20   :  { %555 = vperm.xlu0 %2561, %v95_v47   ;;  %v136_v47 = vld [vmem:[%s3220_s19] sm:$0xff] }
  0x21   :  { %560 = vperm.xlu1 %2562, %v96_v48   ;;  %v269_v58 = vadd.f32 0.0001, %v268_v54  ;;  %v276_v4 = vadd.f32 %v275_v0, %v274_v59  ;;  %v137_v48 = vld [vmem:[%s3220_s19 + $0x8] sm:$0xff] }
  0x23   :  { %2563 = vrcp.f32 %v269_v58 }
  0x24   :  { %565 = vperm.xlu0 %2561, %v97_v56  }
  0x25   :  { %570 = vperm.xlu1 %2562, %v98_v57  }
  0x28   :  { %575 = vperm.xlu0 %2561, %v99_v62  }
  0x29   :  { %580 = vperm.xlu1 %2562, %v100_v63  }
  0x2c   :  { %585 = vperm.xlu0 %2561, %v101_v2  }
  0x2d   :  { %590 = vperm.xlu1 %2562, %v102_v3   ;;  %v2564_v9 = vpop.eup %2563 }
  0x2e   :  { %v278_v10 = vmul.f32 %v2564_v9, %v276_v4 }
  0x30   :  { %595 = vperm.xlu0 %2561, %v103_v6   ;;  %v279_v15 = vadd.f32 0.0001, %v278_v10 }
  0x31   :  { %600 = vperm.xlu1 %2562, %v104_v7  }
  0x32   :  { %2565 = vrsqrt.f32 %v279_v15 }
  0x34   :  { %605 = vperm.xlu0 %2561, %v105_v16  }
  0x35   :  { %610 = vperm.xlu1 %2562, %v106_v17  }
  0x38   :  { %615 = vperm.xlu0 %2561, %v107_v19  }
  0x39   :  { %620 = vperm.xlu1 %2562, %v108_v20  }
  0x3c   :  { %1147 = vperm.xlu0 %2561, %v113_v22   ;;  %v2566_v27 = vpop.eup %2565 }
  0x3d   :  { %1152 = vperm.xlu1 %2562, %v114_v23   ;;  %v281_v30 = vmul.f32 %v2566_v27, %v2828_v25  ;;  %v131_v25 = vld [vmem:[%s3218_s17] sm:$0xff] }
  0x3e   :  { %v109_v27 = vld [vmem:[%s3221_s9] sm:$0xff] }
  0x3f   :  { %v2931_v32 = vmul.f32 %v281_v30, %v2803_v12  ;;  %v2934_v33 = vmul.f32 %v281_v30, %v2805_v13  ;;  %v2937_v34 = vmul.f32 %v281_v30, %v2807_v14  ;;  %v127_v12 = vld [vmem:[%s3217_s14 + $0x10] sm:$0xff]  ;;  %v182_v13 = vmul.f32 0.03125, %v180_v31  ;;  %v128_v14 = vld [vmem:[%s3217_s14 + $0x18] sm:$0xff] }
  0x40   :  { %1523 = vperm.xlu0 %2561, %v125_v28   ;;  %v77_v28 = vld [vmem:[%s3222_s7] sm:$0xff] }
  0x41   :  { %1528 = vperm.xlu1 %2562, %v126_v29   ;;  %2287 = vmatprep.subr.mxu1 %v2931_v32  ;;  %v183_v36 = vsub.f32 %v2857_v43, %v182_v13  ;;  %v184_v37 = vsub.f32 %v2859_v44, %v182_v13  ;;  %v185_v39 = vsub.f32 %v2870_v52, %v182_v13  ;;  %v135_v43 = vld [vmem:[%s3219_s18 + $0x18] sm:$0xff] }
  0x42   :  { %2297 = vmatprep.subr.mxu0 %v2937_v34  ;;  %2288 = vmatpush3.msra.mxu1 %v2931_v32  ;;  %v186_v44 = vsub.f32 %v2883_v60, %v182_v13  ;;  %v139_v52 = vld [vmem:[%s3220_s19 + $0x18] sm:$0xff] }
  0x43   :  { %2298 = vmatpush3.msra.mxu0 %v2937_v34  ;;  %2290 = vmatmul.mubr.msk.f32.vlgmr.msra.gmra.mrb[0].mxu1 %vm285_vm0, %v76_v35  ;;  %v187_v40 = vmul.f32 %v183_v36, %v183_v36  ;;  %v188_v41 = vmul.f32 %v184_v37, %v184_v37  ;;  %v189_v45 = vmul.f32 %v185_v39, %v185_v39 }
  0x44   :  { %2292 = vmatprep.subr.mxu1 %v2934_v33  ;;  %2294 = vmatprep.mubr.msk.f32.mxu1 %vm285_vm0, %v2791_v8  ;;  %v133_v8 = vld [vmem:[%s3219_s18 + $0x8] sm:$0xff]  ;;  %v190_v49 = vmul.f32 %v186_v44, %v186_v44 }
  0x45   :  { %2293 = vmatpush3.msra.mxu1 %v2934_v33  ;;  %2300 = vmatmul.mubr.msk.f32.vlgmr.msra.gmra.mrb[0].mxu0 %vm285_vm0, %v76_v35  ;;  %v191_v46 = vadd.f32 %v188_v41, %v187_v40 }
  0x46   :  { %1533 = vperm.xlu0 %2561, %v127_v12   ;;  %1538 = vperm.xlu1 %2562, %v128_v14  }
  0x47   :  { %2295 = vmatmul.mubr.msk.f32.vlgmr.msra.gmra.mrb[2].mxu1 %vm285_vm0, %v76_v35  ;;  %v192_v50 = vadd.f32 %v191_v46, %v189_v45  ;;  %2342 = vmatprep.mubr.msk.f32.mxu0 %vm817_vm2, %v109_v27 }
  0x48   :  { %2314 = vmatprep.mubr.msk.f32.mxu1 %vm623_vm3, %v77_v28 }
  0x49   :  { %v193_v53 = vadd.f32 %v192_v50, %v190_v49 }
  0x4a   :  { %1853 = vperm.xlu0 %2561, %v131_v25   ;;  %1982 = vperm.xlu1 %2562, %v132_v38  }
  0x4b   :  { %v194_v54 = vrot.slane %v193_v53, 4 }
  0x4d   :  { %v195_v55 = vadd.f32 %v194_v54, %v193_v53 }
  0x4e   :  { %1987 = vperm.xlu0 %2561, %v133_v8   ;;  %1992 = vperm.xlu1 %2562, %v134_v42   ;;  %v110_v8 = vld [vmem:[%s3221_s9 + $0x8] sm:$0xff] }
  0x4f   :  { %v196_v56 = vrot.slane %v195_v55, 2 }
  0x51   :  { %v197_v57 = vadd.f32 %v196_v56, %v195_v55 }
  0x52   :  { %1997 = vperm.xlu0 %2561, %v135_v43   ;;  %2006 = vperm.xlu1 %2562, %v136_v47  }
  0x53   :  { %v198_v58 = vrot.slane %v197_v57, 1 }
  0x55   :  { %v199_v59 = vadd.f32 %v198_v58, %v197_v57 }
  0x56   :  { %2011 = vperm.xlu0 %2561, %v137_v48   ;;  %2016 = vperm.xlu1 %2562, %v138_v51  }
  0x57   :  { %v200_v60 = vmul.f32 0.03125, %v199_v59 }
  0x59   :  { %v201_v61 = vadd.f32 1e-05, %v200_v60  ;;  %v78_v60 = vld [vmem:[%s3222_s7 + $0x8] sm:$0xff] }
  0x5a   :  { %2021 = vperm.xlu0 %2561, %v139_v52  }
  0x5b   :  { %2567 = vrsqrt.f32 %v201_v61  ;;  %v79_v61 = vld [vmem:[%s3222_s7 + $0x10] sm:$0xff] }
  0x65   :  { %v2568_v62 = vpop.eup %2567 }
  0x66   :  { %v203_v63 = vmul.f32 %v2568_v62, %v183_v36  ;;  %v204_v3 = vmul.f32 %v2568_v62, %v184_v37  ;;  %v205_v9 = vmul.f32 %v2568_v62, %v185_v39  ;;  %v206_v10 = vmul.f32 %v2568_v62, %v186_v44  ;;  %v80_v62 = vld [vmem:[%s3222_s7 + $0x18] sm:$0xff] }
  0x8b   :  { %v210_v0 = vpop.permute.xlu0 %209 }
  0x8c   :  { %v234_v1 = vpop.permute.xlu1 %233  ;;  %v227_v2 = vmul.f32 %v210_v0, %v203_v63  ;;  %v81_v63 = vld [vmem:[%s3222_s7 + $0x20] sm:$0xff]  ;;  %v82_v0 = vld [vmem:[%s3222_s7 + $0x28] sm:$0xff] }
  0x8e   :  { %v2990_v6 = vadd.f32 %v234_v1, %v227_v2  ;;  %v83_v1 = vld [vmem:[%s3222_s7 + $0x30] sm:$0xff]  ;;  %v84_v2 = vld [vmem:[%s3222_s7 + $0x38] sm:$0xff] }
  0x8f   :  { %v215_v4 = vpop.permute.xlu0 %214 }
  0x90   :  { %v239_v5 = vpop.permute.xlu1 %238  ;;  %v228_v7 = vmul.f32 %v215_v4, %v204_v3  ;;  %v85_v3 = vld [vmem:[%s3222_s7 + $0x40] sm:$0xff]  ;;  %v86_v4 = vld [vmem:[%s3222_s7 + $0x48] sm:$0xff] }
  0x92   :  { %v2992_v11 = vadd.f32 %v239_v5, %v228_v7  ;;  %v87_v5 = vld [vmem:[%s3222_s7 + $0x50] sm:$0xff]  ;;  %v88_v7 = vld [vmem:[%s3222_s7 + $0x58] sm:$0xff] }
  0x93   :  { %v220_v15 = vpop.permute.xlu0 %219 }
  0x94   :  { %v225_v16 = vpop.permute.xlu1 %224  ;;  %v2447_v17 = vpack.c.bf16 %v2992_v11, %v2990_v6  ;;  %v229_v18 = vmul.f32 %v220_v15, %v205_v9  ;;  %v89_v9 = vld [vmem:[%s3222_s7 + $0x60] sm:$0xff]  ;;  %v91_v15 = vld [vmem:[%s3222_s7 + $0x70] sm:$0xff] }
  0x95   :  { %v230_v19 = vmul.f32 %v225_v16, %v206_v10  ;;  %v90_v10 = vld [vmem:[%s3222_s7 + $0x68] sm:$0xff]  ;;  %v92_v16 = vld [vmem:[%s3222_s7 + $0x78] sm:$0xff] }
  0x96   :  { %2448 = vmatprep.subr.bf16.mxu1 %v2447_v17 }
  0x97   :  { %v244_v20 = vpop.permute.xlu0 %243  ;;  %2450 = vmatpush3.bf16.msra.mxu1 %v2447_v17  ;;  %v111_v17 = vld [vmem:[%s3223_s10] sm:$0xff] }
  0x98   :  { %v249_v21 = vpop.permute.xlu1 %248  ;;  %v2996_v22 = vadd.f32 %v244_v20, %v229_v18 }
  0x99   :  { %v2998_v23 = vadd.f32 %v249_v21, %v230_v19 }
  0x9b   :  { %v2451_v26 = vpack.c.bf16 %v2998_v23, %v2996_v22  ;;  %v546_v19 = vpop.permute.xlu0 %545 }
  0x9c   :  { %v551_v18 = vpop.permute.xlu1 %550 }
  0x9d   :  { %2452 = vmatprep.subr.bf16.mxu1 %v2451_v26 }
  0x9e   :  { %2454 = vmatpush3.bf16.msra.mxu1 %v2451_v26 }
  0x9f   :  { %v556_v21 = vpop.permute.xlu0 %555 }
  0xa0   :  { %v561_v20 = vpop.permute.xlu1 %560 }
  0xa4   :  { %v571_v26 = vpop.permute.xlu1 %570 }
 0x116   :  { %v2291_v29 = vpop.f32.mrb[0].mxu1 }
 0x117   :  { %v358_v30 = vpop.f32.mrb[1].mxu1  ;;  %v518_v25 = vmul.f32 %v2291_v29, %v2291_v29 }
 0x118   :  { %v2459_v31 = vpack.c.bf16 %v2291_v29, %v358_v30  ;;  %v2301_v35 = vpop.f32.mrb[0].mxu0  ;;  %v517_v39 = vmul.f32 %v358_v30, %v358_v30 }
 0x119   :  { %v508_v12 = vpop.f32.mrb[1].mxu0  ;;  %v524_v38 = vmul.f32 %v2301_v35, %v2301_v35 }
 0x11a   :  { %v2296_v13 = vpop.f32.mrb[2].mxu1  ;;  %2460 = vmatprep.subr.bf16.mxu0 %v2459_v31  ;;  %v2467_v14 = vpack.c.bf16 %v2301_v35, %v508_v12  ;;  %v523_v42 = vmul.f32 %v508_v12, %v508_v12 }
 0x11b   :  { %v520_v36 = vmul.f32 %v2296_v13, %v2296_v13  ;;  %v433_v37 = vpop.f32.mrb[3].mxu1  ;;  %2462 = vmatpush3.bf16.msra.mxu0 %v2459_v31 }
 0x11c   :  { %v519_v40 = vmul.f32 %v433_v37, %v433_v37  ;;  %v2463_v41 = vpack.c.bf16 %v2296_v13, %v433_v37  ;;  %v581_v13 = vpop.permute.xlu1 %580 }
 0x11d   :  { %v522_v43 = vadd.f32 %v520_v36, %v518_v25 }
 0x11e   :  { %v521_v44 = vadd.f32 %v519_v40, %v517_v39  ;;  %2464 = vmatprep.subr.bf16.mxu0 %v2463_v41  ;;  %2343 = vmatmul.mubr.msk.f32.vlgmr.msra.gmra.mrb[2].mxu0 %vm817_vm2, %v110_v8 }
 0x11f   :  { %v526_v45 = vadd.f32 %v524_v38, %v522_v43  ;;  %2466 = vmatpush3.bf16.msra.mxu0 %v2463_v41  ;;  %2349 = vmatprep.mubr.msk.f32.mxu0 %vm817_vm2, %v109_v27 }
 0x120   :  { %v525_v46 = vadd.f32 %v523_v42, %v521_v44  ;;  %2468 = vmatprep.subr.bf16.mxu0 %v2467_v14 }
 0x121   :  { %v528_v47 = vmax.f32 %v526_v45, 1e-08 }
 0x122   :  { %v527_v48 = vmax.f32 %v525_v46, 1e-08  ;;  %2350 = vmatmul.mubr.msk.f32.vlgmr.msra.gmra.mrb[4].mxu0 %vm817_vm2, %v110_v8 }
 0x123   :  { %2569 = vrsqrt.f32 %v528_v47  ;;  %2470 = vmatpush3.bf16.msra.mxu0 %v2467_v14  ;;  %2356 = vmatprep.mubr.msk.f32.mxu0 %vm817_vm2, %v109_v27  ;;  %vm538_vm4 = vcmp.eq.f32.partialorder %v528_v47, inf  ;;  %v541_v53 = vand.u32 2147483648, %v528_v47  ;;  %vm540_vm6 = vcmp.eq.f32.partialorder %v528_v47, 0.0  ;;  %v566_v27 = vpop.permute.xlu0 %565 }
 0x124   :  { %2571 = vrsqrt.f32 %v527_v48  ;;  %vm531_vm5 = vcmp.eq.f32.partialorder %v527_v48, inf  ;;  %v534_v54 = vand.u32 2147483648, %v527_v48  ;;  %vm533_vm7 = vcmp.eq.f32.partialorder %v527_v48, 0.0 }
 0x126   :  { %2357 = vmatmul.mubr.msk.f32.vlgmr.msra.gmra.mrb[6].mxu0 %vm817_vm2, %v110_v8 }
 0x127   :  { %v576_v37 = vpop.permute.xlu0 %575 }
 0x12d   :  { %v2570_v49 = vpop.eup %2569 }
 0x12e   :  { %v2572_v50 = vpop.eup %2571  ;;  %v537_v51 = vmul.f32 %v2570_v49, %v528_v47 }
 0x12f   :  { %v530_v52 = vmul.f32 %v2572_v50, %v527_v48 }
 0x130   :  { %v539_v55 = vsel %vm538_vm4, %v528_v47, %v537_v51  ;;  %v586_v51 = vpop.permute.xlu0 %585 }
 0x131   :  { %v532_v56 = vsel %vm531_vm5, %v527_v48, %v530_v52  ;;  %v542_v57 = vsel %vm540_vm6, %v541_v53, %v539_v55  ;;  %v591_v48 = vpop.permute.xlu1 %590 }
 0x132   :  { %v535_v58 = vsel %vm533_vm7, %v534_v54, %v532_v56 }
 0x133   :  { %v2455_v59 = vpack.c.bf16 %v542_v57, %v535_v58 }
 0x135   :  { %2456 = vmatprep.subr.bf16.mxu1 %v2455_v59 }
 0x136   :  { %2458 = vmatpush3.bf16.msra.mxu1 %v2455_v59 }
 0x139   :  { %2315 = vmatmul.mubr.msk.f32.vlgmr.msra.gmra.mrb[4].mxu1 %vm623_vm3, %v78_v60 }
 0x13a   :  { %2317 = vmatprep.mubr.msk.f32.mxu1 %vm623_vm3, %v79_v61 }
 0x13d   :  { %2318 = vmatmul.mubr.msk.f32.gmra.mrb[6].mxu1 %vm623_vm3, %v80_v62 }
 0x13e   :  { %2320 = vmatprep.mubr.msk.f32.mxu1 %vm623_vm3, %v81_v63 }
 0x141   :  { %2321 = vmatmul.mubr.msk.f32.gmra.mrb[8].mxu1 %vm623_vm3, %v82_v0 }
 0x142   :  { %2323 = vmatprep.mubr.msk.f32.mxu1 %vm623_vm3, %v83_v1  ;;  %v601_v1 = vpop.permute.xlu1 %600 }
 0x145   :  { %2324 = vmatmul.mubr.msk.f32.gmra.mrb[10].mxu1 %vm623_vm3, %v84_v2 }
 0x146   :  { %2326 = vmatprep.mubr.msk.f32.mxu1 %vm623_vm3, %v85_v3 }
 0x149   :  { %2327 = vmatmul.mubr.msk.f32.gmra.mrb[12].mxu1 %vm623_vm3, %v86_v4 }
 0x14a   :  { %2329 = vmatprep.mubr.msk.f32.mxu1 %vm623_vm3, %v87_v5 }
 0x14d   :  { %2330 = vmatmul.mubr.msk.f32.gmra.mrb[14].mxu1 %vm623_vm3, %v88_v7  ;;  %v596_v7 = vpop.permute.xlu0 %595 }
 0x14e   :  { %2332 = vmatprep.mubr.msk.f32.mxu1 %vm623_vm3, %v89_v9 }
 0x151   :  { %2333 = vmatmul.mubr.msk.f32.gmra.mrb[16].mxu1 %vm623_vm3, %v90_v10 }
 0x152   :  { %2335 = vmatprep.mubr.msk.f32.mxu1 %vm623_vm3, %v91_v15 }
 0x155   :  { %2336 = vmatmul.mubr.msk.f32.gmra.mrb[18].mxu1 %vm623_vm3, %v92_v16 }
 0x156   :  { %2391 = vmatprep.mubr.f32.mxu1 %v111_v17 }
 0x20c   :  { %v2316_v28 = vpop.f32.mrb[4].mxu1 }
 0x20d   :  { %v744_v29 = vadd.f32 %v2316_v28, %v551_v18  ;;  %v738_v30 = vpop.f32.mrb[5].mxu1 }
 0x20e   :  { %v739_v31 = vadd.f32 %v738_v30, %v546_v19 }
 0x20f   :  { %v2128_v35 = vmul.f32 -1.442695, %v744_v29  ;;  %v1249_v12 = vmax.f32 %v744_v29, 0.0 }
 0x210   :  { %v2127_v14 = vmul.f32 -1.442695, %v739_v31  ;;  %v1248_v25 = vmax.f32 %v739_v31, 0.0  ;;  %v2319_v36 = vpop.f32.mrb[6].mxu1 }
 0x211   :  { %2573 = vpow2.f32 %v2128_v35  ;;  %v754_v38 = vadd.f32 %v2319_v36, %v561_v20  ;;  %v748_v8 = vpop.f32.mrb[7].mxu1  ;;  %v606_v36 = vpop.permute.xlu0 %605 }
 0x212   :  { %2575 = vpow2.f32 %v2127_v14  ;;  %v3081_v39 = vpack.c.bf16 %v1249_v12, %v1248_v25  ;;  %v749_v40 = vadd.f32 %v748_v8, %v556_v21  ;;  %v611_v12 = vpop.permute.xlu1 %610 }
 0x213   :  { %v2130_v41 = vmul.f32 -1.442695, %v754_v38  ;;  %v1251_v42 = vmax.f32 %v754_v38, 0.0 }
 0x214   :  { %v2129_v43 = vmul.f32 -1.442695, %v749_v40  ;;  %v1250_v44 = vmax.f32 %v749_v40, 0.0  ;;  %v2322_v45 = vpop.f32.mrb[8].mxu1 }
 0x215   :  { %2577 = vpow2.f32 %v2130_v41  ;;  %v764_v46 = vadd.f32 %v2322_v45, %v571_v26  ;;  %v758_v47 = vpop.f32.mrb[9].mxu1 }
 0x216   :  { %2579 = vpow2.f32 %v2129_v43  ;;  %v3083_v49 = vpack.c.bf16 %v1251_v42, %v1250_v44  ;;  %v759_v50 = vadd.f32 %v758_v47, %v566_v27 }
 0x217   :  { %v2132_v52 = vmul.f32 -1.442695, %v764_v46  ;;  %v1253_v53 = vmax.f32 %v764_v46, 0.0 }
 0x218   :  { %v2131_v54 = vmul.f32 -1.442695, %v759_v50  ;;  %v1252_v55 = vmax.f32 %v759_v50, 0.0  ;;  %v2325_v56 = vpop.f32.mrb[10].mxu1 }
 0x219   :  { %2581 = vpow2.f32 %v2132_v52  ;;  %v774_v57 = vadd.f32 %v2325_v56, %v581_v13  ;;  %v768_v58 = vpop.f32.mrb[11].mxu1 }
 0x21a   :  { %2583 = vpow2.f32 %v2131_v54  ;;  %v3085_v59 = vpack.c.bf16 %v1253_v53, %v1252_v55  ;;  %v769_v60 = vadd.f32 %v768_v58, %v576_v37  ;;  %v621_v54 = vpop.permute.xlu1 %620 }
 0x21b   :  { %v2574_v61 = vpop.eup %2573  ;;  %v2134_v62 = vmul.f32 -1.442695, %v774_v57  ;;  %v1255_v63 = vmax.f32 %v774_v57, 0.0 }
 0x21c   :  { %v2576_v0 = vpop.eup %2575  ;;  %v1098_v2 = vadd.f32 1.0, %v2574_v61  ;;  %v2133_v3 = vmul.f32 -1.442695, %v769_v60  ;;  %v1254_v4 = vmax.f32 %v769_v60, 0.0  ;;  %v2328_v5 = vpop.f32.mrb[12].mxu1 }
 0x21d   :  { %v1097_v9 = vadd.f32 1.0, %v2576_v0  ;;  %2585 = vpow2.f32 %v2134_v62  ;;  %v784_v10 = vadd.f32 %v2328_v5, %v591_v48  ;;  %v778_v15 = vpop.f32.mrb[13].mxu1  ;;  %v616_v61 = vpop.permute.xlu0 %615 }
 0x21e   :  { %2587 = vrcp.f32 %v1098_v2  ;;  %v3087_v16 = vpack.c.bf16 %v1255_v63, %v1254_v4  ;;  %v779_v17 = vadd.f32 %v778_v15, %v586_v51 }
 0x21f   :  { %v2578_v18 = vpop.eup %2577  ;;  %2589 = vrcp.f32 %v1097_v9  ;;  %v2136_v19 = vmul.f32 -1.442695, %v784_v10  ;;  %v1257_v20 = vmax.f32 %v784_v10, 0.0 }
 0x220   :  { %v2580_v21 = vpop.eup %2579  ;;  %v1100_v26 = vadd.f32 1.0, %v2578_v18  ;;  %2591 = vpow2.f32 %v2133_v3  ;;  %v2135_v27 = vmul.f32 -1.442695, %v779_v17  ;;  %v1256_v28 = vmax.f32 %v779_v17, 0.0  ;;  %v2331_v29 = vpop.f32.mrb[14].mxu1 }
 0x221   :  { %v1099_v30 = vadd.f32 1.0, %v2580_v21  ;;  %2593 = vpow2.f32 %v2136_v19  ;;  %v794_v31 = vadd.f32 %v2331_v29, %v601_v1  ;;  %v788_v35 = vpop.f32.mrb[15].mxu1 }
 0x222   :  { %2595 = vrcp.f32 %v1100_v26  ;;  %v3089_v13 = vpack.c.bf16 %v1257_v20, %v1256_v28  ;;  %v789_v14 = vadd.f32 %v788_v35, %v596_v7 }
 0x223   :  { %v2582_v25 = vpop.eup %2581  ;;  %2597 = vrcp.f32 %v1099_v30  ;;  %v2138_v37 = vmul.f32 -1.442695, %v794_v31  ;;  %v1259_v38 = vmax.f32 %v794_v31, 0.0 }
 0x224   :  { %v2584_v8 = vpop.eup %2583  ;;  %v1102_v40 = vadd.f32 1.0, %v2582_v25  ;;  %2599 = vpow2.f32 %v2135_v27  ;;  %v2137_v41 = vmul.f32 -1.442695, %v789_v14  ;;  %v1258_v42 = vmax.f32 %v789_v14, 0.0  ;;  %v2334_v43 = vpop.f32.mrb[16].mxu1 }
 0x225   :  { %v1101_v44 = vadd.f32 1.0, %v2584_v8  ;;  %2601 = vpow2.f32 %v2138_v37  ;;  %v804_v45 = vadd.f32 %v2334_v43, %v611_v12  ;;  %v798_v46 = vpop.f32.mrb[17].mxu1 }
 0x226   :  { %2603 = vrcp.f32 %v1102_v40  ;;  %v3091_v47 = vpack.c.bf16 %v1259_v38, %v1258_v42  ;;  %v799_v48 = vadd.f32 %v798_v46, %v606_v36 }
 0x227   :  { %v2586_v50 = vpop.eup %2585  ;;  %2605 = vrcp.f32 %v1101_v44  ;;  %v2140_v51 = vmul.f32 -1.442695, %v804_v45  ;;  %v1261_v52 = vmax.f32 %v804_v45, 0.0 }
 0x228   :  { %v2588_v53 = vpop.eup %2587  ;;  %v1104_v55 = vadd.f32 1.0, %v2586_v50  ;;  %2607 = vpow2.f32 %v2137_v41  ;;  %v2139_v56 = vmul.f32 -1.442695, %v799_v48  ;;  %v1260_v57 = vmax.f32 %v799_v48, 0.0  ;;  %v2337_v58 = vpop.f32.mrb[18].mxu1 }
 0x229   :  { %v2590_v60 = vpop.eup %2589  ;;  %2609 = vpow2.f32 %v2140_v51  ;;  %v814_v62 = vadd.f32 %v2337_v58, %v621_v54  ;;  %v808_v63 = vpop.f32.mrb[19].mxu1 }
 0x22a   :  { %v2592_v0 = vpop.eup %2591  ;;  %2611 = vrcp.f32 %v1104_v55  ;;  %v3093_v1 = vpack.c.bf16 %v1261_v52, %v1260_v57  ;;  %v809_v2 = vadd.f32 %v808_v63, %v616_v61  ;;  %v2471_v3 = vpack.c.bf16 %v2588_v53, %v2590_v60  ;;  %v112_v61 = vld [vmem:[%s3223_s10 + $0x8] sm:$0xff] }
 0x22b   :  { %v2594_v4 = vpop.eup %2593  ;;  %v1103_v5 = vadd.f32 1.0, %v2592_v0  ;;  %2613 = vpow2.f32 %v2139_v56  ;;  %v2142_v7 = vmul.f32 -1.442695, %v814_v62  ;;  %v1263_v9 = vmax.f32 %v814_v62, 0.0  ;;  %v2344_v62 = vpop.f32.mrb[2].mxu0 }
 0x22c   :  { %v2596_v10 = vpop.eup %2595  ;;  %v1106_v15 = vadd.f32 1.0, %v2594_v4  ;;  %v2141_v17 = vmul.f32 -1.442695, %v809_v2  ;;  %v1262_v18 = vmax.f32 %v809_v2, 0.0  ;;  %2472 = vmatprep.subr.bf16.mxu1 %v2471_v3  ;;  %v890_v63 = vpop.f32.mrb[3].mxu0 }
 0x22d   :  { %v2598_v19 = vpop.eup %2597  ;;  %2615 = vrcp.f32 %v1103_v5  ;;  %2474 = vmatpush3.bf16.msra.mxu1 %v2471_v3  ;;  %v2351_v0 = vpop.f32.mrb[4].mxu0  ;;  %v115_v5 = vld [vmem:[%s3224_s12] sm:$0xff] }
 0x22e   :  { %v2600_v20 = vpop.eup %2599  ;;  %2617 = vrcp.f32 %v1106_v15  ;;  %v3095_v21 = vpack.c.bf16 %v1263_v9, %v1262_v18  ;;  %v2475_v26 = vpack.c.bf16 %v2596_v10, %v2598_v19  ;;  %v965_v2 = vpop.f32.mrb[5].mxu0  ;;  %2398 = vmatprep.mubr.msk.f32.mxu0 %vm817_vm2, %v115_v5 }
 0x22f   :  { %v2602_v27 = vpop.eup %2601  ;;  %v1105_v28 = vadd.f32 1.0, %v2600_v20  ;;  %2619 = vpow2.f32 %v2142_v7  ;;  %v2358_v3 = vpop.f32.mrb[6].mxu0  ;;  %v2661_v7 = vmov 0.0|0.0  }
 0x230   :  { %v2604_v29 = vpop.eup %2603  ;;  %v1108_v30 = vadd.f32 1.0, %v2602_v27  ;;  %2621 = vpow2.f32 %v2141_v17  ;;  %2476 = vmatprep.subr.bf16.mxu1 %v2475_v26  ;;  %v1040_v4 = vpop.f32.mrb[7].mxu0 }
 0x231   :  { %v2606_v31 = vpop.eup %2605  ;;  %2623 = vrcp.f32 %v1105_v28  ;;  %2478 = vmatpush3.bf16.msra.mxu1 %v2475_v26  ;;  %v1153_v9 = vpop.permute.xlu1 %1152 }
 0x232   :  { %v2608_v35 = vpop.eup %2607  ;;  %v2479_v12 = vpack.c.bf16 %v2604_v29, %v2606_v31  ;;  %2625 = vrcp.f32 %v1108_v30  ;;  %v1148_v15 = vpop.permute.xlu0 %1147 }
 0x233   :  { %v2610_v14 = vpop.eup %2609  ;;  %v1107_v25 = vadd.f32 1.0, %v2608_v35 }
 0x234   :  { %v2612_v36 = vpop.eup %2611  ;;  %v1110_v37 = vadd.f32 1.0, %v2610_v14  ;;  %2480 = vmatprep.subr.bf16.mxu1 %v2479_v12 }
 0x235   :  { %v2614_v38 = vpop.eup %2613  ;;  %2627 = vrcp.f32 %v1107_v25  ;;  %2482 = vmatpush3.bf16.msra.mxu1 %v2479_v12 }
 0x236   :  { %2629 = vrcp.f32 %v1110_v37  ;;  %v1109_v8 = vadd.f32 1.0, %v2614_v38 }
 0x237   :  { %v2616_v40 = vpop.eup %2615 }
 0x238   :  { %v2618_v41 = vpop.eup %2617  ;;  %2631 = vrcp.f32 %v1109_v8  ;;  %v2483_v42 = vpack.c.bf16 %v2612_v36, %v2616_v40 }
 0x239   :  { %v2620_v43 = vpop.eup %2619 }
 0x23a   :  { %v2622_v44 = vpop.eup %2621  ;;  %v1112_v45 = vadd.f32 1.0, %v2620_v43  ;;  %2484 = vmatprep.subr.bf16.mxu1 %v2483_v42 }
 0x23b   :  { %v2624_v46 = vpop.eup %2623  ;;  %v1111_v48 = vadd.f32 1.0, %v2622_v44  ;;  %2486 = vmatpush3.bf16.msra.mxu1 %v2483_v42  ;;  %v116_v42 = vld [vmem:[%s3224_s12 + $0x8] sm:$0xff] }
 0x23c   :  { %2633 = vrcp.f32 %v1112_v45  ;;  %v2487_v50 = vpack.c.bf16 %v2618_v41, %v2624_v46  ;;  %v2626_v51 = vpop.eup %2625 }
 0x23d   :  { %2635 = vrcp.f32 %v1111_v48 }
 0x23e   :  { %2488 = vmatprep.subr.bf16.mxu1 %v2487_v50 }
 0x23f   :  { %v2628_v52 = vpop.eup %2627  ;;  %2490 = vmatpush3.bf16.msra.mxu1 %v2487_v50 }
 0x240   :  { %v2630_v53 = vpop.eup %2629  ;;  %v2491_v54 = vpack.c.bf16 %v2626_v51, %v2628_v52 }
 0x242   :  { %v2632_v55 = vpop.eup %2631  ;;  %2492 = vmatprep.subr.bf16.mxu1 %v2491_v54 }
 0x243   :  { %2494 = vmatpush3.bf16.msra.mxu1 %v2491_v54  ;;  %v2495_v56 = vpack.c.bf16 %v2630_v53, %v2632_v55 }
 0x245   :  { %2496 = vmatprep.subr.bf16.mxu1 %v2495_v56 }
 0x246   :  { %v2634_v57 = vpop.eup %2633 }
 0x247   :  { %v2636_v58 = vpop.eup %2635  ;;  %2498 = vmatpush3.bf16.msra.mxu1 %v2495_v56 }
 0x248   :  { %v2499_v60 = vpack.c.bf16 %v2634_v57, %v2636_v58 }
 0x24a   :  { %2500 = vmatprep.subr.bf16.mxu1 %v2499_v60 }
 0x24b   :  { %2502 = vmatpush3.bf16.msra.mxu1 %v2499_v60 }
 0x24c   :  { %2542 = vmatprep.subr.bf16.mxu1 %v2661_v7 }
 0x24e   :  { %2392 = vmatmul.mubr.f32.vlgmr.msra.gmra.mrb[20].mxu1 %v112_v61 }
 0x24f   :  { %2419 = vmatprep.mubr.msk.f32.mxu1 %vm2662_vm8, %v2660_v24 }
 0x321   :  { %v2393_v10 = vpop.f32.mrb[20].mxu1 }
 0x322   :  { %v1227_v17 = vadd.f32 %v2393_v10, %v1153_v9  ;;  %v1221_v18 = vpop.f32.mrb[21].mxu1 }
 0x323   :  { %v1222_v19 = vadd.f32 %v1221_v18, %v1148_v15  ;;  %v120_v18 = vld [vmem:[%s3225_s13 + $0x18] sm:$0xff] }
 0x324   :  { %v2144_v20 = vmul.f32 -1.442695, %v1227_v17  ;;  %v117_v17 = vld [vmem:[%s3225_s13] sm:$0xff] }
 0x325   :  { %v2143_v26 = vmul.f32 -1.442695, %v1222_v19  ;;  %v119_v19 = vld [vmem:[%s3225_s13 + $0x10] sm:$0xff] }
 0x326   :  { %2637 = vpow2.f32 %v2144_v20  ;;  %v122_v20 = vld [vmem:[%s3225_s13 + $0x28] sm:$0xff] }
 0x327   :  { %2639 = vpow2.f32 %v2143_v26  ;;  %v121_v26 = vld [vmem:[%s3225_s13 + $0x20] sm:$0xff] }
 0x330   :  { %v2638_v27 = vpop.eup %2637 }
 0x331   :  { %v2640_v28 = vpop.eup %2639  ;;  %v1237_v29 = vadd.f32 1.0, %v2638_v27  ;;  %v124_v27 = vld [vmem:[%s3225_s13 + $0x38] sm:$0xff] }
 0x332   :  { %v1236_v30 = vadd.f32 1.0, %v2640_v28  ;;  %v123_v28 = vld [vmem:[%s3225_s13 + $0x30] sm:$0xff] }
 0x333   :  { %2641 = vrcp.f32 %v1237_v29 }
 0x334   :  { %2643 = vrcp.f32 %v1236_v30 }
 0x33d   :  { %v2642_v31 = vpop.eup %2641 }
 0x33e   :  { %v2644_v35 = vpop.eup %2643  ;;  %v1243_v12 = vmul.f32 %v2642_v31, %v2344_v62  ;;  %v1245_v14 = vmul.f32 %v2642_v31, %v2351_v0  ;;  %v1247_v25 = vmul.f32 %v2642_v31, %v2358_v3 }
 0x33f   :  { %v1242_v36 = vmul.f32 %v2644_v35, %v890_v63  ;;  %v1244_v37 = vmul.f32 %v2644_v35, %v965_v2  ;;  %v1246_v38 = vmul.f32 %v2644_v35, %v1040_v4 }
 0x341   :  { %v2503_v8 = vpack.c.bf16 %v1243_v12, %v1242_v36  ;;  %v2507_v40 = vpack.c.bf16 %v1245_v14, %v1244_v37  ;;  %v2511_v41 = vpack.c.bf16 %v1247_v25, %v1246_v38  ;;  %v1524_v37 = vpop.permute.xlu0 %1523 }
 0x343   :  { %2504 = vmatprep.subr.bf16.mxu0 %v2503_v8 }
 0x344   :  { %2506 = vmatpush3.bf16.msra.mxu0 %v2503_v8  ;;  %v1529_v8 = vpop.permute.xlu1 %1528 }
 0x345   :  { %2508 = vmatprep.subr.bf16.mxu0 %v2507_v40 }
 0x347   :  { %2399 = vmatmul.mubr.msk.f32.vlgmr.msra.gmra.mrb[8].mxu0 %vm817_vm2, %v116_v42 }
 0x348   :  { %2510 = vmatpush3.bf16.msra.mxu0 %v2507_v40  ;;  %2405 = vmatprep.mubr.msk.f32.mxu0 %vm817_vm2, %v115_v5 }
 0x349   :  { %2512 = vmatprep.subr.bf16.mxu0 %v2511_v41 }
 0x34b   :  { %2406 = vmatmul.mubr.msk.f32.vlgmr.msra.gmra.mrb[10].mxu0 %vm817_vm2, %v116_v42 }
 0x34c   :  { %2514 = vmatpush3.bf16.msra.mxu0 %v2511_v41  ;;  %2412 = vmatprep.mubr.msk.f32.mxu0 %vm817_vm2, %v115_v5 }
 0x34d   :  { %2515 = vmatprep.subr.bf16.mxu0 %v2661_v7 }
 0x34f   :  { %2413 = vmatmul.mubr.msk.f32.vlgmr.msra.gmra.mrb[12].mxu0 %vm817_vm2, %v116_v42 }
 0x350   :  { %2517 = vmatpush1.bf16.msra.mxu0 %v3081_v39  ;;  %v118_v39 = vld [vmem:[%s3225_s13 + $0x8] sm:$0xff] }
 0x351   :  { %2518 = vmatprep.subr.bf16.mxu0 %v2661_v7  ;;  %2151 = vmatprep.mubr.msk.f32.mxu0 %vm817_vm2, %v118_v39 }
 0x354   :  { %2520 = vmatpush1.bf16.msra.mxu0 %v3083_v49 }
 0x355   :  { %2521 = vmatprep.subr.bf16.mxu0 %v2661_v7 }
 0x358   :  { %2523 = vmatpush1.bf16.msra.mxu0 %v3085_v59 }
 0x359   :  { %2524 = vmatprep.subr.bf16.mxu0 %v2661_v7 }
 0x35c   :  { %2526 = vmatpush1.bf16.msra.mxu0 %v3087_v16 }
 0x35d   :  { %2527 = vmatprep.subr.bf16.mxu0 %v2661_v7 }
 0x360   :  { %2529 = vmatpush1.bf16.msra.mxu0 %v3089_v13 }
 0x361   :  { %2530 = vmatprep.subr.bf16.mxu0 %v2661_v7 }
 0x364   :  { %2532 = vmatpush1.bf16.msra.mxu0 %v3091_v47  ;;  %v129_v47 = vld [vmem:[%s3226_s15] sm:$0xff] }
 0x365   :  { %2533 = vmatprep.subr.bf16.mxu0 %v2661_v7 }
 0x368   :  { %2535 = vmatpush1.bf16.msra.mxu0 %v3093_v1 }
 0x369   :  { %2536 = vmatprep.subr.bf16.mxu0 %v2661_v7 }
 0x36c   :  { %2538 = vmatpush1.bf16.msra.mxu0 %v3095_v21 }
 0x36d   :  { %2539 = vmatprep.subr.bf16.mxu0 %v2661_v7 }
 0x41a   :  { %v2400_v49 = vpop.f32.mrb[8].mxu0 }
 0x41b   :  { %v1336_v59 = vpop.f32.mrb[9].mxu0  ;;  %v1496_v1 = vmul.f32 %v2400_v49, %v2400_v49 }
 0x41c   :  { %v2543_v16 = vpack.c.bf16 %v2400_v49, %v1336_v59  ;;  %v1495_v44 = vmul.f32 %v1336_v59, %v1336_v59 }
 0x41e   :  { %v2407_v13 = vpop.f32.mrb[10].mxu0  ;;  %2544 = vmatpush3.bf16.msra.mxu1 %v2543_v16  ;;  %v1534_v16 = vpop.permute.xlu0 %1533 }
 0x41f   :  { %v1498_v21 = vmul.f32 %v2407_v13, %v2407_v13  ;;  %v1411_v43 = vpop.f32.mrb[11].mxu0  ;;  %2545 = vmatprep.subr.bf16.mxu1 %v2661_v7 }
 0x420   :  { %v1497_v45 = vmul.f32 %v1411_v43, %v1411_v43  ;;  %v2546_v46 = vpack.c.bf16 %v2407_v13, %v1411_v43 }
 0x421   :  { %v1500_v48 = vadd.f32 %v1498_v21, %v1496_v1  ;;  %2420 = vmatmul.mubr.msk.f32.vlgmr.msra.gmra.mrb[22].mxu1 %vm817_vm2, %v129_v47 }
 0x422   :  { %v1499_v50 = vadd.f32 %v1497_v45, %v1495_v44  ;;  %v2414_v51 = vpop.f32.mrb[12].mxu0  ;;  %2547 = vmatpush3.bf16.msra.mxu1 %v2546_v46  ;;  %2426 = vmatprep.mubr.msk.f32.mxu1 %vm2662_vm8, %v2660_v24  ;;  %v1539_v44 = vpop.permute.xlu1 %1538 }
 0x423   :  { %v1502_v52 = vmul.f32 %v2414_v51, %v2414_v51  ;;  %v1486_v53 = vpop.f32.mrb[13].mxu0  ;;  %2548 = vmatprep.subr.bf16.mxu1 %v2661_v7 }
 0x424   :  { %v1501_v54 = vmul.f32 %v1486_v53, %v1486_v53  ;;  %v2549_v55 = vpack.c.bf16 %v2414_v51, %v1486_v53 }
 0x425   :  { %v1504_v56 = vadd.f32 %v1502_v52, %v1500_v48  ;;  %2427 = vmatmul.mubr.msk.f32.vlgmr.msra.gmra.mrb[24].mxu1 %vm817_vm2, %v129_v47 }
 0x426   :  { %v1503_v57 = vadd.f32 %v1501_v54, %v1499_v50  ;;  %2550 = vmatpush3.bf16.msra.mxu1 %v2549_v55  ;;  %2433 = vmatprep.mubr.msk.f32.mxu1 %vm2662_vm8, %v2660_v24 }
 0x427   :  { %v1506_v58 = vmax.f32 %v1504_v56, 1e-08  ;;  %2551 = vmatprep.subr.bf16.mxu1 %v2661_v7 }
 0x428   :  { %v1505_v60 = vmax.f32 %v1503_v57, 1e-08 }
 0x429   :  { %2645 = vrsqrt.f32 %v1506_v58  ;;  %2434 = vmatmul.mubr.msk.f32.vlgmr.msra.gmra.mrb[26].mxu1 %vm817_vm2, %v129_v47  ;;  %vm1516_vm9 = vcmp.eq.f32.partialorder %v1506_v58, inf  ;;  %v1519_v2 = vand.u32 2147483648, %v1506_v58  ;;  %vm1518_vm11 = vcmp.eq.f32.partialorder %v1506_v58, 0.0 }
 0x42a   :  { %2647 = vrsqrt.f32 %v1505_v60  ;;  %2444 = vmatprep.mubr.msk.f32.mxu1 %vm2662_vm8, %v2660_v24  ;;  %vm1509_vm10 = vcmp.eq.f32.partialorder %v1505_v60, inf  ;;  %v1512_v3 = vand.u32 2147483648, %v1505_v60  ;;  %vm1511_vm12 = vcmp.eq.f32.partialorder %v1505_v60, 0.0 }
 0x433   :  { %v2646_v61 = vpop.eup %2645 }
 0x434   :  { %v2648_v62 = vpop.eup %2647  ;;  %v1515_v63 = vmul.f32 %v2646_v61, %v1506_v58 }
 0x435   :  { %v1508_v0 = vmul.f32 %v2648_v62, %v1505_v60 }
 0x436   :  { %v1517_v4 = vsel %vm1516_vm9, %v1506_v58, %v1515_v63 }
 0x437   :  { %v1510_v5 = vsel %vm1509_vm10, %v1505_v60, %v1508_v0  ;;  %v1520_v9 = vsel %vm1518_vm11, %v1519_v2, %v1517_v4 }
 0x438   :  { %v1513_v10 = vsel %vm1511_vm12, %v1512_v3, %v1510_v5 }
 0x439   :  { %v2540_v15 = vpack.c.bf16 %v1520_v9, %v1513_v10 }
 0x43b   :  { %2541 = vmatpush1.bf16.msra.mxu0 %v2540_v15 }
 0x43e   :  { %1618 = vmatmul.mubr.f32.vlgmr.msra.gmra.mrb[14].mxu0 %v117_v17  ;;  %v1854_v17 = vpop.permute.xlu0 %1853 }
 0x43f   :  { %2152 = vmatprep.mubr.msk.f32.mxu0 %vm817_vm2, %v120_v18 }
 0x442   :  { %1623 = vmatmul.mubr.f32.gmra.mrb[16].mxu0 %v119_v19 }
 0x443   :  { %2153 = vmatprep.mubr.msk.f32.mxu0 %vm817_vm2, %v122_v20 }
 0x446   :  { %1628 = vmatmul.mubr.f32.gmra.mrb[18].mxu0 %v121_v26  ;;  %v1983_v26 = vpop.permute.xlu1 %1982 }
 0x447   :  { %2154 = vmatprep.mubr.msk.f32.mxu0 %vm817_vm2, %v124_v27  ;;  %v1988_v27 = vpop.permute.xlu0 %1987 }
 0x44a   :  { %1633 = vmatmul.mubr.f32.gmra.mrb[20].mxu0 %v123_v28 }
 0x4f4   :  { %v3175_v29 = vpop.f32.mrb[22].mxu1 }
 0x4f5   :  { %v2421_v30 = vpop.f32.mrb[23].mxu1 }
 0x4f8   :  { %v3177_v31 = vpop.f32.mrb[24].mxu1 }
 0x4f9   :  { %v2428_v35 = vpop.f32.mrb[25].mxu1 }
 0x4fa   :  { %v1993_v35 = vpop.permute.xlu1 %1992 }
 0x4fc   :  { %v3179_v12 = vpop.f32.mrb[26].mxu1 }
 0x4fd   :  { %v2435_v14 = vpop.f32.mrb[27].mxu1 }
 0x4fe   :  { %v1998_v14 = vpop.permute.xlu0 %1997 }
 0x511   :  { %v1619_v25 = vpop.f32.mrb[14].mxu0 }
 0x512   :  { %v1621_v36 = vpop.f32.mrb[15].mxu0  ;;  %v1620_v38 = vadd.f32 %v1619_v25, %v1524_v37  ;;  %v2007_v25 = vpop.permute.xlu1 %2006 }
 0x513   :  { %v2012_v36 = vpop.permute.xlu0 %2011 }
 0x514   :  { %v1939_v39 = vadd.f32 %v1620_v38, %v2990_v6 }
 0x515   :  { %v1624_v40 = vpop.f32.mrb[16].mxu0 }
 0x516   :  { %v1625_v41 = vadd.f32 %v1624_v40, %v1529_v8  ;;  %v1626_v42 = vpop.f32.mrb[17].mxu0 }
 0x518   :  { %v2552_v49 = vpack.c.bf16 %v1625_v41, %v1620_v38  ;;  %v1940_v59 = vadd.f32 %v1625_v41, %v2992_v11  ;;  %v130_v11 = vld [vmem:[%s3227_s16] sm:$0xff] }
 0x519   :  { %v1629_v13 = vpop.f32.mrb[18].mxu0 }
 0x51a   :  { %v1946_v47 = vadd.f32 %v1940_v59, %v1939_v39  ;;  %v1630_v1 = vadd.f32 %v1629_v13, %v1534_v16  ;;  %v1631_v21 = vpop.f32.mrb[19].mxu0  ;;  %2553 = vmatpush3.bf16.msra.mxu1 %v2552_v49  ;;  %v2017_v16 = vpop.permute.xlu1 %2016 }
 0x51b   :  { %2554 = vmatprep.subr.bf16.mxu1 %v2661_v7  ;;  %v2022_v13 = vpop.permute.xlu0 %2021 }
 0x51c   :  { %v1941_v43 = vadd.f32 %v1630_v1, %v2996_v22 }
 0x51d   :  { %v1634_v45 = vpop.f32.mrb[20].mxu0 }
 0x51e   :  { %v1947_v46 = vadd.f32 %v1946_v47, %v1941_v43  ;;  %v1635_v48 = vadd.f32 %v1634_v45, %v1539_v44  ;;  %v1636_v50 = vpop.f32.mrb[21].mxu0 }
 0x520   :  { %v2555_v51 = vpack.c.bf16 %v1635_v48, %v1630_v1  ;;  %v1942_v6 = vadd.f32 %v1635_v48, %v2998_v23 }
 0x522   :  { %v1948_v52 = vadd.f32 %v1947_v46, %v1942_v6  ;;  %2556 = vmatpush3.bf16.msra.mxu1 %v2555_v51 }
 0x524   :  { %v1949_v53 = vrot.slane %v1948_v52, 4 }
 0x525   :  { %2445 = vmatmul.mubr.msk.f32.vlgmr.msra.gmra.mrb[28].mxu1 %vm1856_vm13, %v130_v11 }
 0x526   :  { %v1950_v7 = vadd.f32 %v1949_v53, %v1948_v52 }
 0x528   :  { %v1951_v54 = vrot.slane %v1950_v7, 2 }
 0x52a   :  { %v1952_v22 = vadd.f32 %v1951_v54, %v1950_v7 }
 0x52c   :  { %v1953_v55 = vrot.slane %v1952_v22, 1 }
 0x52e   :  { %v1954_v56 = vadd.f32 %v1953_v55, %v1952_v22 }
 0x530   :  { %v1955_v57 = vmul.f32 0.03125, %v1954_v56 }
 0x532   :  { %v1956_v58 = vsub.f32 %v1939_v39, %v1955_v57  ;;  %v1957_v60 = vsub.f32 %v1940_v59, %v1955_v57  ;;  %v1958_v61 = vsub.f32 %v1941_v43, %v1955_v57  ;;  %v1959_v62 = vsub.f32 %v1942_v6, %v1955_v57 }
 0x534   :  { %v1960_v23 = vmul.f32 %v1956_v58, %v1956_v58  ;;  %v1961_v63 = vmul.f32 %v1957_v60, %v1957_v60  ;;  %v1962_v0 = vmul.f32 %v1958_v61, %v1958_v61  ;;  %v1963_v3 = vmul.f32 %v1959_v62, %v1959_v62 }
 0x536   :  { %v1964_v2 = vadd.f32 %v1961_v63, %v1960_v23 }
 0x538   :  { %v1965_v4 = vadd.f32 %v1964_v2, %v1962_v0 }
 0x53a   :  { %v1966_v5 = vadd.f32 %v1965_v4, %v1963_v3 }
 0x53c   :  { %v1967_v9 = vrot.slane %v1966_v5, 4 }
 0x53e   :  { %v1968_v10 = vadd.f32 %v1967_v9, %v1966_v5 }
 0x540   :  { %v1969_v15 = vrot.slane %v1968_v10, 2 }
 0x542   :  { %v1970_v18 = vadd.f32 %v1969_v15, %v1968_v10 }
 0x544   :  { %v1971_v19 = vrot.slane %v1970_v18, 1 }
 0x546   :  { %v1972_v20 = vadd.f32 %v1971_v19, %v1970_v18 }
 0x548   :  { %v1973_v28 = vmul.f32 0.03125, %v1972_v20 }
 0x54a   :  { %v1974_v30 = vadd.f32 1e-05, %v1973_v28 }
 0x54c   :  { %2649 = vrsqrt.f32 %v1974_v30 }
 0x556   :  { %v2650_v37 = vpop.eup %2649 }
 0x557   :  { %v1976_v38 = vmul.f32 %v2650_v37, %v1956_v58  ;;  %v1977_v8 = vmul.f32 %v2650_v37, %v1957_v60  ;;  %v1978_v40 = vmul.f32 %v2650_v37, %v1958_v61  ;;  %v1979_v41 = vmul.f32 %v2650_v37, %v1959_v62 }
 0x559   :  { %v2000_v42 = vmul.f32 %v1983_v26, %v1976_v38  ;;  %v2001_v39 = vmul.f32 %v1988_v27, %v1977_v8  ;;  %v2002_v49 = vmul.f32 %v1993_v35, %v1978_v40  ;;  %v2003_v59 = vmul.f32 %v1998_v14, %v1979_v41 }
 0x55b   :  { %v2024_v47 = vadd.f32 %v2007_v25, %v2000_v42  ;;  %v2025_v1 = vadd.f32 %v2012_v36, %v2001_v39  ;;  %v2026_v21 = vadd.f32 %v2017_v16, %v2002_v49  ;;  %v2027_v43 = vadd.f32 %v2022_v13, %v2003_v59 }
 0x55d   :  { %v2186_v44 = vpack.c.bf16 %v2025_v1, %v2024_v47  ;;  %v2191_v45 = vpack.c.bf16 %v2027_v43, %v2026_v21 }
 0x55f   :  { %2187 = vst [vmem:[%s3228_s20] sm:$0xff] %v2186_v44   ;;  %2199 = vst [vmem:[%s3228_s20 + $0x8] sm:$0xff] %v2191_v45  }
 0x5f8   :  { %v1926_v46 = vpop.f32.mrb[28].mxu1 }
 0x5f9   :  { %v1927_v48 = vadd.f32 %v1926_v46, %v1854_v17  ;;  %v2446_v50 = vpop.f32.mrb[29].mxu1 }
 0x5fb   :  { %v2159_v51 = vmul.f32 -1.442695, %v1927_v48 }
 0x5fd   :  { %2651 = vpow2.f32 %v2159_v51 }
 0x607   :  { %v2652_v6 = vpop.eup %2651 }
 0x608   :  { %v1933_v52 = vadd.f32 1.0, %v2652_v6 }
 0x60a   :  { %2653 = vrcp.f32 %v1933_v52 }
 0x614   :  { %v2654_v11 = vpop.eup %2653 }
 0x615   :  { %v1936_v53 = vmul.f32 %v2654_v11, %v3175_v29  ;;  %v1937_v7 = vmul.f32 %v2654_v11, %v3177_v31  ;;  %v1938_v54 = vmul.f32 %v2654_v11, %v3179_v12 }
 0x617   :  { %v1943_v22 = vadd.f32 %v1936_v53, %v2931_v32  ;;  %v1944_v55 = vadd.f32 %v1937_v7, %v2934_v33  ;;  %v1945_v56 = vadd.f32 %v1938_v54, %v2937_v34 }
 0x619   :  { %v2028_v57 = vmul.f32 %v1943_v22, %v1943_v22  ;;  %v2029_v58 = vmul.f32 %v1944_v55, %v1944_v55  ;;  %v2031_v61 = vmul.f32 %v1945_v56, %v1945_v56 }
 0x61b   :  { %v2030_v60 = vadd.f32 %v2029_v58, %v2028_v57 }
 0x61d   :  { %v2032_v62 = vadd.f32 %v2031_v61, %v2030_v60 }
 0x61f   :  { %vm2033_vm14 = vcmp.gt.f32.partialorder %v2032_v62, 0.0002 }
 0x620   :  { %v2160_v23 = vsel %vm2033_vm14, 1.0, %v2660_v24 }
 0x621   :  { %v2036_v63 = vrot.slane %v2160_v23, 4  ;;  %v2043_v29 = vmul.f32 %v2160_v23, %v2032_v62 }
 0x623   :  { %v2037_v0 = vadd.f32 %v2160_v23, %v2036_v63  ;;  %v2044_v31 = vrot.slane %v2043_v29, 4 }
 0x625   :  { %v2038_v2 = vrot.slane %v2037_v0, 2  ;;  %v2045_v3 = vadd.f32 %v2044_v31, %v2043_v29 }
 0x627   :  { %v2039_v12 = vadd.f32 %v2038_v2, %v2037_v0  ;;  %v2046_v33 = vrot.slane %v2045_v3, 2 }
 0x629   :  { %v2040_v32 = vrot.slane %v2039_v12, 1  ;;  %v2047_v34 = vadd.f32 %v2046_v33, %v2045_v3 }
 0x62b   :  { %v2041_v4 = vadd.f32 %v2040_v32, %v2039_v12  ;;  %v2048_v9 = vrot.slane %v2047_v34, 1 }
 0x62d   :  { %v2042_v5 = vadd.f32 0.0001, %v2041_v4  ;;  %v2049_v10 = vadd.f32 %v2048_v9, %v2047_v34 }
 0x62f   :  { %2655 = vrcp.f32 %v2042_v5 }
 0x639   :  { %v2656_v15 = vpop.eup %2655 }
 0x63a   :  { %v2051_v17 = vmul.f32 %v2656_v15, %v2049_v10 }
 0x63c   :  { %v2052_v18 = vadd.f32 0.0001, %v2051_v17 }
 0x63e   :  { %2657 = vrsqrt.f32 %v2052_v18 }
 0x648   :  { %v2658_v24 = vpop.eup %2657 }
 0x649   :  { %v2054_v19 = vmul.f32 %v2658_v24, %v2160_v23 }
 0x64b   :  { %v2055_v20 = vmul.f32 %v2054_v19, %v1943_v22  ;;  %v2056_v26 = vmul.f32 %v2054_v19, %v1944_v55  ;;  %v2057_v27 = vmul.f32 %v2054_v19, %v1945_v56 }
 0x64d   :  { %v2196_v28 = vpack.c.bf16 %v2056_v26, %v2055_v20  ;;  %v2083_v30 = vpack.c.bf16 %v2057_v27, %v2057_v27 }
 0x64f   :  { %2197 = vst [vmem:[%s3229_s21] sm:$0xff] %v2196_v28   ;;  %2166 = vst [vmem:[%s3229_s21 + $0x8] sm:$0xf] %v2083_v30 }

</bundles_post_ra>
